<compile_context>
chip_gen: v6e
topology: v6e:2x2x1
jax: 0.10.0
libtpu: 0.0.40
codegen_flags: <defaults>
</compile_context>

<pallas_src>
import functools

import jax
import jax.numpy as jnp
from jax.experimental import pallas as pl
from jax.experimental.pallas import tpu as pltpu


def _softmax_last(x):
    m = jnp.max(x, axis=-1, keepdims=True)
    e = jnp.exp(x - m)
    s = jnp.sum(e, axis=-1, keepdims=True)
    # EUP approx reciprocal frees VALU slots; ~1e-4-level deviation vs exact divide.
    return e * pl.reciprocal(s, approx=True)


def _st_attn_kernel(prediction_mode, dkT, dvT, dkS,
                    xT_ref, xS_ref,
                    wqkvT_ref, wqkS_ref,
                    biasT_ref, biasS_ref,
                    woT_ref, boT_ref,
                    out_ref, *maybe_attn_ref):
    # One grid step == bb batch elements (heads == 1).
    BB, T, dim_T = xT_ref.shape
    _, N, _ = xS_ref.shape
    cdt = wqkvT_ref.dtype          # MXU operand dtype (f32 or bf16)

    # --- fused Q|K|V projections: one tall matmul per stream; batched einsum keeps the
    #     T / N axes on sublanes (no (BB*T) flatten relayout).  scale_T / scale_S are
    #     folded into the q columns of the fused weights at prepare_params time.
    qkv_T = jnp.einsum("btd,de->bte", xT_ref[...], wqkvT_ref[...],
                       preferred_element_type=jnp.float32)        # (BB, T, 2*dkT+dvT)
    qk_S = jnp.einsum("bnd,de->bne", xS_ref[...], wqkS_ref[...],
                      preferred_element_type=jnp.float32)         # (BB, N, 2*dkS)

    q_T = qkv_T[..., :dkT] + biasT_ref[...]        # + rel_content_bias_T
    k_T = qkv_T[..., dkT:2 * dkT]
    v_T = qkv_T[..., 2 * dkT:]                     # (BB, T, dvT)
    q_S = qk_S[..., :dkS] + biasS_ref[...]         # + rel_content_bias_S
    k_S = qk_S[..., dkS:]
    # v_S / to_out_S / to_out_T_S are dead for attention_type='spatial_temporal_1'.

    # --- attention logits (contract last axes, f32 accumulation) ---
    logits_T = jnp.einsum("bid,bjd->bij", q_T.astype(cdt), k_T.astype(cdt),
                          preferred_element_type=jnp.float32)     # (BB, T, T)
    logits_S = jnp.einsum("bid,bjd->bij", q_S.astype(cdt), k_S.astype(cdt),
                          preferred_element_type=jnp.float32)     # (BB, N, N)

    attn_T = _softmax_last(logits_T)
    attn_S = _softmax_last(logits_S)
    # dropout p=0.0 -> identity.  # TODO(synk): nonzero attention dropout not implemented.

    # --- temporal attention output, then 'spatial_temporal_1' mixing produced directly
    #     in (i, t) order so the result already carries the (B, dim_T, T) permutation
    #     with T on the lane axis ---
    out_T0 = jnp.einsum("bij,bjd->bid", attn_T.astype(cdt), v_T.astype(cdt),
                        preferred_element_type=jnp.float32)       # (BB, T, dvT=N)
    mixed = jnp.einsum("bij,btj->bit", attn_S.astype(cdt), out_T0.astype(cdt),
                       preferred_element_type=jnp.float32)        # (BB, N, T)

    # --- to_out_T fused with the output permutation (plain, non-batched weight) ---
    out_perm = jnp.einsum("id,bit->bdt", woT_ref[...], mixed.astype(cdt),
                          preferred_element_type=jnp.float32)     # (BB, dim_T, T)
    out_perm = out_perm + boT_ref[...][None]                      # boT is (dim_T, 1)

    # One in-VMEM relayout to a lane-dense slab; the HBM store is then wide & unmasked.
    out_ref[...] = out_perm.reshape(BB, dim_T * T)

    if prediction_mode:
        maybe_attn_ref[0][...] = attn_S


def prepare_params(raw_params, *, scale_T, scale_S, compute_dtype=jnp.float32):
    """One-time transform: fold scales into the q weights, fuse Q|K|V / Q|K, drop dead params."""
    wqkv_T = jnp.concatenate(
        [raw_params["wq_T"] * scale_T, raw_params["wk_T"], raw_params["wv_T"]], axis=1)
    wqk_S = jnp.concatenate(
        [raw_params["wq_S"] * scale_S, raw_params["wk_S"]], axis=1)
    return {
        "wqkv_T": wqkv_T.astype(compute_dtype),
        "wqk_S": wqk_S.astype(compute_dtype),
        "bias_T": raw_params["bias_T"].astype(jnp.float32),
        "bias_S": raw_params["bias_S"].astype(jnp.float32),
        "wo_T": raw_params["wo_T"].astype(compute_dtype),
        "bo_T": raw_params["bo_T"].reshape(-1, 1).astype(jnp.float32),  # lane-broadcast form
        "dkT": int(raw_params["wq_T"].shape[1]),
        "dkS": int(raw_params["wq_S"].shape[1]),
        # wv_S intentionally dropped: dead parameter for attention_type='spatial_temporal_1'.
    }


def _pick_block_b(B, per_batch_bytes, budget_bytes):
    # Divisors of B that keep the flat (bb, dim_T*T) output block layout-legal and
    # sublane-dense: bb a multiple of 8, or bb == B (block == full dim always legal).
    cands = [d for d in range(1, B + 1) if B % d == 0 and (d % 8 == 0 or d == B)]
    fit = [d for d in cands if d * per_batch_bytes <= budget_bytes] or [min(cands)]
    # Prefer a grid of >= 2 steps so both v7x TensorCores get work; otherwise take the
    # largest block (fewest grid steps) for the single-TC v5e/v6e case.
    multi = [d for d in fit if B // d >= 2]
    return max(multi) if multi else max(fit)


def spatial_temporal_attention(x_T, x_S, params, *, prediction_mode=False, block_b=None):
    """Forward pass. Returns out (B, dim_T, T); with prediction_mode also attn_S (B, N, N)."""
    B, T, dim_T = x_T.shape
    B2, N, dim_S = x_S.shape
    assert B == B2
    dkT, dkS = params["dkT"], params["dkS"]
    wqkv_T, wqk_S = params["wqkv_T"], params["wqk_S"]
    dvT = wqkv_T.shape[1] - 2 * dkT
    assert wqkv_T.shape[0] == dim_T and wqk_S.shape[0] == dim_S
    assert wqk_S.shape[1] == 2 * dkS
    # 'spatial_temporal_1' contracts attn_S (N x N) against out_T (T x dvT) over dvT:
    assert dvT == N, "attention_type='spatial_temporal_1' requires dim_value_T*heads == N"

    compute_dtype = wqkv_T.dtype
    x_T = x_T.astype(compute_dtype)
    x_S = x_S.astype(compute_dtype)
    itemsize = jnp.dtype(compute_dtype).itemsize

    # Per-batch-element VMEM footprint (double-buffered I/O + f32 intermediates),
    # with a 2x safety factor; block budget assumes the smallest physical VMEM
    # across generations (v7x: 64 MiB total).
    per_b = 2 * (
        2 * (T * dim_T + N * dim_S) * itemsize            # double-buffered inputs
        + 2 * dim_T * T * 4                               # double-buffered flat output
        + (T * (2 * dkT + dvT) + N * 2 * dkS              # fused projection results
           + 2 * T * T + 2 * N * N                        # logits + attn (T and S)
           + T * dvT + N * T + dim_T * T) * 4             # out_T0, mixed, out_perm
        + (2 * N * N * 4 if prediction_mode else 0))
    block_budget = 24 * 1024 * 1024

    if block_b is None:
        bb = _pick_block_b(B, per_b, block_budget)
    else:
        bb = block_b
        assert B % bb == 0 and (bb % 8 == 0 or bb == B), \
            "block_b must divide B and be a multiple of 8 (or equal B)"

    weight_bytes = ((wqkv_T.size + wqk_S.size + params["wo_T"].size) * itemsize
                    + (params["bias_T"].size + params["bias_S"].size
                       + params["bo_T"].size) * 4)
    vmem_limit = int(min(64 * 1024 * 1024,
                         max(32 * 1024 * 1024, 2 * weight_bytes + 2 * bb * per_b)))

    full = lambda shp: pl.BlockSpec(shp, lambda b: (0,) * len(shp))

    in_specs = [
        pl.BlockSpec((bb, T, dim_T), lambda b: (b, 0, 0)),   # x_T
        pl.BlockSpec((bb, N, dim_S), lambda b: (b, 0, 0)),   # x_S
        full(tuple(wqkv_T.shape)),                           # fused Wq|Wk|Wv  (T stream)
        full(tuple(wqk_S.shape)),                            # fused Wq|Wk     (S stream)
        full((1, dkT)),                                      # rel_content_bias_T
        full((1, dkS)),                                      # rel_content_bias_S
        full((dvT, dim_T)),                                  # to_out_T weight
        full((dim_T, 1)),                                    # to_out_T bias (column form)
    ]

    out_shapes = [jax.ShapeDtypeStruct((B, dim_T * T), jnp.float32)]   # lane-dense slab
    out_specs = [pl.BlockSpec((bb, dim_T * T), lambda b: (b, 0))]
    if prediction_mode:
        out_shapes.append(jax.ShapeDtypeStruct((B, N, N), jnp.float32))
        out_specs.append(pl.BlockSpec((bb, N, N), lambda b: (b, 0, 0)))

    # Advisory cost estimate (projections + logits + attention apply + mixing + out proj).
    flops = 2 * B * (T * dim_T * (2 * dkT + dvT) + N * dim_S * 2 * dkS
                     + T * T * dkT + N * N * dkS + T * T * dvT
                     + N * N * T + dvT * dim_T * T)
    out_elems = B * dim_T * T + (B * N * N if prediction_mode else 0)
    bytes_accessed = (itemsize * (x_T.size + x_S.size)
                      + weight_bytes * (B // bb) + 4 * out_elems)
    cost = pl.CostEstimate(flops=flops,
                           transcendentals=B * (T * T + N * N),
                           bytes_accessed=int(bytes_accessed))

    results = pl.pallas_call(
        functools.partial(_st_attn_kernel, prediction_mode, dkT, dvT, dkS),
        out_shape=tuple(out_shapes),
        grid_spec=pltpu.PrefetchScalarGridSpec(
            num_scalar_prefetch=0,
            grid=(B // bb,),
            in_specs=in_specs,
            out_specs=out_specs,
        ),
        compiler_params=pltpu.CompilerParams(
            dimension_semantics=("parallel",),
            vmem_limit_bytes=vmem_limit),
        cost_estimate=cost,
    )(x_T, x_S,
      wqkv_T, wqk_S,
      params["bias_T"], params["bias_S"],
      params["wo_T"], params["bo_T"])

    out = results[0].reshape(B, dim_T, T)     # free metadata reshape in HBM
    if prediction_mode:
        return out, results[1]
    return out


def reference_forward(x_T, x_S, raw, *, scale_T, scale_S):
    """Pure-JAX replica of the PyTorch forward (spatial_temporal_1, heads=1)."""
    q_T = (x_T @ raw["wq_T"]) * scale_T
    k_T = x_T @ raw["wk_T"]
    v_T = x_T @ raw["wv_T"]
    q_S = (x_S @ raw["wq_S"]) * scale_S
    k_S = x_S @ raw["wk_S"]
    logits_T = jnp.einsum("bid,bjd->bij", q_T + raw["bias_T"], k_T)
    logits_S = jnp.einsum("bid,bjd->bij", q_S + raw["bias_S"], k_S)
    attn_T = jax.nn.softmax(logits_T, axis=-1)
    attn_S = jax.nn.softmax(logits_S, axis=-1)
    out_T = jnp.einsum("bij,bjd->bid", attn_T, v_T)
    out_T = jnp.einsum("bij,btj->bti", attn_S, out_T)
    out_T = out_T @ raw["wo_T"] + raw["bo_T"]
    return jnp.transpose(out_T, (0, 2, 1)), attn_S


if __name__ == "__main__":
    # Small, tile-friendly shapes consistent with the module
    # (module defaults are N=10, T=199; here N=16, T=32, B=16 so the auto block pick
    #  lands on bb=8 -> grid of 2 parallel steps with fully dense (8, 512) output stores).
    B, N, T = 16, 16, 32
    dim_T, dim_S = N, T          # x_T feature = neurons; x_S feature = time window
    dkT, dvT = 8, N              # dim_value_T must equal N for 'spatial_temporal_1'
    dkS = 16
    scale_T = dkT ** (-0.5)
    scale_S = dkS ** (-0.5)

    key = jax.random.PRNGKey(0)
    ks = jax.random.split(key, 10)

    x_S = jax.random.normal(ks[0], (B, N, dim_S), jnp.float32)
    x_T = jnp.transpose(x_S, (0, 2, 1))                  # (B, T, dim_T)

    init = lambda k, shp: 0.1 * jax.random.normal(k, shp, jnp.float32)
    raw_params = {
        "wq_T": init(ks[1], (dim_T, dkT)),
        "wk_T": init(ks[2], (dim_T, dkT)),
        "wv_T": init(ks[3], (dim_T, dvT)),
        "wq_S": init(ks[4], (dim_S, dkS)),
        "wk_S": init(ks[5], (dim_S, dkS)),
        "bias_T": init(ks[6], (1, dkT)),                 # rel_content_bias_T (heads=1)
        "bias_S": init(ks[7], (1, dkS)),                 # rel_content_bias_S (heads=1)
        "wo_T": init(ks[8], (dvT, dim_T)),               # to_out_T (zero-init in ref; randomized)
        "bo_T": init(ks[9], (1, dim_T)),
    }

    ref_out, ref_attn = reference_forward(x_T, x_S, raw_params,
                                          scale_T=scale_T, scale_S=scale_S)

    # --- f32 path (tight tolerance; only the approx-reciprocal softmax norm deviates) ---
    params_f32 = prepare_params(raw_params, scale_T=scale_T, scale_S=scale_S,
                                compute_dtype=jnp.float32)
    out = jax.block_until_ready(
        spatial_temporal_attention(x_T, x_S, params_f32, prediction_mode=False))
    assert out.shape == (B, dim_T, T)
    assert jnp.allclose(out, ref_out, atol=2e-3, rtol=2e-3), "f32 mismatch vs JAX reference"

    # --- prediction path additionally returns attn_S ---
    out_p, attn_S = spatial_temporal_attention(x_T, x_S, params_f32, prediction_mode=True)
    jax.block_until_ready(attn_S)
    assert attn_S.shape == (B, N, N)
    assert jnp.allclose(out_p, ref_out, atol=2e-3, rtol=2e-3), "prediction out mismatch"
    assert jnp.allclose(attn_S, ref_attn, atol=2e-3, rtol=2e-3), "attn_S mismatch"

    # --- bf16 MXU-operand path (native on v6e/v7x; f32 accumulation & softmax math) ---
    params_bf16 = prepare_params(raw_params, scale_T=scale_T, scale_S=scale_S,
                                 compute_dtype=jnp.bfloat16)
    out_bf16 = jax.block_until_ready(
        spatial_temporal_attention(x_T, x_S, params_bf16, prediction_mode=False))
    assert jnp.allclose(out_bf16, ref_out, atol=6e-2, rtol=6e-2), "bf16 mismatch vs reference"

    print("KERNEL_OK")
</pallas_src>

<mosaic_0001>
module attributes {stable_mosaic.version = 11 : i64} {
  func.func @_st_attn_kernel(%arg0: i32, %arg1: memref<8x32x16xf32, #tpu.memory_space<vmem>>, %arg2: memref<8x16x32xf32, #tpu.memory_space<vmem>>, %arg3: memref<16x32xf32, #tpu.memory_space<vmem>>, %arg4: memref<32x32xf32, #tpu.memory_space<vmem>>, %arg5: memref<1x8xf32, #tpu.memory_space<vmem>>, %arg6: memref<1x16xf32, #tpu.memory_space<vmem>>, %arg7: memref<16x16xf32, #tpu.memory_space<vmem>>, %arg8: memref<16x1xf32, #tpu.memory_space<vmem>>, %arg9: memref<8x512xf32, #tpu.memory_space<vmem>>) attributes {dimension_semantics = [#tpu.dimension_semantics<parallel>], iteration_bounds = array<i64: 2>, scalar_prefetch = 0 : i64, scratch_operands = 0 : i64, tpu.core_type = #tpu.core_type<tc>, window_params = [{transform_indices = @transform_0, window_bounds = array<i64: 8, 32, 16>}, {transform_indices = @transform_1, window_bounds = array<i64: 8, 16, 32>}, {pipeline_mode = #tpu.pipeline_mode<synchronous>, transform_indices = @transform_2, window_bounds = array<i64: 16, 32>}, {pipeline_mode = #tpu.pipeline_mode<synchronous>, transform_indices = @transform_3, window_bounds = array<i64: 32, 32>}, {pipeline_mode = #tpu.pipeline_mode<synchronous>, transform_indices = @transform_4, window_bounds = array<i64: 1, 8>}, {pipeline_mode = #tpu.pipeline_mode<synchronous>, transform_indices = @transform_5, window_bounds = array<i64: 1, 16>}, {pipeline_mode = #tpu.pipeline_mode<synchronous>, transform_indices = @transform_6, window_bounds = array<i64: 16, 16>}, {pipeline_mode = #tpu.pipeline_mode<synchronous>, transform_indices = @transform_7, window_bounds = array<i64: 16, 1>}, {transform_indices = @transform_8, window_bounds = array<i64: 8, 512>}]} {
    %c0 = arith.constant 0 : index
    %c0_0 = arith.constant 0 : index
    %c0_1 = arith.constant 0 : index
    %0 = vector.load %arg1[%c0, %c0_0, %c0_1] : memref<8x32x16xf32, #tpu.memory_space<vmem>>, vector<8x32x16xf32>
    %c0_2 = arith.constant 0 : index
    %c0_3 = arith.constant 0 : index
    %1 = vector.load %arg3[%c0_2, %c0_3] : memref<16x32xf32, #tpu.memory_space<vmem>>, vector<16x32xf32>
    "tpu.trace_start"() <{level = 10 : i32, message = "btd,de->bte"}> : () -> ()
    %cst = arith.constant dense<0.000000e+00> : vector<8x32x32xf32>
    %2 = tpu.matmul %0, %1, %cst {dimension_numbers = #tpu.dot_dimension_numbers<[2], [0], [0, 1], [1], [0, 0, 0, 1, 1, 1], [], []>} : vector<8x32x16xf32>, vector<16x32xf32>, vector<8x32x32xf32> -> vector<8x32x32xf32>
    "tpu.trace_stop"() : () -> ()
    %c0_4 = arith.constant 0 : index
    %c0_5 = arith.constant 0 : index
    %c0_6 = arith.constant 0 : index
    %3 = vector.load %arg2[%c0_4, %c0_5, %c0_6] : memref<8x16x32xf32, #tpu.memory_space<vmem>>, vector<8x16x32xf32>
    %c0_7 = arith.constant 0 : index
    %c0_8 = arith.constant 0 : index
    %4 = vector.load %arg4[%c0_7, %c0_8] : memref<32x32xf32, #tpu.memory_space<vmem>>, vector<32x32xf32>
    "tpu.trace_start"() <{level = 10 : i32, message = "bnd,de->bne"}> : () -> ()
    %cst_9 = arith.constant dense<0.000000e+00> : vector<8x16x32xf32>
    %5 = tpu.matmul %3, %4, %cst_9 {dimension_numbers = #tpu.dot_dimension_numbers<[2], [0], [0, 1], [1], [0, 0, 0, 1, 1, 1], [], []>} : vector<8x16x32xf32>, vector<32x32xf32>, vector<8x16x32xf32> -> vector<8x16x32xf32>
    "tpu.trace_stop"() : () -> ()
    %6 = vector.extract_strided_slice %2 {offsets = [0, 0, 0], sizes = [8, 32, 8], strides = [1, 1, 1]} : vector<8x32x32xf32> to vector<8x32x8xf32>
    %c0_10 = arith.constant 0 : index
    %c0_11 = arith.constant 0 : index
    %7 = vector.load %arg5[%c0_10, %c0_11] : memref<1x8xf32, #tpu.memory_space<vmem>>, vector<1x8xf32>
    %8 = vector.shape_cast %7 : vector<1x8xf32> to vector<1x1x8xf32>
    %9 = vector.broadcast %8 : vector<1x1x8xf32> to vector<8x32x8xf32>
    %10 = arith.addf %6, %9 : vector<8x32x8xf32>
    %11 = vector.extract_strided_slice %2 {offsets = [0, 0, 8], sizes = [8, 32, 8], strides = [1, 1, 1]} : vector<8x32x32xf32> to vector<8x32x8xf32>
    %12 = vector.extract_strided_slice %2 {offsets = [0, 0, 16], sizes = [8, 32, 16], strides = [1, 1, 1]} : vector<8x32x32xf32> to vector<8x32x16xf32>
    %13 = vector.extract_strided_slice %5 {offsets = [0, 0, 0], sizes = [8, 16, 16], strides = [1, 1, 1]} : vector<8x16x32xf32> to vector<8x16x16xf32>
    %c0_12 = arith.constant 0 : index
    %c0_13 = arith.constant 0 : index
    %14 = vector.load %arg6[%c0_12, %c0_13] : memref<1x16xf32, #tpu.memory_space<vmem>>, vector<1x16xf32>
    %15 = vector.shape_cast %14 : vector<1x16xf32> to vector<1x1x16xf32>
    %16 = vector.broadcast %15 : vector<1x1x16xf32> to vector<8x16x16xf32>
    %17 = arith.addf %13, %16 : vector<8x16x16xf32>
    %18 = vector.extract_strided_slice %5 {offsets = [0, 0, 16], sizes = [8, 16, 16], strides = [1, 1, 1]} : vector<8x16x32xf32> to vector<8x16x16xf32>
    "tpu.trace_start"() <{level = 10 : i32, message = "bid,bjd->bij"}> : () -> ()
    %cst_14 = arith.constant dense<0.000000e+00> : vector<8x32x32xf32>
    %19 = tpu.matmul %10, %11, %cst_14 {dimension_numbers = #tpu.dot_dimension_numbers<[2], [2], [1], [1], [0, 0, 0, 1, 1, 1], [0], [0]>} : vector<8x32x8xf32>, vector<8x32x8xf32>, vector<8x32x32xf32> -> vector<8x32x32xf32>
    %cst_15 = arith.constant dense<0.000000e+00> : vector<8x16x16xf32>
    %20 = tpu.matmul %17, %18, %cst_15 {dimension_numbers = #tpu.dot_dimension_numbers<[2], [2], [1], [1], [0, 0, 0, 1, 1, 1], [0], [0]>} : vector<8x16x16xf32>, vector<8x16x16xf32>, vector<8x16x16xf32> -> vector<8x16x16xf32>
    "tpu.trace_stop"() : () -> ()
    %cst_16 = arith.constant dense<0xFF800000> : vector<8x32xf32>
    %21 = vector.multi_reduction <maximumf>, %19, %cst_16 [2] : vector<8x32x32xf32> to vector<8x32xf32>
    %22 = vector.shape_cast %21 : vector<8x32xf32> to vector<8x32x1xf32>
    %23 = vector.broadcast %22 : vector<8x32x1xf32> to vector<8x32x32xf32>
    %24 = arith.subf %19, %23 : vector<8x32x32xf32>
    %25 = math.exp %24 : vector<8x32x32xf32>
    %cst_17 = arith.constant dense<0.000000e+00> : vector<8x32xf32>
    %26 = vector.multi_reduction <add>, %25, %cst_17 [2] : vector<8x32x32xf32> to vector<8x32xf32>
    %27 = vector.shape_cast %26 : vector<8x32xf32> to vector<8x32x1xf32>
    %28 = tpu.reciprocal %27 {approx = true} : vector<8x32x1xf32> -> vector<8x32x1xf32>
    %29 = vector.broadcast %28 : vector<8x32x1xf32> to vector<8x32x32xf32>
    %30 = arith.mulf %25, %29 : vector<8x32x32xf32>
    %cst_18 = arith.constant dense<0xFF800000> : vector<8x16xf32>
    %31 = vector.multi_reduction <maximumf>, %20, %cst_18 [2] : vector<8x16x16xf32> to vector<8x16xf32>
    %32 = vector.shape_cast %31 : vector<8x16xf32> to vector<8x16x1xf32>
    %33 = vector.broadcast %32 : vector<8x16x1xf32> to vector<8x16x16xf32>
    %34 = arith.subf %20, %33 : vector<8x16x16xf32>
    %35 = math.exp %34 : vector<8x16x16xf32>
    %cst_19 = arith.constant dense<0.000000e+00> : vector<8x16xf32>
    %36 = vector.multi_reduction <add>, %35, %cst_19 [2] : vector<8x16x16xf32> to vector<8x16xf32>
    %37 = vector.shape_cast %36 : vector<8x16xf32> to vector<8x16x1xf32>
    %38 = tpu.reciprocal %37 {approx = true} : vector<8x16x1xf32> -> vector<8x16x1xf32>
    %39 = vector.broadcast %38 : vector<8x16x1xf32> to vector<8x16x16xf32>
    %40 = arith.mulf %35, %39 : vector<8x16x16xf32>
    "tpu.trace_start"() <{level = 10 : i32, message = "bij,bjd->bid"}> : () -> ()
    %cst_20 = arith.constant dense<0.000000e+00> : vector<8x32x16xf32>
    %41 = tpu.matmul %30, %12, %cst_20 {dimension_numbers = #tpu.dot_dimension_numbers<[2], [1], [1], [2], [0, 0, 0, 1, 1, 2], [0], [0]>} : vector<8x32x32xf32>, vector<8x32x16xf32>, vector<8x32x16xf32> -> vector<8x32x16xf32>
    "tpu.trace_stop"() : () -> ()
    "tpu.trace_start"() <{level = 10 : i32, message = "bij,btj->bit"}> : () -> ()
    %cst_21 = arith.constant dense<0.000000e+00> : vector<8x16x32xf32>
    %42 = tpu.matmul %40, %41, %cst_21 {dimension_numbers = #tpu.dot_dimension_numbers<[2], [2], [1], [1], [0, 0, 0, 1, 1, 1], [0], [0]>} : vector<8x16x16xf32>, vector<8x32x16xf32>, vector<8x16x32xf32> -> vector<8x16x32xf32>
    "tpu.trace_stop"() : () -> ()
    %c0_22 = arith.constant 0 : index
    %c0_23 = arith.constant 0 : index
    %43 = vector.load %arg7[%c0_22, %c0_23] : memref<16x16xf32, #tpu.memory_space<vmem>>, vector<16x16xf32>
    "tpu.trace_start"() <{level = 10 : i32, message = "id,bit->bdt"}> : () -> ()
    %cst_24 = arith.constant dense<0.000000e+00> : vector<8x32x16xf32>
    %44 = tpu.matmul %42, %43, %cst_24 {dimension_numbers = #tpu.dot_dimension_numbers<[1], [0], [0, 2], [1], [0, 0, 0, 2, 1, 1], [], []>} : vector<8x16x32xf32>, vector<16x16xf32>, vector<8x32x16xf32> -> vector<8x32x16xf32>
    %45 = tpu.transpose %44, [0, 2, 1] : vector<8x32x16xf32> -> vector<8x16x32xf32>
    "tpu.trace_stop"() : () -> ()
    %c0_25 = arith.constant 0 : index
    %c0_26 = arith.constant 0 : index
    %46 = vector.load %arg8[%c0_25, %c0_26] : memref<16x1xf32, #tpu.memory_space<vmem>>, vector<16x1xf32>
    %47 = vector.shape_cast %46 : vector<16x1xf32> to vector<1x16x1xf32>
    %48 = vector.broadcast %47 : vector<1x16x1xf32> to vector<8x16x32xf32>
    %49 = arith.addf %45, %48 : vector<8x16x32xf32>
    %50 = vector.shape_cast %49 : vector<8x16x32xf32> to vector<8x512xf32>
    %c0_27 = arith.constant 0 : index
    %c0_28 = arith.constant 0 : index
    %51 = vector.load %arg9[%c0_27, %c0_28] : memref<8x512xf32, #tpu.memory_space<vmem>>, vector<8x512xf32>
    tpu.vector_store %arg9[%c0_27, %c0_28], %50 {strides = array<i32>} : memref<8x512xf32, #tpu.memory_space<vmem>>, vector<8x512xf32>,
    return
  }
  func.func @transform_0(%arg0: i32) -> (i32, i32, i32) {
    %c0_i32 = arith.constant 0 : i32
    %c0_i32_0 = arith.constant 0 : i32
    %c0_i32_1 = arith.constant 0 : i32
    return %arg0, %c0_i32, %c0_i32_0 : i32, i32, i32
  }
  func.func @transform_1(%arg0: i32) -> (i32, i32, i32) {
    %c0_i32 = arith.constant 0 : i32
    %c0_i32_0 = arith.constant 0 : i32
    %c0_i32_1 = arith.constant 0 : i32
    return %arg0, %c0_i32, %c0_i32_0 : i32, i32, i32
  }
  func.func @transform_2(%arg0: i32) -> (i32, i32) {
    %c0_i32 = arith.constant 0 : i32
    %c0_i32_0 = arith.constant 0 : i32
    %c0_i32_1 = arith.constant 0 : i32
    return %c0_i32, %c0_i32_0 : i32, i32
  }
  func.func @transform_3(%arg0: i32) -> (i32, i32) {
    %c0_i32 = arith.constant 0 : i32
    %c0_i32_0 = arith.constant 0 : i32
    %c0_i32_1 = arith.constant 0 : i32
    return %c0_i32, %c0_i32_0 : i32, i32
  }
  func.func @transform_4(%arg0: i32) -> (i32, i32) {
    %c0_i32 = arith.constant 0 : i32
    %c0_i32_0 = arith.constant 0 : i32
    %c0_i32_1 = arith.constant 0 : i32
    return %c0_i32, %c0_i32_0 : i32, i32
  }
  func.func @transform_5(%arg0: i32) -> (i32, i32) {
    %c0_i32 = arith.constant 0 : i32
    %c0_i32_0 = arith.constant 0 : i32
    %c0_i32_1 = arith.constant 0 : i32
    return %c0_i32, %c0_i32_0 : i32, i32
  }
  func.func @transform_6(%arg0: i32) -> (i32, i32) {
    %c0_i32 = arith.constant 0 : i32
    %c0_i32_0 = arith.constant 0 : i32
    %c0_i32_1 = arith.constant 0 : i32
    return %c0_i32, %c0_i32_0 : i32, i32
  }
  func.func @transform_7(%arg0: i32) -> (i32, i32) {
    %c0_i32 = arith.constant 0 : i32
    %c0_i32_0 = arith.constant 0 : i32
    %c0_i32_1 = arith.constant 0 : i32
    return %c0_i32, %c0_i32_0 : i32, i32
  }
  func.func @transform_8(%arg0: i32) -> (i32, i32) {
    %c0_i32 = arith.constant 0 : i32
    %c0_i32_0 = arith.constant 0 : i32
    return %arg0, %c0_i32 : i32, i32
  }
}

</mosaic_0001>

<bundles_post_ra>
// kernel: tpu_custom_call.1
= control target key start
LH: loop header
LB: loop body
LE: loop exit
PB: predicated region body
PF: predicated region fallthrough
CT: control target
= control target key end

     0   :  { %13 = vsyncpa [#allocation3], 0  ;;  %s9071_s0 = inlined_call_operand.vmem [shape: f32[16,32,16], index: 0, kind: input, shape index: {}]   ;;  %s9072_s1 = inlined_call_operand.vmem [shape: f32[16,16,32], index: 1, kind: input, shape index: {}]   ;;  %s9073_s2 = inlined_call_operand.vmem [shape: f32[16,32], index: 2, kind: input, shape index: {}]   ;;  %s9074_s3 = inlined_call_operand.vmem [shape: f32[32,32], index: 3, kind: input, shape index: {}]   ;;  %s9075_s4 = inlined_call_operand.vmem [shape: f32[1,8], index: 4, kind: input, shape index: {}]   ;;  %s9076_s5 = inlined_call_operand.vmem [shape: f32[1,16], index: 5, kind: input, shape index: {}]   ;;  %s9077_s6 = inlined_call_operand.vmem [shape: f32[16,16], index: 6, kind: input, shape index: {}]   ;;  %s9078_s7 = inlined_call_operand.vmem [shape: f32[16,1], index: 7, kind: input, shape index: {}]   ;;  %s9079_s8 = inlined_call_operand.hbm [shape: f32[16,512], index: 8, kind: output, shape index: {}]  }
   0x1   :  { %15 = vsyncpa [#allocation3 + $0x1], 0  ;;  %s7501_s27 = smov 0   ;;  %s7503_s28 = smov 0  }
   0x2   :  { %s7505_s29 = smov 0   ;;  %s7507_s30 = smov 0  }
   0x3 LB: > { %s7522_s9 = sadd.s32 4294967295, %s7445_s30   ;;  %s6062_s10 = sadd.s32 4294967294, %s7445_s30   ;;  %s7445_s30 = sphi %s7507_s30, %s9100_s30   ;;  %s7441_s29 = sphi %s7505_s29, %s9099_s29   ;;  %s7437_s28 = sphi %s7503_s28, %s9098_s28   ;;  %s7433_s27 = sphi %s7501_s27, %s9097_s27  }
   0x4   : > { %s7526_s11 = sadd.s32 1, %s7445_s30   ;;  %s206_s12 = sadd.s32 1, %s7441_s29 }
   0x5   : > { %s203_s13 = ssub.s32 %s7445_s30, %s7526_s11  ;;  %p216_p0 = scmp.ne.s32.totalorder %s7441_s29, %s7437_s28 }
   0x6   : > { %p204_p1 = scmp.eq.s32.totalorder %s203_s13, 0  ;;  %p217_p2 = scmp.eq.s32.totalorder %s7522_s9, 1 }
   0x7   : > { %p222_p3 = scmp.ne.s32.totalorder %s7437_s28, %s7433_s27  ;;  %p223_p4 = scmp.eq.s32.totalorder %s6062_s10, 1 }
   0x8   : > { %s7537_s14 = scalar_select %p204_p1, %s7441_s29, %s206_s12  }
   0x9   : > { %p7539_p5 = por %p217_p2, %p216_p0  ;;  %p7543_p6 = por %p223_p4, %p222_p3 }
   0xa   : > { %p6065_p7 = scmp.ge.s32.totalorder %s7445_s30, 1  ;;  %p279_p8 = scmp.lt.s32.totalorder %s7445_s30, 3 }
   0xc   : > { %p280_p9 = pnand %p6065_p7, %p279_p8 }
   0xe   : > { %283 = sbr.rel (%p280_p9) target bundleno = 2105 (0x839), region = 52 }
  0x13   : > { %v367_v0 = vld [vmem:[%s9073_s2 + $0x8] sm:$0xff]  ;;  %v366_v1 = vld [vmem:[%s9073_s2] sm:$0xff]  ;;  %s6067_s21 = sshll.u32 %s7522_s9, 3  ;;  %v709_v2 = vld [vmem:[%s9074_s3 + $0x18] sm:$0xff]  ;;  %vm368_vm0 = vcmask 130048   ;;  %vm710_vm1 = vcmask 261120  }
  0x14   : > { %6635 = vmatprep.subr.mxu0 %v367_v0  ;;  %p321_p10 = scmp.lt.s32.totalorder %s6067_s21, 15  ;;  %7139 = vmatprep.subr.mxu1 %v367_v0  ;;  %v708_v11 = vld [vmem:[%s9074_s3 + $0x10] sm:$0xff]  ;;  %v707_v16 = vld [vmem:[%s9074_s3 + $0x8] sm:$0xff]  ;;  %v706_v18 = vld [vmem:[%s9074_s3] sm:$0xff]  ;;  %vm978_vm2 = vcmask 64512   ;;  %s7448_s12 = smov 112  }
  0x15   : > { %6636 = vmatpush3.msra.mxu0 %v367_v0  ;;  %7141 = vmatpush3.msra.mxu1 %v367_v0  ;;  %v7685_v55 = vld [vmem:[%s9075_s4] ss:$0 sm:$0xff]  ;;  %s7452_s26 = smov 32   ;;  %s317_s13 = sand.u32 1, %s7437_s28   ;;  %vm5959_vm3 = vcmask 523264   ;;  %vm5961_vm4 = vcmask 785408  }
  0x16   : > { %6637 = vmatprep.subr.mxu0 %v366_v1  ;;  %s9102_s21 = smov (!%p321_p10, %s6067_s21), 15  ;;  %7140 = vmatprep.subr.mxu1 %v366_v1  ;;  %s6066_s17 = sshll.u32 %s317_s13, 5 }
  0x17   : > { %6638 = vmatpush3.msra.mxu0 %v366_v1  ;;  %7142 = vmatpush3.msra.mxu1 %v366_v1  ;;  %s6336_s24 = sshll.u32 %s9102_s21, 5  ;;  %s6337_s22 = sshll.u32 %s9102_s21, 4 }
  0x18   : > { %6687 = vmatprep.subr.mxu1 %v709_v2  ;;  %s7565_s10 = scalar_lea.vmem %s9071_s0, %s6336_s24  ;;  %s7640_s25 = scalar_lea.vmem %s9072_s1, %s6337_s22 }
  0x19   : > { %v334_v3 = vld [vmem:[%s7565_s10] sm:$0xff]  ;;  %v335_v4 = vld [vmem:[%s7565_s10 + $0x8] sm:$0xff]  ;;  %v336_v5 = vld [vmem:[%s7565_s10 + $0x10] sm:$0xff]  ;;  %s7447_s21 = smov 120   ;;  %s319_s18 = scalar_lea.vmem [#allocation2], %s6066_s17 }
  0x1a   : > { %6639 = vmatprep.mubr.msk.f32.mxu0 %vm368_vm0, %v334_v3  ;;  %v337_v6 = vld [vmem:[%s7565_s10 + $0x18] sm:$0xff]  ;;  %v338_v7 = vld [vmem:[%s7565_s10 + $0x20] sm:$0xff]  ;;  %v351_v9 = vld [vmem:[%s7565_s10 + $0x88] sm:$0xff]  ;;  %s6338_s19 = sshll.u32 %s7522_s9, 9  ;;  %s5991_s20 = sshll.u32 %s319_s18, 4  ;;  %s5992_s20 = int_to_ptr.vmem [resolvable:$true] %s5991_s20 }
  0x1b   : > { %6640 = vmatmul.mubr.msk.f32.vlgmr.msra.gmra.mxu0 %vm368_vm0, %v335_v4  ;;  %v350_v8 = vld [vmem:[%s7565_s10 + $0x80] sm:$0xff]  ;;  %v352_v10 = vld [vmem:[%s7565_s10 + $0x90] sm:$0xff]  ;;  %v339_v12 = vld [vmem:[%s7565_s10 + $0x28] sm:$0xff]  ;;  %s9033_s24 = scalar_lea.hbm %s9079_s8, %s6338_s19  ;;  %s7455_s9 = smov [#allocation2]  }
  0x1c   : > { %6642 = vmatprep.mubr.msk.f32.mxu0 %vm368_vm0, %v336_v5  ;;  %6663 = vmatprep.mubr.msk.f32.mxu1 %vm368_vm0, %v350_v8  ;;  %v340_v13 = vld [vmem:[%s7565_s10 + $0x30] sm:$0xff]  ;;  %v353_v14 = vld [vmem:[%s7565_s10 + $0x98] sm:$0xff]  ;;  %v354_v15 = vld [vmem:[%s7565_s10 + $0xa0] sm:$0xff] }
  0x1d   : > { %6664 = vmatmul.mubr.msk.f32.vlgmr.msra.gmra.mxu1 %vm368_vm0, %v351_v9  ;;  %v341_v17 = vld [vmem:[%s7565_s10 + $0x38] sm:$0xff]  ;;  %v342_v19 = vld [vmem:[%s7565_s10 + $0x40] sm:$0xff]  ;;  %v355_v20 = vld [vmem:[%s7565_s10 + $0xa8] sm:$0xff] }
  0x1e   : > { %6666 = vmatprep.mubr.msk.f32.mxu1 %vm368_vm0, %v352_v10  ;;  %6688 = vmatpush3.msra.mxu1 %v709_v2  ;;  %v356_v21 = vld [vmem:[%s7565_s10 + $0xb0] sm:$0xff]  ;;  %v343_v22 = vld [vmem:[%s7565_s10 + $0x48] sm:$0xff]  ;;  %v357_v24 = vld [vmem:[%s7565_s10 + $0xb8] sm:$0xff] }
  0x1f   : > { %6643 = vmatmul.mubr.msk.f32.gmra.mxu0 %vm368_vm0, %v337_v6  ;;  %6689 = vmatprep.subr.mxu1 %v708_v11  ;;  %v344_v23 = vld [vmem:[%s7565_s10 + $0x50] sm:$0xff]  ;;  %v358_v25 = vld [vmem:[%s7565_s10 + $0xc0] sm:$0xff]  ;;  %v345_v26 = vld [vmem:[%s7565_s10 + $0x58] sm:$0xff] }
  0x20   : > { %6645 = vmatprep.mubr.msk.f32.mxu0 %vm368_vm0, %v338_v7  ;;  %6690 = vmatpush3.msra.mxu1 %v708_v11  ;;  %v346_v27 = vld [vmem:[%s7565_s10 + $0x60] sm:$0xff]  ;;  %v359_v28 = vld [vmem:[%s7565_s10 + $0xc8] sm:$0xff]  ;;  %v360_v29 = vld [vmem:[%s7565_s10 + $0xd0] sm:$0xff] }
  0x21   : > { %6667 = vmatmul.mubr.msk.f32.gmra.mxu1 %vm368_vm0, %v353_v14  ;;  %6691 = vmatprep.subr.mxu1 %v707_v16  ;;  %v347_v30 = vld [vmem:[%s7565_s10 + $0x68] sm:$0xff]  ;;  %v348_v31 = vld [vmem:[%s7565_s10 + $0x70] sm:$0xff]  ;;  %v361_v32 = vld [vmem:[%s7565_s10 + $0xd8] sm:$0xff] }
  0x22   : > { %6669 = vmatprep.mubr.msk.f32.mxu1 %vm368_vm0, %v354_v15  ;;  %6692 = vmatpush3.msra.mxu1 %v707_v16  ;;  %v362_v33 = vld [vmem:[%s7565_s10 + $0xe0] sm:$0xff]  ;;  %v349_v34 = vld [vmem:[%s7565_s10 + $0x78] sm:$0xff]  ;;  %v363_v35 = vld [vmem:[%s7565_s10 + $0xe8] sm:$0xff] }
  0x23   : > { %6646 = vmatmul.mubr.msk.f32.gmra.mxu0 %vm368_vm0, %v339_v12  ;;  %6693 = vmatprep.subr.mxu1 %v706_v18  ;;  %v364_v36 = vld [vmem:[%s7565_s10 + $0xf0] sm:$0xff]  ;;  %v365_v37 = vld [vmem:[%s7565_s10 + $0xf8] sm:$0xff]  ;;  %v690_v38 = vld [vmem:[%s7640_s25] sm:$0xff]  ;;  %s7453_s10 = smov 64  }
  0x24   : > { %6648 = vmatprep.mubr.msk.f32.mxu0 %vm368_vm0, %v340_v13  ;;  %6694 = vmatpush3.msra.mxu1 %v706_v18  ;;  %v691_v39 = vld [vmem:[%s7640_s25 + $0x8] sm:$0xff]  ;;  %v692_v40 = vld [vmem:[%s7640_s25 + $0x10] sm:$0xff]  ;;  %v693_v41 = vld [vmem:[%s7640_s25 + $0x18] sm:$0xff] }
  0x25   : > { %6670 = vmatmul.mubr.msk.f32.gmra.mxu1 %vm368_vm0, %v355_v20  ;;  %v694_v42 = vld [vmem:[%s7640_s25 + $0x20] sm:$0xff]  ;;  %v695_v43 = vld [vmem:[%s7640_s25 + $0x28] sm:$0xff]  ;;  %v696_v44 = vld [vmem:[%s7640_s25 + $0x30] sm:$0xff] }
  0x26   : > { %6672 = vmatprep.mubr.msk.f32.mxu1 %vm368_vm0, %v356_v21  ;;  %v697_v45 = vld [vmem:[%s7640_s25 + $0x38] sm:$0xff]  ;;  %v698_v46 = vld [vmem:[%s7640_s25 + $0x40] sm:$0xff]  ;;  %v699_v47 = vld [vmem:[%s7640_s25 + $0x48] sm:$0xff] }
  0x27   : > { %6649 = vmatmul.mubr.msk.f32.gmra.mxu0 %vm368_vm0, %v341_v17  ;;  %v700_v48 = vld [vmem:[%s7640_s25 + $0x50] sm:$0xff]  ;;  %v701_v49 = vld [vmem:[%s7640_s25 + $0x58] sm:$0xff]  ;;  %v702_v50 = vld [vmem:[%s7640_s25 + $0x60] sm:$0xff] }
  0x28   : > { %6651 = vmatprep.mubr.msk.f32.mxu0 %vm368_vm0, %v342_v19  ;;  %v703_v51 = vld [vmem:[%s7640_s25 + $0x68] sm:$0xff]  ;;  %v704_v52 = vld [vmem:[%s7640_s25 + $0x70] sm:$0xff]  ;;  %v705_v53 = vld [vmem:[%s7640_s25 + $0x78] sm:$0xff]  ;;  %s5977_s25 = scalar_lea.sflag [#allocation3], %s317_s13 }
  0x29   : > { %6673 = vmatmul.mubr.msk.f32.gmra.mxu1 %vm368_vm0, %v357_v24 }
  0x2a   : > { %6675 = vmatprep.mubr.msk.f32.mxu1 %vm368_vm0, %v358_v25 }
  0x2b   : > { %6652 = vmatmul.mubr.msk.f32.gmra.mxu0 %vm368_vm0, %v343_v22 }
  0x2c   : > { %6654 = vmatprep.mubr.msk.f32.mxu0 %vm368_vm0, %v344_v23 }
  0x2d   : > { %6676 = vmatmul.mubr.msk.f32.gmra.mxu1 %vm368_vm0, %v359_v28 }
  0x2e   : > { %6678 = vmatprep.mubr.msk.f32.mxu1 %vm368_vm0, %v360_v29 }
  0x2f   : > { %6655 = vmatmul.mubr.msk.f32.gmra.mxu0 %vm368_vm0, %v345_v26 }
  0x30   : > { %6657 = vmatprep.mubr.msk.f32.mxu0 %vm368_vm0, %v346_v27 }
  0x31   : > { %6679 = vmatmul.mubr.msk.f32.gmra.mxu1 %vm368_vm0, %v361_v32 }
  0x32   : > { %6681 = vmatprep.mubr.msk.f32.mxu1 %vm368_vm0, %v362_v33 }
  0x33   : > { %6658 = vmatmul.mubr.msk.f32.gmra.mxu0 %vm368_vm0, %v347_v30 }
  0x34   : > { %6660 = vmatprep.mubr.msk.f32.mxu0 %vm368_vm0, %v348_v31 }
  0x35   : > { %6682 = vmatmul.mubr.msk.f32.gmra.mxu1 %vm368_vm0, %v363_v35 }
  0x36   : > { %6684 = vmatprep.mubr.msk.f32.mxu1 %vm368_vm0, %v364_v36 }
  0x37   : > { %6661 = vmatmul.mubr.msk.f32.gmra.mxu0 %vm368_vm0, %v349_v34 }
  0x39   : > { %6685 = vmatmul.mubr.msk.f32.gmra.mxu1 %vm368_vm0, %v365_v37 }
  0x3a   : > { %6695 = vmatprep.mubr.msk.f32.mxu1 %vm710_vm1, %v690_v38 }
  0x3d   : > { %6696 = vmatmul.mubr.msk.f32.vlgmr.msra.gmra.mxu1 %vm710_vm1, %v691_v39 }
  0x3e   : > { %6698 = vmatprep.mubr.msk.f32.mxu1 %vm710_vm1, %v692_v40 }
  0x41   : > { %6699 = vmatmul.mubr.msk.f32.gmra.mxu1 %vm710_vm1, %v693_v41 }
  0x42   : > { %6701 = vmatprep.mubr.msk.f32.mxu1 %vm710_vm1, %v694_v42 }
  0x45   : > { %6702 = vmatmul.mubr.msk.f32.gmra.mxu1 %vm710_vm1, %v695_v43 }
  0x46   : > { %6704 = vmatprep.mubr.msk.f32.mxu1 %vm710_vm1, %v696_v44 }
  0x49   : > { %6705 = vmatmul.mubr.msk.f32.gmra.mxu1 %vm710_vm1, %v697_v45 }
  0x4a   : > { %6707 = vmatprep.mubr.msk.f32.mxu1 %vm710_vm1, %v698_v46 }
  0x4d   : > { %6708 = vmatmul.mubr.msk.f32.gmra.mxu1 %vm710_vm1, %v699_v47 }
  0x4e   : > { %6710 = vmatprep.mubr.msk.f32.mxu1 %vm710_vm1, %v700_v48 }
  0x51   : > { %6711 = vmatmul.mubr.msk.f32.gmra.mxu1 %vm710_vm1, %v701_v49 }
  0x52   : > { %6713 = vmatprep.mubr.msk.f32.mxu1 %vm710_vm1, %v702_v50 }
  0x55   : > { %6714 = vmatmul.mubr.msk.f32.gmra.mxu1 %vm710_vm1, %v703_v51 }
  0x56   : > { %6716 = vmatprep.mubr.msk.f32.mxu1 %vm710_vm1, %v704_v52 }
  0x59   : > { %6717 = vmatmul.mubr.msk.f32.gmra.mxu1 %vm710_vm1, %v705_v53 }
  0xdb   : > { %v7678_v54 = vpop.f32.mrf.mxu0 }
  0xdc   : > { %972 = vrot.lane.b32.xlu1 %v7678_v54, %s7447_s21  ;;  %v912_v48 = vadd.f32 %v7678_v54, %v7685_v55 }
  0xdd   : > { %v7687_v56 = vpop.f32.mrf.mxu0  ;;  %v7696_v59 = vpop.f32.mrf.mxu1 }
  0xde   : > { %v911_v57 = vadd.f32 %v7685_v55, %v7687_v56 }
  0xdf   : > { %v7691_v58 = vpop.f32.mrf.mxu0  ;;  %v7702_v61 = vpop.f32.mrf.mxu1 }
  0xe0   : > { %970 = vrot.lane.b32.xlu1 %v7687_v56, %s7447_s21  ;;  %6727 = vmatprep.mubr.msk.f32.mxu1 %vm978_vm2, %v911_v57  ;;  %v914_v52 = vadd.f32 %v7691_v58, %v7685_v55 }
  0xe1   : > { %976 = vrot.lane.b32.xlu0 %v7691_v58, %s7447_s21  ;;  %v7700_v60 = vpop.f32.mrf.mxu0  ;;  %v7710_v0 = vpop.f32.mrf.mxu1 }
  0xe2   : > { %v913_v50 = vadd.f32 %v7685_v55, %v7700_v60 }
  0xe3   : > { %v7704_v62 = vpop.f32.mrf.mxu0  ;;  %v7718_v3 = vpop.f32.mrf.mxu1 }
  0xe5   : > { %974 = vrot.lane.b32.xlu0 %v7700_v60, %s7447_s21  ;;  %v7708_v63 = vpop.f32.mrf.mxu0  ;;  %v7728_v6 = vpop.f32.mrf.mxu1 }
  0xe7   : > { %v7712_v1 = vpop.f32.mrf.mxu0  ;;  %v7741_v10 = vpop.f32.mrf.mxu1 }
  0xe9   : > { %1094 = vrot.lane.b32.xlu0 %v7712_v1, %s7447_s21  ;;  %v7716_v2 = vpop.f32.mrf.mxu0  ;;  %v7751_v13 = vpop.f32.mrf.mxu1 }
  0xea   : > { %1092 = vrot.lane.b32.xlu1 %v7716_v2, %s7447_s21 }
  0xeb   : > { %v7722_v4 = vpop.f32.mrf.mxu0  ;;  %v7761_v16 = vpop.f32.mrf.mxu1 }
  0xed   : > { %1090 = vrot.lane.b32.xlu0 %v7704_v62, %s7447_s21  ;;  %v7726_v5 = vpop.f32.mrf.mxu0  ;;  %v7767_v17 = vpop.f32.mrf.mxu1 }
  0xee   : > { %v919_v7 = vadd.f32 %v7685_v55, %v7726_v5 }
  0xef   : > { %v7732_v8 = vpop.f32.mrf.mxu0  ;;  %v7773_v18 = vpop.f32.mrf.mxu1 }
  0xf0   : > { %1211 = vrot.lane.b32.xlu1 %v7732_v8, %s7447_s21  ;;  %6755 = vmatprep.mubr.msk.f32.mxu0 %vm978_vm2, %v919_v7  ;;  %v916_v7 = vadd.f32 %v7704_v62, %v7685_v55 }
  0xf1   : > { %1088 = vrot.lane.b32.xlu0 %v7708_v63, %s7447_s21  ;;  %v7739_v9 = vpop.f32.mrf.mxu0  ;;  %v7779_v19 = vpop.f32.mrf.mxu1 }
  0xf3   : > { %v7743_v11 = vpop.f32.mrf.mxu0  ;;  %v7785_v20 = vpop.f32.mrf.mxu1 }
  0xf4   : > { %1209 = vrot.lane.b32.xlu1 %v7739_v9, %s7447_s21 }
  0xf5   : > { %1207 = vrot.lane.b32.xlu0 %v7722_v4, %s7447_s21  ;;  %v7749_v12 = vpop.f32.mrf.mxu0  ;;  %v7791_v21 = vpop.f32.mrf.mxu1 }
  0xf7   : > { %v7753_v14 = vpop.f32.mrf.mxu0  ;;  %v7797_v22 = vpop.f32.mrf.mxu1 }
  0xf8   : > { %1328 = vrot.lane.b32.xlu1 %v7753_v14, %s7447_s21  ;;  %9087 = vst [vmem:[#allocation5_spill] sm:$0xff] %v7797_v22 }
  0xf9   : > { %1205 = vrot.lane.b32.xlu0 %v7726_v5, %s7447_s21  ;;  %v7759_v15 = vpop.f32.mrf.mxu0  ;;  %v7803_v23 = vpop.f32.mrf.mxu1 }
  0xfb   : > { %v7805_v24 = vpop.f32.mrf.mxu1 }
  0xfc   : > { %1326 = vrot.lane.b32.xlu1 %v7759_v15, %s7447_s21  ;;  %9088 = vst [vmem:[#allocation6_spill] sm:$0xff] %v7805_v24 }
  0xfd   : > { %1324 = vrot.lane.b32.xlu0 %v7743_v11, %s7447_s21  ;;  %v7811_v25 = vpop.f32.mrf.mxu1 }
  0xff   : > { %v7817_v26 = vpop.f32.mrf.mxu1 }
 0x100   : > { %1445 = vrot.lane.b32.xlu1 %v7710_v0, %s7447_s21 }
 0x101   : > { %1322 = vrot.lane.b32.xlu0 %v7749_v12, %s7447_s21  ;;  %v7823_v27 = vpop.f32.mrf.mxu1 }
 0x103   : > { %v7829_v28 = vpop.f32.mrf.mxu1 }
 0x104   : > { %1443 = vrot.lane.b32.xlu1 %v7718_v3, %s7447_s21 }
 0x105   : > { %1441 = vrot.lane.b32.xlu0 %v7696_v59, %s7447_s21  ;;  %v7835_v29 = vpop.f32.mrf.mxu1 }
 0x107   : > { %v7841_v30 = vpop.f32.mrf.mxu1 }
 0x108   : > { %1562 = vrot.lane.b32.xlu1 %v7751_v13, %s7447_s21 }
 0x109   : > { %1439 = vrot.lane.b32.xlu0 %v7702_v61, %s7447_s21  ;;  %v7847_v31 = vpop.f32.mrf.mxu1 }
 0x10b   : > { %v7853_v32 = vpop.f32.mrf.mxu1 }
 0x10c   : > { %1560 = vrot.lane.b32.xlu1 %v7761_v16, %s7447_s21 }
 0x10d   : > { %1558 = vrot.lane.b32.xlu0 %v7728_v6, %s7447_s21  ;;  %v7859_v33 = vpop.f32.mrf.mxu1 }
 0x10f   : > { %v7865_v34 = vpop.f32.mrf.mxu1 }
 0x110   : > { %1679 = vrot.lane.b32.xlu1 %v7779_v19, %s7447_s21 }
 0x111   : > { %1556 = vrot.lane.b32.xlu0 %v7741_v10, %s7447_s21  ;;  %v7871_v35 = vpop.f32.mrf.mxu1 }
 0x113   : > { %v7877_v36 = vpop.f32.mrf.mxu1 }
 0x114   : > { %1677 = vrot.lane.b32.xlu1 %v7785_v20, %s7447_s21 }
 0x115   : > { %1675 = vrot.lane.b32.xlu0 %v7767_v17, %s7447_s21  ;;  %v7883_v37 = vpop.f32.mrf.mxu1 }
 0x117   : > { %v7889_v38 = vpop.f32.mrf.mxu1 }
 0x118   : > { %1796 = vrot.lane.b32.xlu1 %v7803_v23, %s7447_s21 }
 0x119   : > { %1673 = vrot.lane.b32.xlu0 %v7773_v18, %s7447_s21  ;;  %v7895_v39 = vpop.f32.mrf.mxu1 }
 0x11b   : > { %v7903_v42 = vpop.f32.mrf.mxu1 }
 0x11c   : > { %1794 = vrot.lane.b32.xlu1 %v7805_v24, %s7447_s21 }
 0x11d   : > { %1792 = vrot.lane.b32.xlu0 %v7791_v21, %s7447_s21 }
 0x120   : > { %1790 = vrot.lane.b32.xlu1 %v7797_v22, %s7447_s21  ;;  %s7385_s21 = scalar_lea.vmem %s5992_s20, 512 }
 0x121   : > { %3165 = vrot.lane.b32.xlu0 %v7691_v58, %s7448_s12  ;;  %p7386_p11 = scmp.ne.s32.totalorder %s5992_s20, %s7385_s21 }
 0x123   : > { %p7387_p12 = pnand %p7386_p11, %p7539_p5 }
 0x124   : > { %3163 = vrot.lane.b32.xlu1 %v7700_v60, %s7448_s12 }
 0x125   : > { %3161 = vrot.lane.b32.xlu0 %v7678_v54, %s7448_s12  ;;  %v915_v54 = vadd.f32 %v7685_v55, %v7708_v63  ;;  %p7388_p13 = pneg %p7387_p12 }
 0x128   : > { %3159 = vrot.lane.b32.xlu1 %v7687_v56, %s7448_s12 }
 0x129   : > { %3274 = vrot.lane.b32.xlu0 %v7712_v1, %s7448_s12 }
 0x12c   : > { %3272 = vrot.lane.b32.xlu1 %v7716_v2, %s7448_s12 }
 0x12d   : > { %3270 = vrot.lane.b32.xlu0 %v7704_v62, %s7448_s12  ;;  %v922_v62 = vadd.f32 %v7732_v8, %v7685_v55 }
 0x130   : > { %3268 = vrot.lane.b32.xlu1 %v7708_v63, %s7448_s12 }
 0x131   : > { %3383 = vrot.lane.b32.xlu0 %v7732_v8, %s7448_s12 }
 0x134   : > { %3381 = vrot.lane.b32.xlu1 %v7739_v9, %s7448_s12 }
 0x135   : > { %3379 = vrot.lane.b32.xlu0 %v7722_v4, %s7448_s12 }
 0x138   : > { %3377 = vrot.lane.b32.xlu1 %v7726_v5, %s7448_s12  ;;  %v920_v5 = vadd.f32 %v7722_v4, %v7685_v55  ;;  %v918_v4 = vadd.f32 %v7712_v1, %v7685_v55 }
 0x139   : > { %1907 = vrot.lane.b32.xlu0 %v7811_v25, %s7448_s12 }
 0x13c   : > { %1905 = vrot.lane.b32.xlu1 %v7817_v26, %s7448_s12 }
 0x13d   : > { %1998 = vrot.lane.b32.xlu0 %v7823_v27, %s7448_s12 }
 0x140   : > { %1996 = vrot.lane.b32.xlu1 %v7829_v28, %s7448_s12 }
 0x141   : > { %2089 = vrot.lane.b32.xlu0 %v7835_v29, %s7448_s12 }
 0x144   : > { %2087 = vrot.lane.b32.xlu1 %v7841_v30, %s7448_s12 }
 0x145   : > { %2180 = vrot.lane.b32.xlu0 %v7847_v31, %s7448_s12 }
 0x148   : > { %2178 = vrot.lane.b32.xlu1 %v7853_v32, %s7448_s12 }
 0x149   : > { %2271 = vrot.lane.b32.xlu0 %v7859_v33, %s7448_s12 }
 0x14c   : > { %2269 = vrot.lane.b32.xlu1 %v7865_v34, %s7448_s12 }
 0x14d   : > { %2362 = vrot.lane.b32.xlu0 %v7871_v35, %s7448_s12 }
 0x14e   : > { %v973_v40 = vpop.permute.xlu1 %972 }
 0x150   : > { %2360 = vrot.lane.b32.xlu1 %v7877_v36, %s7448_s12 }
 0x151   : > { %2453 = vrot.lane.b32.xlu0 %v7883_v37, %s7448_s12 }
 0x152   : > { %v971_v44 = vpop.permute.xlu1 %970 }
 0x153   : > { %v977_v41 = vpop.permute.xlu0 %976 }
 0x154   : > { %6719 = vmatprep.subr.msk.mxu1 %vm978_vm2, %v977_v41  ;;  %2544 = vrot.lane.b32.xlu1 %v7895_v39, %s7448_s12 }
 0x155   : > { %6720 = vmatpush3.xpose.msk.msra.mxu1 %vm978_vm2, %v977_v41  ;;  %2451 = vrot.lane.b32.xlu0 %v7889_v38, %s7448_s12 }
 0x157   : > { %v975_v43 = vpop.permute.xlu0 %974 }
 0x158   : > { %6721 = vmatprep.subr.msk.mxu1 %vm978_vm2, %v975_v43  ;;  %3490 = vrot.lane.b32.xlu1 %v7759_v15, %s7448_s12 }
 0x159   : > { %6722 = vmatpush3.xpose.msk.msra.mxu1 %vm978_vm2, %v975_v43  ;;  %2542 = vrot.lane.b32.xlu0 %v7903_v42, %s7448_s12  ;;  %v917_v43 = vadd.f32 %v7685_v55, %v7716_v2  ;;  %v927_v2 = vadd.f32 %v7685_v55, %v7702_v61 }
 0x15a   : > { %6723 = vmatprep.subr.msk.mxu1 %vm978_vm2, %v973_v40 }
 0x15b   : > { %v1095_v45 = vpop.permute.xlu0 %1094 }
 0x15c   : > { %3486 = vrot.lane.b32.xlu1 %v7749_v12, %s7448_s12  ;;  %v1093_v46 = vpop.permute.xlu1 %1092 }
 0x15d   : > { %6724 = vmatpush3.xpose.msk.msra.mxu1 %vm978_vm2, %v973_v40  ;;  %3492 = vrot.lane.b32.xlu0 %v7753_v14, %s7448_s12  ;;  %v921_v40 = vadd.f32 %v7685_v55, %v7739_v9 }
 0x15e   : > { %6725 = vmatprep.subr.msk.mxu1 %vm978_vm2, %v971_v44 }
 0x15f   : > { %v1091_v47 = vpop.permute.xlu0 %1090 }
 0x160   : > { %3599 = vrot.lane.b32.xlu1 %v7718_v3, %s7448_s12 }
 0x161   : > { %6726 = vmatpush3.xpose.msk.msra.mxu1 %vm978_vm2, %v971_v44  ;;  %3488 = vrot.lane.b32.xlu0 %v7743_v11, %s7448_s12 }
 0x162   : > { %6733 = vmatprep.subr.msk.mxu1 %vm978_vm2, %v1095_v45  ;;  %v1212_v49 = vpop.permute.xlu1 %1211 }
 0x163   : > { %v1089_v51 = vpop.permute.xlu0 %1088  ;;  %6747 = vmatprep.subr.msk.mxu0 %vm978_vm2, %v1212_v49 }
 0x164   : > { %6728 = vmatmul.mubr.msk.f32.vlgmr.msra.gmra.mxu1 %vm978_vm2, %v912_v48  ;;  %6748 = vmatpush3.xpose.msk.msra.mxu0 %vm978_vm2, %v1212_v49  ;;  %v924_v48 = vadd.f32 %v7743_v11, %v7685_v55  ;;  %v926_v11 = vadd.f32 %v7753_v14, %v7685_v55 }
 0x165   : > { %6730 = vmatprep.mubr.msk.f32.mxu1 %vm978_vm2, %v913_v50  ;;  %6734 = vmatpush3.xpose.msk.msra.mxu1 %vm978_vm2, %v1095_v45  ;;  %v923_v45 = vadd.f32 %v7685_v55, %v7749_v12  ;;  %v925_v50 = vadd.f32 %v7685_v55, %v7759_v15 }
 0x166   : > { %3601 = vrot.lane.b32.xlu0 %v7710_v0, %s7448_s12  ;;  %6735 = vmatprep.subr.msk.mxu1 %vm978_vm2, %v1093_v46  ;;  %v1210_v53 = vpop.permute.xlu1 %1209 }
 0x167   : > { %v1208_v56 = vpop.permute.xlu0 %1207  ;;  %6749 = vmatprep.subr.msk.mxu0 %vm978_vm2, %v1210_v53 }
 0x168   : > { %6731 = vmatmul.mubr.msk.f32.gmra.mxu1 %vm978_vm2, %v914_v52  ;;  %6750 = vmatpush3.xpose.msk.msra.mxu0 %vm978_vm2, %v1210_v53  ;;  %v929_v53 = vadd.f32 %v7685_v55, %v7718_v3  ;;  %v931_v3 = vadd.f32 %v7685_v55, %v7741_v10 }
 0x169   : > { %6736 = vmatpush3.xpose.msk.msra.mxu1 %vm978_vm2, %v1093_v46  ;;  %6741 = vmatprep.mubr.msk.f32.mxu1 %vm978_vm2, %v915_v54  ;;  %v930_v54 = vadd.f32 %v7710_v0, %v7685_v55 }
 0x16a   : > { %6737 = vmatprep.subr.msk.mxu1 %vm978_vm2, %v1091_v47  ;;  %6751 = vmatprep.subr.msk.mxu0 %vm978_vm2, %v1208_v56  ;;  %v1329_v57 = vpop.permute.xlu1 %1328 }
 0x16b   : > { %v1206_v58 = vpop.permute.xlu0 %1205 }
 0x16c   : > { %6752 = vmatpush3.xpose.msk.msra.mxu0 %vm978_vm2, %v1208_v56 }
 0x16d   : > { %6738 = vmatpush3.xpose.msk.msra.mxu1 %vm978_vm2, %v1091_v47  ;;  %6753 = vmatprep.subr.msk.mxu0 %vm978_vm2, %v1206_v58 }
 0x16e   : > { %6739 = vmatprep.subr.msk.mxu1 %vm978_vm2, %v1089_v51  ;;  %v1327_v60 = vpop.permute.xlu1 %1326 }
 0x16f   : > { %v1325_v63 = vpop.permute.xlu0 %1324 }
 0x170   : > { %6754 = vmatpush3.xpose.msk.msra.mxu0 %vm978_vm2, %v1206_v58 }
 0x171   : > { %6740 = vmatpush3.xpose.msk.msra.mxu1 %vm978_vm2, %v1089_v51  ;;  %v928_v51 = vadd.f32 %v7696_v59, %v7685_v55 }
 0x172   : > { %v1446_v41 = vpop.permute.xlu1 %1445  ;;  %6761 = vmatprep.subr.msk.mxu1 %vm978_vm2, %v1329_v57 }
 0x173   : > { %v1323_v44 = vpop.permute.xlu0 %1322  ;;  %6756 = vmatmul.mubr.msk.f32.vlgmr.msra.gmra.mxu0 %vm978_vm2, %v920_v5  ;;  %6775 = vmatprep.subr.msk.mxu0 %vm978_vm2, %v1446_v41  ;;  %v932_v5 = vadd.f32 %v7728_v6, %v7685_v55 }
 0x174   : > { %6742 = vmatmul.mubr.msk.f32.vlgmr.msra.gmra.mxu1 %vm978_vm2, %v916_v7  ;;  %6758 = vmatprep.mubr.msk.f32.mxu0 %vm978_vm2, %v921_v40  ;;  %v933_v40 = vadd.f32 %v7685_v55, %v7761_v16 }
 0x175   : > { %6744 = vmatprep.mubr.msk.f32.mxu1 %vm978_vm2, %v917_v43  ;;  %6762 = vmatpush3.xpose.msk.msra.mxu1 %vm978_vm2, %v1329_v57  ;;  %v935_v57 = vadd.f32 %v7685_v55, %v7773_v18  ;;  %v8045_v43 = vld [vmem:[%s9076_s5] ss:$0 sm:$0xff] }
 0x176   : > { %6776 = vmatpush3.xpose.msk.msra.mxu0 %vm978_vm2, %v1446_v41  ;;  %v1444_v9 = vpop.permute.xlu1 %1443  ;;  %6763 = vmatprep.subr.msk.mxu1 %vm978_vm2, %v1327_v60  ;;  %v936_v41 = vadd.f32 %v7767_v17, %v7685_v55 }
 0x177   : > { %v1442_v46 = vpop.permute.xlu0 %1441  ;;  %6759 = vmatmul.mubr.msk.f32.gmra.mxu0 %vm978_vm2, %v922_v62  ;;  %6777 = vmatprep.subr.msk.mxu0 %vm978_vm2, %v1444_v9 }
 0x178   : > { %6745 = vmatmul.mubr.msk.f32.gmra.mxu1 %vm978_vm2, %v918_v4  ;;  %6783 = vmatprep.mubr.msk.f32.mxu0 %vm978_vm2, %v927_v2  ;;  %v934_v4 = vadd.f32 %v7751_v13, %v7685_v55  ;;  %v950_v2 = vadd.f32 %v8045_v43, %v7817_v26 }
 0x179   : > { %6764 = vmatpush3.xpose.msk.msra.mxu1 %vm978_vm2, %v1327_v60  ;;  %6769 = vmatprep.mubr.msk.f32.mxu1 %vm978_vm2, %v923_v45  ;;  %v938_v45 = vadd.f32 %v7779_v19, %v7685_v55 }
 0x17a   : > { %6778 = vmatpush3.xpose.msk.msra.mxu0 %vm978_vm2, %v1444_v9  ;;  %v1563_v1 = vpop.permute.xlu1 %1562  ;;  %6765 = vmatprep.subr.msk.mxu1 %vm978_vm2, %v1325_v63 }
 0x17b   : > { %v1440_v8 = vpop.permute.xlu0 %1439  ;;  %6779 = vmatprep.subr.msk.mxu0 %vm978_vm2, %v1442_v46 }
 0x17d   : > { %6766 = vmatpush3.xpose.msk.msra.mxu1 %vm978_vm2, %v1325_v63 }
 0x17e   : > { %6780 = vmatpush3.xpose.msk.msra.mxu0 %vm978_vm2, %v1442_v46  ;;  %v1561_v12 = vpop.permute.xlu1 %1560  ;;  %6767 = vmatprep.subr.msk.mxu1 %vm978_vm2, %v1323_v44  ;;  %v939_v46 = vadd.f32 %v7685_v55, %v7797_v22 }
 0x17f   : > { %v1559_v47 = vpop.permute.xlu0 %1558  ;;  %6781 = vmatprep.subr.msk.mxu0 %vm978_vm2, %v1440_v8 }
 0x181   : > { %6768 = vmatpush3.xpose.msk.msra.mxu1 %vm978_vm2, %v1323_v44  ;;  %v937_v44 = vadd.f32 %v7685_v55, %v7785_v20 }
 0x182   : > { %6782 = vmatpush3.xpose.msk.msra.mxu0 %vm978_vm2, %v1440_v8  ;;  %v1680_v49 = vpop.permute.xlu1 %1679  ;;  %6789 = vmatprep.subr.msk.mxu1 %vm978_vm2, %v1563_v1 }
 0x183   : > { %v1557_v52 = vpop.permute.xlu0 %1556  ;;  %6803 = vmatprep.subr.msk.mxu0 %vm978_vm2, %v1680_v49 }
 0x184   : > { %6770 = vmatmul.mubr.msk.f32.vlgmr.msra.gmra.mxu1 %vm978_vm2, %v924_v48 }
 0x185   : > { %6784 = vmatmul.mubr.msk.f32.vlgmr.msra.gmra.mxu0 %vm978_vm2, %v928_v51  ;;  %6772 = vmatprep.mubr.msk.f32.mxu1 %vm978_vm2, %v925_v50  ;;  %v941_v50 = vadd.f32 %v7685_v55, %v7805_v24 }
 0x186   : > { %6786 = vmatprep.mubr.msk.f32.mxu0 %vm978_vm2, %v929_v53  ;;  %6790 = vmatpush3.xpose.msk.msra.mxu1 %vm978_vm2, %v1563_v1  ;;  %v1678_v15 = vpop.permute.xlu1 %1677 }
 0x187   : > { %6804 = vmatpush3.xpose.msk.msra.mxu0 %vm978_vm2, %v1680_v49  ;;  %v1676_v56 = vpop.permute.xlu0 %1675  ;;  %6791 = vmatprep.subr.msk.mxu1 %vm978_vm2, %v1561_v12  ;;  %v940_v49 = vadd.f32 %v7791_v21, %v7685_v55 }
 0x188   : > { %6773 = vmatmul.mubr.msk.f32.gmra.mxu1 %vm978_vm2, %v926_v11  ;;  %6805 = vmatprep.subr.msk.mxu0 %vm978_vm2, %v1678_v15  ;;  %v942_v11 = vadd.f32 %v7803_v23, %v7685_v55  ;;  %v954_v55 = vadd.f32 %v8045_v43, %v7841_v30 }
 0x189   : > { %6787 = vmatmul.mubr.msk.f32.gmra.mxu0 %vm978_vm2, %v930_v54  ;;  %6797 = vmatprep.mubr.msk.f32.mxu1 %vm978_vm2, %v931_v3 }
 0x18a   : > { %6792 = vmatpush3.xpose.msk.msra.mxu1 %vm978_vm2, %v1561_v12  ;;  %6811 = vmatprep.mubr.msk.f32.mxu0 %vm978_vm2, %v935_v57  ;;  %v1797_v0 = vpop.permute.xlu1 %1796 }
 0x18b   : > { %6806 = vmatpush3.xpose.msk.msra.mxu0 %vm978_vm2, %v1678_v15  ;;  %v1674_v14 = vpop.permute.xlu0 %1673  ;;  %6793 = vmatprep.subr.msk.mxu1 %vm978_vm2, %v1559_v47 }
 0x18c   : > { %6807 = vmatprep.subr.msk.mxu0 %vm978_vm2, %v1676_v56 }
 0x18e   : > { %6794 = vmatpush3.xpose.msk.msra.mxu1 %vm978_vm2, %v1559_v47  ;;  %v1795_v58 = vpop.permute.xlu1 %1794 }
 0x18f   : > { %6808 = vmatpush3.xpose.msk.msra.mxu0 %vm978_vm2, %v1676_v56  ;;  %v1793_v60 = vpop.permute.xlu0 %1792  ;;  %6795 = vmatprep.subr.msk.mxu1 %vm978_vm2, %v1557_v52  ;;  %v951_v56 = vadd.f32 %v7811_v25, %v8045_v43  ;;  %v956_v25 = vadd.f32 %v8045_v43, %v7853_v32  ;;  %v958_v32 = vadd.f32 %v8045_v43, %v7865_v34 }
 0x190   : > { %6809 = vmatprep.subr.msk.mxu0 %vm978_vm2, %v1674_v14  ;;  %v960_v34 = vadd.f32 %v8045_v43, %v7877_v36  ;;  %v962_v36 = vadd.f32 %v8045_v43, %v7889_v38  ;;  %v964_v38 = vadd.f32 %v8045_v43, %v7903_v42 }
 0x192   : > { %6796 = vmatpush3.xpose.msk.msra.mxu1 %vm978_vm2, %v1557_v52  ;;  %v1791_v63 = vpop.permute.xlu1 %1790  ;;  %v952_v52 = vadd.f32 %v8045_v43, %v7829_v28 }
 0x193   : > { %6810 = vmatpush3.xpose.msk.msra.mxu0 %vm978_vm2, %v1674_v14  ;;  %v8035_v7 = vpop.permute.xlu0 %3165  ;;  %6817 = vmatprep.subr.msk.mxu1 %vm978_vm2, %v1797_v0  ;;  %v953_v14 = vadd.f32 %v7823_v27, %v8045_v43  ;;  %v955_v27 = vadd.f32 %v7835_v29, %v8045_v43  ;;  %v957_v29 = vadd.f32 %v7847_v31, %v8045_v43 }
 0x194   : > { %v959_v31 = vadd.f32 %v7859_v33, %v8045_v43  ;;  %v961_v33 = vadd.f32 %v7871_v35, %v8045_v43  ;;  %v963_v35 = vadd.f32 %v7883_v37, %v8045_v43 }
 0x195   : > { %6798 = vmatmul.mubr.msk.f32.vlgmr.msra.gmra.mxu1 %vm978_vm2, %v932_v5 }
 0x196   : > { %6812 = vmatmul.mubr.msk.f32.vlgmr.msra.gmra.mxu0 %vm978_vm2, %v936_v41  ;;  %6800 = vmatprep.mubr.msk.f32.mxu1 %vm978_vm2, %v933_v40  ;;  %v8052_v62 = vpop.permute.xlu1 %3163 }
 0x197   : > { %6814 = vmatprep.mubr.msk.f32.mxu0 %vm978_vm2, %v937_v44  ;;  %6818 = vmatpush3.xpose.msk.msra.mxu1 %vm978_vm2, %v1797_v0  ;;  %v8060_v9 = vpop.permute.xlu0 %3161 }
 0x198   : > { %6819 = vmatprep.subr.msk.mxu1 %vm978_vm2, %v1795_v58 }
 0x199   : > { %6801 = vmatmul.mubr.msk.f32.gmra.mxu1 %vm978_vm2, %v934_v4 }
 0x19a   : > { %6815 = vmatmul.mubr.msk.f32.gmra.mxu0 %vm978_vm2, %v938_v45  ;;  %6825 = vmatprep.mubr.msk.f32.mxu1 %vm978_vm2, %v939_v46  ;;  %v8070_v26 = vpop.permute.xlu1 %3159  ;;  %v965_v45 = vadd.f32 %v7895_v39, %v8045_v43 }
 0x19b   : > { %6820 = vmatpush3.xpose.msk.msra.mxu1 %vm978_vm2, %v1795_v58  ;;  %v8073_v1 = vpop.permute.xlu0 %3274  ;;  %6835 = vmatprep.mubr.msk.f32.mxu0 %vm368_vm0, %v950_v2 }
 0x19c   : > { %6821 = vmatprep.subr.msk.mxu1 %vm978_vm2, %v1793_v60 }
 0x19e   : > { %v8077_v8 = vpop.permute.xlu1 %3272 }
 0x19f   : > { %6822 = vmatpush3.xpose.msk.msra.mxu1 %vm978_vm2, %v1793_v60  ;;  %v8080_v12 = vpop.permute.xlu0 %3270 }
 0x1a0   : > { %6823 = vmatprep.subr.msk.mxu1 %vm978_vm2, %v1791_v63 }
 0x1a2   : > { %v8083_v47 = vpop.permute.xlu1 %3268 }
 0x1a3   : > { %6824 = vmatpush3.xpose.msk.msra.mxu1 %vm978_vm2, %v1791_v63  ;;  %v8086_v48 = vpop.permute.xlu0 %3383 }
 0x1a6   : > { %6826 = vmatmul.mubr.msk.f32.vlgmr.msra.gmra.mxu1 %vm978_vm2, %v940_v49  ;;  %v8093_v51 = vpop.permute.xlu1 %3381 }
 0x1a7   : > { %6828 = vmatprep.mubr.msk.f32.mxu1 %vm978_vm2, %v941_v50  ;;  %v8098_v53 = vpop.permute.xlu0 %3379 }
 0x1aa   : > { %6829 = vmatmul.mubr.msk.f32.gmra.mxu1 %vm978_vm2, %v942_v11  ;;  %v8103_v15 = vpop.permute.xlu1 %3377 }
 0x1ab   : > { %v1908_v54 = vpop.permute.xlu0 %1907  ;;  %6842 = vmatprep.mubr.msk.f32.mxu1 %vm368_vm0, %v952_v52 }
 0x1ac   : > { %6831 = vmatprep.subr.msk.mxu0 %vm368_vm0, %v1908_v54 }
 0x1ad   : > { %6832 = vmatpush3.xpose.msk.msra.mxu0 %vm368_vm0, %v1908_v54 }
 0x1ae   : > { %v1906_v3 = vpop.permute.xlu1 %1905 }
 0x1af   : > { %v1999_v28 = vpop.permute.xlu0 %1998  ;;  %6833 = vmatprep.subr.msk.mxu0 %vm368_vm0, %v1906_v3 }
 0x1b0   : > { %6838 = vmatprep.subr.msk.mxu1 %vm368_vm0, %v1999_v28 }
 0x1b1   : > { %6834 = vmatpush3.xpose.msk.msra.mxu0 %vm368_vm0, %v1906_v3  ;;  %6839 = vmatpush3.xpose.msk.msra.mxu1 %vm368_vm0, %v1999_v28 }
 0x1b2   : > { %v1997_v57 = vpop.permute.xlu1 %1996 }
 0x1b3   : > { %v2090_v0 = vpop.permute.xlu0 %2089  ;;  %6840 = vmatprep.subr.msk.mxu1 %vm368_vm0, %v1997_v57 }
 0x1b4   : > { %6845 = vmatprep.subr.msk.mxu0 %vm368_vm0, %v2090_v0  ;;  %6836 = vmatmul.mubr.msk.f32.vlgmr.msra.gmra.mxu0 %vm368_vm0, %v951_v56 }
 0x1b5   : > { %6841 = vmatpush3.xpose.msk.msra.mxu1 %vm368_vm0, %v1997_v57  ;;  %6846 = vmatpush3.xpose.msk.msra.mxu0 %vm368_vm0, %v2090_v0 }
 0x1b6   : > { %v2088_v58 = vpop.permute.xlu1 %2087  ;;  %6849 = vmatprep.mubr.msk.f32.mxu0 %vm368_vm0, %v954_v55 }
 0x1b7   : > { %v2181_v30 = vpop.permute.xlu0 %2180  ;;  %6847 = vmatprep.subr.msk.mxu0 %vm368_vm0, %v2088_v58 }
 0x1b8   : > { %6852 = vmatprep.subr.msk.mxu1 %vm368_vm0, %v2181_v30  ;;  %6843 = vmatmul.mubr.msk.f32.vlgmr.msra.gmra.mxu1 %vm368_vm0, %v953_v14 }
 0x1b9   : > { %6848 = vmatpush3.xpose.msk.msra.mxu0 %vm368_vm0, %v2088_v58  ;;  %6853 = vmatpush3.xpose.msk.msra.mxu1 %vm368_vm0, %v2181_v30 }
 0x1ba   : > { %v2179_v60 = vpop.permute.xlu1 %2178  ;;  %6856 = vmatprep.mubr.msk.f32.mxu1 %vm368_vm0, %v956_v25 }
 0x1bb   : > { %v2272_v63 = vpop.permute.xlu0 %2271  ;;  %6854 = vmatprep.subr.msk.mxu1 %vm368_vm0, %v2179_v60 }
 0x1bc   : > { %6859 = vmatprep.subr.msk.mxu0 %vm368_vm0, %v2272_v63  ;;  %6850 = vmatmul.mubr.msk.f32.vlgmr.msra.gmra.mxu0 %vm368_vm0, %v955_v27 }
 0x1bd   : > { %6855 = vmatpush3.xpose.msk.msra.mxu1 %vm368_vm0, %v2179_v60  ;;  %6860 = vmatpush3.xpose.msk.msra.mxu0 %vm368_vm0, %v2272_v63 }
 0x1be   : > { %v2270_v5 = vpop.permute.xlu1 %2269  ;;  %6863 = vmatprep.mubr.msk.f32.mxu0 %vm368_vm0, %v958_v32 }
 0x1bf   : > { %v2363_v40 = vpop.permute.xlu0 %2362  ;;  %6861 = vmatprep.subr.msk.mxu0 %vm368_vm0, %v2270_v5 }
 0x1c0   : > { %6866 = vmatprep.subr.msk.mxu1 %vm368_vm0, %v2363_v40  ;;  %6857 = vmatmul.mubr.msk.f32.vlgmr.msra.gmra.mxu1 %vm368_vm0, %v957_v29 }
 0x1c1   : > { %6862 = vmatpush3.xpose.msk.msra.mxu0 %vm368_vm0, %v2270_v5  ;;  %6867 = vmatpush3.xpose.msk.msra.mxu1 %vm368_vm0, %v2363_v40 }
 0x1c2   : > { %v2361_v41 = vpop.permute.xlu1 %2360  ;;  %6870 = vmatprep.mubr.msk.f32.mxu1 %vm368_vm0, %v960_v34 }
 0x1c3   : > { %v2454_v44 = vpop.permute.xlu0 %2453  ;;  %6868 = vmatprep.subr.msk.mxu1 %vm368_vm0, %v2361_v41 }
 0x1c4   : > { %6873 = vmatprep.subr.msk.mxu0 %vm368_vm0, %v2454_v44  ;;  %6864 = vmatmul.mubr.msk.f32.vlgmr.msra.gmra.mxu0 %vm368_vm0, %v959_v31 }
 0x1c5   : > { %6869 = vmatpush3.xpose.msk.msra.mxu1 %vm368_vm0, %v2361_v41  ;;  %6874 = vmatpush3.xpose.msk.msra.mxu0 %vm368_vm0, %v2454_v44 }
 0x1c6   : > { %v2545_v4 = vpop.permute.xlu1 %2544  ;;  %6877 = vmatprep.mubr.msk.f32.mxu0 %vm368_vm0, %v962_v36 }
 0x1c7   : > { %v2452_v2 = vpop.permute.xlu0 %2451  ;;  %6880 = vmatprep.subr.msk.mxu1 %vm368_vm0, %v2545_v4 }
 0x1c8   : > { %6875 = vmatprep.subr.msk.mxu0 %vm368_vm0, %v2452_v2  ;;  %6871 = vmatmul.mubr.msk.f32.vlgmr.msra.gmra.mxu1 %vm368_vm0, %v961_v33 }
 0x1c9   : > { %6876 = vmatpush3.xpose.msk.msra.mxu0 %vm368_vm0, %v2452_v2  ;;  %6881 = vmatpush3.xpose.msk.msra.mxu1 %vm368_vm0, %v2545_v4 }
 0x1ca   : > { %6887 = vmatprep.subr.mxu0 %v8035_v7  ;;  %6884 = vmatprep.mubr.msk.f32.mxu1 %vm368_vm0, %v964_v38 }
 0x1cb   : > { %v2543_v42 = vpop.permute.xlu0 %2542 }
 0x1cc   : > { %6882 = vmatprep.subr.msk.mxu1 %vm368_vm0, %v2543_v42  ;;  %6878 = vmatmul.mubr.msk.f32.vlgmr.msra.gmra.mxu0 %vm368_vm0, %v963_v35 }
 0x1cd   : > { %6883 = vmatpush3.xpose.msk.msra.mxu1 %vm368_vm0, %v2543_v42  ;;  %6888 = vmatpush3.msra.mxu0 %v8035_v7 }
 0x1ce   : > { %6889 = vmatprep.subr.mxu0 %v8052_v62  ;;  %6901 = vmatprep.subr.mxu1 %v8073_v1 }
 0x1cf   : > { %6890 = vmatpush3.msra.mxu0 %v8052_v62  ;;  %v8196_v37 = vpop.permute.xlu0 %3492 }
 0x1d0   : > { %6891 = vmatprep.subr.mxu0 %v8060_v9  ;;  %6885 = vmatmul.mubr.msk.f32.vlgmr.msra.gmra.mxu1 %vm368_vm0, %v965_v45 }
 0x1d1   : > { %6892 = vmatpush3.msra.mxu0 %v8060_v9  ;;  %6902 = vmatpush3.msra.mxu1 %v8073_v1 }
 0x1d2   : > { %6893 = vmatprep.subr.mxu0 %v8070_v26  ;;  %6903 = vmatprep.subr.mxu1 %v8077_v8 }
 0x1d3   : > { %6894 = vmatpush3.msra.mxu0 %v8070_v26  ;;  %6904 = vmatpush3.msra.mxu1 %v8077_v8 }
 0x1d4   : > { %6905 = vmatprep.subr.mxu1 %v8080_v12  ;;  %6915 = vmatprep.subr.mxu0 %v8086_v48 }
 0x1d5   : > { %6906 = vmatpush3.msra.mxu1 %v8080_v12 }
 0x1d6   : > { %6907 = vmatprep.subr.mxu1 %v8083_v47 }
 0x1d7   : > { %6908 = vmatpush3.msra.mxu1 %v8083_v47 }
 0x1d8   : > { %6929 = vmatprep.subr.mxu1 %v8196_v37 }
 0x224   : > { %v8200_v39 = vpop.f32.mrf.mxu1 }
 0x225   : > { %v2634_v7 = vsel %vm710_vm1, %v8200_v39, -inf }
 0x226   : > { %v8204_v43 = vpop.f32.mrf.mxu1  ;;  %2635 = vmax.xlane.f32.xlu0 %v2634_v7 }
 0x227   : > { %v2631_v62 = vsel %vm710_vm1, %v8204_v43, -inf }
 0x228   : > { %v8208_v9 = vpop.f32.mrf.mxu1  ;;  %2632 = vmax.xlane.f32.xlu1 %v2631_v62 }
 0x229   : > { %v2640_v46 = vsel %vm710_vm1, %v8208_v9, -inf }
 0x22a   : > { %v8212_v26 = vpop.f32.mrf.mxu1 }
 0x22b   : > { %v2637_v1 = vsel %vm710_vm1, %v8212_v26, -inf }
 0x22c   : > { %2641 = vmax.xlane.f32.xlu1 %v2640_v46 }
 0x230   : > { %2638 = vmax.xlane.f32.xlu1 %v2637_v1 }
 0x233   : > { %v8216_v8 = vpop.f32.mrf.mxu0 }
 0x234   : > { %v8218_v12 = vpop.f32.mrf.mxu1  ;;  %v2658_v54 = vsel %vm710_vm1, %v8216_v8, -inf }
 0x235   : > { %v2646_v47 = vsel %vm710_vm1, %v8218_v12, -inf  ;;  %v8222_v49 = vpop.f32.mrf.mxu0 }
 0x236   : > { %v8224_v50 = vpop.f32.mrf.mxu1  ;;  %2647 = vmax.xlane.f32.xlu1 %v2646_v47  ;;  %v2655_v56 = vsel %vm710_vm1, %v8222_v49, -inf }
 0x237   : > { %v2643_v52 = vsel %vm710_vm1, %v8224_v50, -inf  ;;  %v8228_v11 = vpop.f32.mrf.mxu0 }
 0x238   : > { %2644 = vmax.xlane.f32.xlu0 %v2643_v52  ;;  %v8238_v55 = vpop.f32.mrf.mxu1  ;;  %v2664_v25 = vsel %vm710_vm1, %v8228_v11, -inf }
 0x239   : > { %v8232_v3 = vpop.f32.mrf.mxu0  ;;  %v2652_v57 = vsel %vm710_vm1, %v8238_v55, -inf }
 0x23a   : > { %2659 = vmax.xlane.f32.xlu1 %v2658_v54  ;;  %v2661_v28 = vsel %vm710_vm1, %v8232_v3, -inf  ;;  %v8242_v0 = vpop.f32.mrf.mxu1 }
 0x23b   : > { %v2649_v32 = vsel %vm710_vm1, %v8242_v0, -inf }
 0x23c   : > { %2662 = vmax.xlane.f32.xlu0 %v2661_v28 }
 0x23e   : > { %2656 = vmax.xlane.f32.xlu1 %v2655_v56 }
 0x242   : > { %2653 = vmax.xlane.f32.xlu1 %v2652_v57 }
 0x244   : > { %v8248_v58 = vpop.f32.mrf.mxu1 }
 0x245   : > { %v8244_v14 = vpop.f32.mrf.mxu0  ;;  %v2670_v34 = vsel %vm710_vm1, %v8248_v58, -inf }
 0x246   : > { %2665 = vmax.xlane.f32.xlu1 %v2664_v25  ;;  %v8256_v60 = vpop.f32.mrf.mxu1  ;;  %v2682_v40 = vsel %vm710_vm1, %v8244_v14, -inf }
 0x247   : > { %v8250_v30 = vpop.f32.mrf.mxu0  ;;  %v2667_v41 = vsel %vm710_vm1, %v8256_v60, -inf }
 0x248   : > { %v8264_v5 = vpop.f32.mrf.mxu1  ;;  %v2679_v35 = vsel %vm710_vm1, %v8250_v30, -inf }
 0x249   : > { %v8252_v27 = vpop.f32.mrf.mxu0  ;;  %v2676_v62 = vsel %vm710_vm1, %v8264_v5, -inf }
 0x24a   : > { %2650 = vmax.xlane.f32.xlu1 %v2649_v32  ;;  %v8268_v31 = vpop.f32.mrf.mxu1  ;;  %v2688_v47 = vsel %vm710_vm1, %v8252_v27, -inf }
 0x24b   : > { %v8258_v63 = vpop.f32.mrf.mxu0  ;;  %v2673_v54 = vsel %vm710_vm1, %v8268_v31, -inf }
 0x24c   : > { %v2685_v29 = vsel %vm710_vm1, %v8258_v63, -inf }
 0x24d   : > { %2686 = vmax.xlane.f32.xlu0 %v2685_v29 }
 0x24e   : > { %2671 = vmax.xlane.f32.xlu1 %v2670_v34 }
 0x252   : > { %2683 = vmax.xlane.f32.xlu1 %v2682_v40 }
 0x255   : > { %v8270_v36 = vpop.f32.mrf.mxu1 }
 0x256   : > { %v8274_v44 = vpop.f32.mrf.mxu0  ;;  %2668 = vmax.xlane.f32.xlu1 %v2667_v41  ;;  %v2694_v25 = vsel %vm710_vm1, %v8270_v36, -inf }
 0x257   : > { %v8276_v33 = vpop.f32.mrf.mxu1  ;;  %v2706_v40 = vsel %vm710_vm1, %v8274_v44, -inf }
 0x258   : > { %v2691_v38 = vsel %vm710_vm1, %v8276_v33, -inf  ;;  %v8280_v4 = vpop.f32.mrf.mxu0 }
 0x259   : > { %2692 = vmax.xlane.f32.xlu0 %v2691_v38  ;;  %v8282_v2 = vpop.f32.mrf.mxu1  ;;  %v2703_v42 = vsel %vm710_vm1, %v8280_v4, -inf }
 0x25a   : > { %2680 = vmax.xlane.f32.xlu1 %v2679_v35  ;;  %v8288_v45 = vpop.f32.mrf.mxu0  ;;  %v2700_v41 = vsel %vm710_vm1, %v8282_v2, -inf }
 0x25b   : > { %v8290_v7 = vpop.f32.mrf.mxu1  ;;  %v2712_v38 = vsel %vm710_vm1, %v8288_v45, -inf }
 0x25c   : > { %v2697_v46 = vsel %vm710_vm1, %v8290_v7, -inf  ;;  %v8296_v1 = vpop.f32.mrf.mxu0 }
 0x25d   : > { %2704 = vmax.xlane.f32.xlu0 %v2703_v42  ;;  %v2709_v52 = vsel %vm710_vm1, %v8296_v1, -inf }
 0x25e   : > { %2677 = vmax.xlane.f32.xlu1 %v2676_v62  ;;  %v8328_v62 = vpop.permute.xlu1 %3490 }
 0x261   : > { %2698 = vmax.xlane.f32.xlu0 %v2697_v46  ;;  %v8330_v46 = vpop.permute.xlu0 %3488 }
 0x262   : > { %2689 = vmax.xlane.f32.xlu1 %v2688_v47  ;;  %9089 = vst [vmem:[#allocation7_spill] sm:$0xff] %v8330_v46  ;;  %v8332_v47 = vpop.permute.xlu1 %3486 }
 0x263   : > { %9090 = vst [vmem:[#allocation8_spill] sm:$0xff] %v8332_v47 }
 0x265   : > { %2710 = vmax.xlane.f32.xlu0 %v2709_v52  ;;  %v8334_v52 = vpop.permute.xlu0 %3601 }
 0x266   : > { %v8304_v28 = vpop.f32.mrf.mxu1  ;;  %2674 = vmax.xlane.f32.xlu1 %v2673_v54  ;;  %v8336_v54 = vpop.permute.xlu1 %3599 }
 0x267   : > { %v2718_v35 = vsel %vm710_vm1, %v8304_v28, -inf  ;;  %9091 = vst [vmem:[#allocation9_spill] sm:$0xff] %v8336_v54 }
 0x268   : > { %v8306_v56 = vpop.f32.mrf.mxu1 }
 0x269   : > { %v2715_v57 = vsel %vm710_vm1, %v8306_v56, -inf }
 0x26a   : > { %2716 = vmax.xlane.f32.xlu0 %v2715_v57  ;;  %v8312_v32 = vpop.f32.mrf.mxu1  ;;  %2695 = vmax.xlane.f32.xlu1 %v2694_v25 }
 0x26b   : > { %v2724_v42 = vsel %vm710_vm1, %v8312_v32, -inf }
 0x26c   : > { %v8314_v29 = vpop.f32.mrf.mxu1 }
 0x26d   : > { %v2721_v34 = vsel %vm710_vm1, %v8314_v29, -inf }
 0x26e   : > { %2722 = vmax.xlane.f32.xlu0 %v2721_v34  ;;  %2707 = vmax.xlane.f32.xlu1 %v2706_v40 }
 0x272   : > { %2701 = vmax.xlane.f32.xlu1 %v2700_v41 }
 0x276   : > { %2713 = vmax.xlane.f32.xlu1 %v2712_v38 }
 0x27a   : > { %2719 = vmax.xlane.f32.xlu1 %v2718_v35 }
 0x27e   : > { %2725 = vmax.xlane.f32.xlu1 %v2724_v42 }
 0x2af   : > { %v2636_v57 = vpop.xlane.xlu0 %2635 }
 0x2b0   : > { %v2728_v25 = vsub.f32 %v8200_v39, %v2636_v57 }
 0x2b1   : > { %v2633_v34 = vpop.xlane.xlu1 %2632 }
 0x2b2   : > { %v2761_v40 = vmul.f32 1.442695, %v2728_v25  ;;  %v2727_v41 = vsub.f32 %v8204_v43, %v2633_v34 }
 0x2b4   : > { %7193 = vpow2.f32 %v2761_v40  ;;  %v2759_v38 = vmul.f32 1.442695, %v2727_v41 }
 0x2b5   : > { %v2642_v35 = vpop.xlane.xlu1 %2641 }
 0x2b6   : > { %7195 = vpow2.f32 %v2759_v38  ;;  %v2730_v42 = vsub.f32 %v8208_v9, %v2642_v35 }
 0x2b8   : > { %v2765_v22 = vmul.f32 1.442695, %v2730_v42 }
 0x2b9   : > { %v2639_v24 = vpop.xlane.xlu1 %2638 }
 0x2ba   : > { %7197 = vpow2.f32 %v2765_v22  ;;  %v2729_v47 = vsub.f32 %v8212_v26, %v2639_v24 }
 0x2bc   : > { %v2763_v46 = vmul.f32 1.442695, %v2729_v47 }
 0x2be   : > { %7199 = vpow2.f32 %v2763_v46 }
 0x2bf   : > { %v2648_v54 = vpop.xlane.xlu1 %2647 }
 0x2c0   : > { %v2732_v39 = vsub.f32 %v8218_v12, %v2648_v54 }
 0x2c1   : > { %v8343_v57 = vpop.eup %7193  ;;  %v2645_v25 = vpop.xlane.xlu0 %2644 }
 0x2c2   : > { %v2769_v43 = vmul.f32 1.442695, %v2732_v39  ;;  %v2731_v34 = vsub.f32 %v8224_v50, %v2645_v25  ;;  %v2826_v40 = vsel %vm710_vm1, %v8343_v57, 0.0 }
 0x2c3   : > { %v8348_v9 = vpop.eup %7195  ;;  %v2660_v41 = vpop.xlane.xlu1 %2659  ;;  %2827 = vadd.xlane.f32.xlu1 %v2826_v40 }
 0x2c4   : > { %7201 = vpow2.f32 %v2769_v43  ;;  %v2767_v22 = vmul.f32 1.442695, %v2731_v34  ;;  %v2736_v24 = vsub.f32 %v8216_v8, %v2660_v41  ;;  %v2823_v26 = vsel %vm710_vm1, %v8348_v9, 0.0 }
 0x2c5   : > { %2824 = vadd.xlane.f32.xlu0 %v2823_v26  ;;  %v2663_v43 = vpop.xlane.xlu0 %2662 }
 0x2c6   : > { %7203 = vpow2.f32 %v2767_v22  ;;  %v2777_v12 = vmul.f32 1.442695, %v2736_v24  ;;  %v2737_v41 = vsub.f32 %v8232_v3, %v2663_v43 }
 0x2c7   : > { %v8353_v46 = vpop.eup %7197  ;;  %v2657_v50 = vpop.xlane.xlu1 %2656 }
 0x2c8   : > { %7205 = vpow2.f32 %v2777_v12  ;;  %v2735_v47 = vsub.f32 %v8222_v49, %v2657_v50  ;;  %v2832_v54 = vsel %vm710_vm1, %v8353_v46, 0.0 }
 0x2c9   : > { %2833 = vadd.xlane.f32.xlu1 %v2832_v54 }
 0x2ca   : > { %v2775_v38 = vmul.f32 1.442695, %v2735_v47 }
 0x2cb   : > { %v8358_v35 = vpop.eup %7199  ;;  %v2654_v8 = vpop.xlane.xlu1 %2653 }
 0x2cc   : > { %7207 = vpow2.f32 %v2775_v38  ;;  %v2734_v42 = vsub.f32 %v8238_v55, %v2654_v8  ;;  %v2829_v39 = vsel %vm710_vm1, %v8358_v35, 0.0 }
 0x2cd   : > { %2830 = vadd.xlane.f32.xlu0 %v2829_v39 }
 0x2ce   : > { %v2773_v25 = vmul.f32 1.442695, %v2734_v42 }
 0x2cf   : > { %v2666_v34 = vpop.xlane.xlu1 %2665 }
 0x2d0   : > { %7209 = vpow2.f32 %v2773_v25  ;;  %v2738_v49 = vsub.f32 %v8228_v11, %v2666_v34  ;;  %v2779_v11 = vmul.f32 1.442695, %v2737_v41 }
 0x2d1   : > { %v8364_v40 = vpop.eup %7201 }
 0x2d2   : > { %v2781_v22 = vmul.f32 1.442695, %v2738_v49  ;;  %v2838_v24 = vsel %vm710_vm1, %v8364_v40, 0.0 }
 0x2d3   : > { %v8369_v26 = vpop.eup %7203  ;;  %v2651_v55 = vpop.xlane.xlu1 %2650  ;;  %2839 = vadd.xlane.f32.xlu1 %v2838_v24 }
 0x2d4   : > { %7211 = vpow2.f32 %v2781_v22  ;;  %v2733_v12 = vsub.f32 %v8242_v0, %v2651_v55  ;;  %v2835_v50 = vsel %vm710_vm1, %v8369_v26, 0.0 }
 0x2d5   : > { %v8374_v47 = vpop.eup %7205  ;;  %2836 = vadd.xlane.f32.xlu0 %v2835_v50 }
 0x2d6   : > { %v2771_v54 = vmul.f32 1.442695, %v2733_v12  ;;  %v2850_v3 = vsel %vm710_vm1, %v8374_v47, 0.0  ;;  %v2687_v50 = vpop.xlane.xlu0 %2686 }
 0x2d7   : > { %v2672_v38 = vpop.xlane.xlu1 %2671  ;;  %2851 = vadd.xlane.f32.xlu1 %v2850_v3 }
 0x2d8   : > { %7213 = vpow2.f32 %v2771_v54  ;;  %v2740_v8 = vsub.f32 %v8248_v58, %v2672_v38 }
 0x2d9   : > { %v8379_v42 = vpop.eup %7207  ;;  %7215 = vpow2.f32 %v2779_v11 }
 0x2da   : > { %v2785_v0 = vmul.f32 1.442695, %v2740_v8  ;;  %v2847_v39 = vsel %vm710_vm1, %v8379_v42, 0.0 }
 0x2db   : > { %v2684_v25 = vpop.xlane.xlu1 %2683  ;;  %2848 = vadd.xlane.f32.xlu0 %v2847_v39 }
 0x2dc   : > { %v2744_v43 = vsub.f32 %v8244_v14, %v2684_v25  ;;  %7217 = vpow2.f32 %v2785_v0 }
 0x2dd   : > { %v8384_v34 = vpop.eup %7209 }
 0x2de   : > { %v2793_v49 = vmul.f32 1.442695, %v2744_v43  ;;  %v2844_v41 = vsel %vm710_vm1, %v8384_v34, 0.0 }
 0x2df   : > { %v2669_v22 = vpop.xlane.xlu1 %2668  ;;  %2845 = vadd.xlane.f32.xlu1 %v2844_v41 }
 0x2e0   : > { %v2739_v58 = vsub.f32 %v8256_v60, %v2669_v22  ;;  %7219 = vpow2.f32 %v2793_v49  ;;  %v2745_v22 = vsub.f32 %v8258_v63, %v2687_v50 }
 0x2e1   : > { %v8389_v24 = vpop.eup %7211 }
 0x2e2   : > { %v2783_v55 = vmul.f32 1.442695, %v2739_v58  ;;  %v2856_v12 = vsel %vm710_vm1, %v8389_v24, 0.0  ;;  %v2693_v8 = vpop.xlane.xlu0 %2692 }
 0x2e3   : > { %v2681_v14 = vpop.xlane.xlu1 %2680  ;;  %2857 = vadd.xlane.f32.xlu1 %v2856_v12 }
 0x2e4   : > { %7221 = vpow2.f32 %v2783_v55  ;;  %v2743_v11 = vsub.f32 %v8250_v30, %v2681_v14 }
 0x2e5   : > { %v8394_v54 = vpop.eup %7213 }
 0x2e6   : > { %v2791_v3 = vmul.f32 1.442695, %v2743_v11  ;;  %v2841_v38 = vsel %vm710_vm1, %v8394_v54, 0.0  ;;  %v8398_v60 = vpop.eup %7215  ;;  %v2705_v58 = vpop.xlane.xlu0 %2704 }
 0x2e7   : > { %v2678_v0 = vpop.xlane.xlu1 %2677  ;;  %2842 = vadd.xlane.f32.xlu0 %v2841_v38  ;;  %v2853_v43 = vsel %vm710_vm1, %v8398_v60, 0.0  ;;  %v2795_v38 = vmul.f32 1.442695, %v2745_v22 }
 0x2e8   : > { %7223 = vpow2.f32 %v2791_v3  ;;  %v2742_v39 = vsub.f32 %v8264_v5, %v2678_v0  ;;  %v2747_v0 = vsub.f32 %v8276_v33, %v2693_v8  ;;  %v2751_v33 = vsub.f32 %v8280_v4, %v2705_v58 }
 0x2e9   : > { %v8403_v49 = vpop.eup %7217 }
 0x2ea   : > { %v2789_v25 = vmul.f32 1.442695, %v2742_v39  ;;  %v2862_v12 = vsel %vm710_vm1, %v8403_v49, 0.0  ;;  %v2699_v39 = vpop.xlane.xlu0 %2698 }
 0x2eb   : > { %v2690_v30 = vpop.xlane.xlu1 %2689  ;;  %2854 = vadd.xlane.f32.xlu0 %v2853_v43 }
 0x2ec   : > { %7225 = vpow2.f32 %v2789_v25  ;;  %v2746_v41 = vsub.f32 %v8252_v27, %v2690_v30  ;;  %v2799_v30 = vmul.f32 1.442695, %v2747_v0 }
 0x2ed   : > { %v8409_v14 = vpop.eup %7219 }
 0x2ee   : > { %v2797_v55 = vmul.f32 1.442695, %v2746_v41  ;;  %v2874_v50 = vsel %vm710_vm1, %v8409_v14, 0.0 }
 0x2ef   : > { %v2675_v5 = vpop.xlane.xlu1 %2674  ;;  %2863 = vadd.xlane.f32.xlu0 %v2862_v12 }
 0x2f0   : > { %7227 = vpow2.f32 %v2797_v55  ;;  %v2741_v11 = vsub.f32 %v8268_v31, %v2675_v5  ;;  %v2749_v5 = vsub.f32 %v8290_v7, %v2699_v39 }
 0x2f1   : > { %v8412_v3 = vpop.eup %7221 }
 0x2f2   : > { %v2787_v27 = vmul.f32 1.442695, %v2741_v11  ;;  %v2859_v63 = vsel %vm710_vm1, %v8412_v3, 0.0  ;;  %v2711_v11 = vpop.xlane.xlu0 %2710 }
 0x2f3   : > { %v2696_v25 = vpop.xlane.xlu1 %2695  ;;  %2860 = vadd.xlane.f32.xlu1 %v2859_v63  ;;  %2875 = vadd.xlane.f32.xlu0 %v2874_v50  ;;  %v2803_v63 = vmul.f32 1.442695, %v2749_v5 }
 0x2f4   : > { %7229 = vpow2.f32 %v2787_v27  ;;  %v2748_v43 = vsub.f32 %v8270_v36, %v2696_v25  ;;  %v2807_v36 = vmul.f32 1.442695, %v2751_v33 }
 0x2f5   : > { %v8420_v31 = vpop.eup %7223  ;;  %7231 = vpow2.f32 %v2795_v38 }
 0x2f6   : > { %v2801_v8 = vmul.f32 1.442695, %v2748_v43  ;;  %v2871_v41 = vsel %vm710_vm1, %v8420_v31, 0.0  ;;  %v2717_v39 = vpop.xlane.xlu0 %2716 }
 0x2f7   : > { %v2708_v22 = vpop.xlane.xlu1 %2707  ;;  %2872 = vadd.xlane.f32.xlu1 %v2871_v41 }
 0x2f8   : > { %v2752_v55 = vsub.f32 %v8274_v44, %v2708_v22  ;;  %7233 = vpow2.f32 %v2801_v8  ;;  %v2753_v44 = vsub.f32 %v8296_v1, %v2711_v11  ;;  %v2755_v8 = vsub.f32 %v8306_v56, %v2717_v39 }
 0x2f9   : > { %v8426_v12 = vpop.eup %7225  ;;  %7235 = vpow2.f32 %v2799_v30 }
 0x2fa   : > { %v2809_v38 = vmul.f32 1.442695, %v2752_v55  ;;  %v2868_v4 = vsel %vm710_vm1, %v8426_v12, 0.0  ;;  %v2811_v33 = vmul.f32 1.442695, %v2753_v44 }
 0x2fb   : > { %v2702_v58 = vpop.xlane.xlu1 %2701  ;;  %2869 = vadd.xlane.f32.xlu0 %v2868_v4 }
 0x2fc   : > { %v2750_v0 = vsub.f32 %v8282_v2, %v2702_v58  ;;  %7237 = vpow2.f32 %v2809_v38 }
 0x2fd   : > { %v8432_v27 = vpop.eup %7227  ;;  %7239 = vpow2.f32 %v2807_v36 }
 0x2fe   : > { %v2805_v7 = vmul.f32 1.442695, %v2750_v0  ;;  %v2880_v50 = vsel %vm710_vm1, %v8432_v27, 0.0 }
 0x2ff   : > { %v2714_v25 = vpop.xlane.xlu1 %2713  ;;  %2881 = vadd.xlane.f32.xlu0 %v2880_v50 }
 0x300   : > { %7241 = vpow2.f32 %v2805_v7  ;;  %v2754_v43 = vsub.f32 %v8288_v45, %v2714_v25  ;;  %v2815_v45 = vmul.f32 1.442695, %v2755_v8 }
 0x301   : > { %v8438_v30 = vpop.eup %7229  ;;  %7243 = vpow2.f32 %v2803_v63 }
 0x302   : > { %v8440_v2 = vpop.eup %7231  ;;  %v2813_v41 = vmul.f32 1.442695, %v2754_v43  ;;  %v2865_v1 = vsel %vm710_vm1, %v8438_v30, 0.0 }
 0x303   : > { %v2720_v22 = vpop.xlane.xlu1 %2719  ;;  %2866 = vadd.xlane.f32.xlu1 %v2865_v1  ;;  %v2877_v36 = vsel %vm710_vm1, %v8440_v2, 0.0 }
 0x304   : > { %7245 = vpow2.f32 %v2813_v41  ;;  %v2756_v55 = vsub.f32 %v8304_v28, %v2720_v22 }
 0x305   : > { %v8446_v5 = vpop.eup %7233  ;;  %7247 = vpow2.f32 %v2811_v33 }
 0x306   : > { %v2817_v11 = vmul.f32 1.442695, %v2756_v55  ;;  %v8450_v38 = vpop.eup %7235  ;;  %v2886_v56 = vsel %vm710_vm1, %v8446_v5, 0.0 }
 0x307   : > { %2878 = vadd.xlane.f32.xlu1 %v2877_v36  ;;  %2887 = vadd.xlane.f32.xlu0 %v2886_v56  ;;  %v2883_v28 = vsel %vm710_vm1, %v8450_v38, 0.0 }
 0x308   : > { %7249 = vpow2.f32 %v2817_v11  ;;  %v2723_v11 = vpop.xlane.xlu0 %2722 }
 0x309   : > { %v8454_v4 = vpop.eup %7237  ;;  %7251 = vpow2.f32 %v2815_v45  ;;  %v2726_v45 = vpop.xlane.xlu1 %2725  ;;  %v2757_v56 = vsub.f32 %v8314_v29, %v2723_v11 }
 0x30a   : > { %v8458_v58 = vpop.eup %7239  ;;  %v2898_v0 = vsel %vm710_vm1, %v8454_v4, 0.0  ;;  %v2758_v36 = vsub.f32 %v8312_v32, %v2726_v45 }
 0x30b   : > { %2884 = vadd.xlane.f32.xlu1 %v2883_v28  ;;  %2899 = vadd.xlane.f32.xlu0 %v2898_v0  ;;  %v2895_v7 = vsel %vm710_vm1, %v8458_v58, 0.0  ;;  %v2819_v0 = vmul.f32 1.442695, %v2757_v56 }
 0x30c   : > { %v2821_v28 = vmul.f32 1.442695, %v2758_v36 }
 0x30d   : > { %v8462_v63 = vpop.eup %7241 }
 0x30e   : > { %v8464_v44 = vpop.eup %7243  ;;  %v2892_v50 = vsel %vm710_vm1, %v8462_v63, 0.0  ;;  %7253 = vpow2.f32 %v2821_v28 }
 0x30f   : > { %2896 = vadd.xlane.f32.xlu1 %v2895_v7  ;;  %2893 = vadd.xlane.f32.xlu0 %v2892_v50  ;;  %v2889_v25 = vsel %vm710_vm1, %v8464_v44, 0.0  ;;  %7255 = vpow2.f32 %v2819_v0 }
 0x311   : > { %v8470_v39 = vpop.eup %7245 }
 0x312   : > { %v2904_v43 = vsel %vm710_vm1, %v8470_v39, 0.0  ;;  %v8476_v33 = vpop.eup %7247 }
 0x313   : > { %2890 = vadd.xlane.f32.xlu1 %v2889_v25  ;;  %2905 = vadd.xlane.f32.xlu0 %v2904_v43  ;;  %v2901_v41 = vsel %vm710_vm1, %v8476_v33, 0.0 }
 0x315   : > { %v8478_v8 = vpop.eup %7249 }
 0x316   : > { %v2910_v1 = vsel %vm710_vm1, %v8478_v8, 0.0  ;;  %v8484_v22 = vpop.eup %7251 }
 0x317   : > { %2902 = vadd.xlane.f32.xlu1 %v2901_v41  ;;  %2911 = vadd.xlane.f32.xlu0 %v2910_v1  ;;  %v2907_v55 = vsel %vm710_vm1, %v8484_v22, 0.0 }
 0x31b   : > { %2908 = vadd.xlane.f32.xlu1 %v2907_v55  ;;  %v8494_v7 = vpop.eup %7253 }
 0x31c   : > { %v8496_v50 = vpop.eup %7255 }
 0x31d   : > { %v2913_v32 = vsel %vm710_vm1, %v8496_v50, 0.0 }
 0x32c   : > { %3595 = vrot.lane.b32.xlu1 %v7702_v61, %s7448_s12  ;;  %v2916_v61 = vsel %vm710_vm1, %v8494_v7, 0.0 }
 0x32d   : > { %3597 = vrot.lane.b32.xlu0 %v7696_v59, %s7448_s12 }
 0x34c   : > { %v2828_v25 = vpop.xlane.xlu1 %2827  ;;  %2917 = vadd.xlane.f32.xlu0 %v2916_v61 }
 0x34d   : > { %7257 = vrcp.f32 %v2828_v25 }
 0x34e   : > { %v2825_v59 = vpop.xlane.xlu0 %2824 }
 0x34f   : > { %7259 = vrcp.f32 %v2825_v59 }
 0x350   : > { %2914 = vadd.xlane.f32.xlu1 %v2913_v32 }
 0x352   : > { %v2834_v29 = vpop.xlane.xlu1 %2833 }
 0x353   : > { %7261 = vrcp.f32 %v2834_v29 }
 0x356   : > { %v2831_v43 = vpop.xlane.xlu0 %2830 }
 0x357   : > { %7263 = vrcp.f32 %v2831_v43 }
 0x35a   : > { %v7258_v41 = vpop.eup %7257 }
 0x35b   : > { %v2952_v36 = vmul.f32 %v7258_v41, %v8343_v57 }
 0x35c   : > { %v7260_v1 = vpop.eup %7259  ;;  %v2840_v55 = vpop.xlane.xlu1 %2839 }
 0x35d   : > { %v2951_v45 = vmul.f32 %v7260_v1, %v8348_v9  ;;  %7265 = vrcp.f32 %v2840_v55 }
 0x35e   : > { %v2837_v11 = vpop.xlane.xlu0 %2836 }
 0x35f   : > { %7267 = vrcp.f32 %v2837_v11  ;;  %6895 = vmatprep.mubr.msk.f32.mxu0 %vm710_vm1, %v2951_v45 }
 0x360   : > { %6896 = vmatmul.mubr.msk.f32.vlgmr.msra.gmra.mxu0 %vm710_vm1, %v2952_v36  ;;  %v2852_v56 = vpop.xlane.xlu1 %2851  ;;  %v7262_v28 = vpop.eup %7261 }
 0x361   : > { %6916 = vmatpush3.msra.mxu0 %v8086_v48  ;;  %3708 = vrot.lane.b32.xlu1 %v7761_v16, %s7448_s12  ;;  %7269 = vrcp.f32 %v2852_v56 }
 0x362   : > { %6917 = vmatprep.subr.mxu0 %v8093_v51  ;;  %3710 = vrot.lane.b32.xlu0 %v7751_v13, %s7448_s12  ;;  %v2954_v13 = vmul.f32 %v7262_v28, %v8353_v46  ;;  %v8575_v28 = vpop.f32.mrf.mxu1 }
 0x363   : > { %6918 = vmatpush3.msra.mxu0 %v8093_v51 }
 0x364   : > { %v7264_v57 = vpop.eup %7263  ;;  %6919 = vmatprep.subr.mxu0 %v8098_v53  ;;  %v2849_v9 = vpop.xlane.xlu0 %2848 }
 0x365   : > { %6920 = vmatpush3.msra.mxu0 %v8098_v53  ;;  %7271 = vrcp.f32 %v2849_v9  ;;  %3706 = vrot.lane.b32.xlu1 %v7728_v6, %s7448_s12  ;;  %v2953_v16 = vmul.f32 %v7264_v57, %v8358_v35 }
 0x366   : > { %6921 = vmatprep.subr.mxu0 %v8103_v15  ;;  %3819 = vrot.lane.b32.xlu0 %v7779_v19, %s7448_s12 }
 0x367   : > { %6922 = vmatpush3.msra.mxu0 %v8103_v15  ;;  %6898 = vmatprep.mubr.msk.f32.mxu0 %vm710_vm1, %v2953_v16 }
 0x368   : > { %6943 = vmatprep.subr.mxu0 %v8334_v52  ;;  %6899 = vmatmul.mubr.msk.f32.gmra.mxu0 %vm710_vm1, %v2954_v13  ;;  %v2846_v48 = vpop.xlane.xlu1 %2845 }
 0x369   : > { %3704 = vrot.lane.b32.xlu1 %v7741_v10, %s7448_s12  ;;  %7273 = vrcp.f32 %v2846_v48 }
 0x36a   : > { %v7266_v6 = vpop.eup %7265  ;;  %3815 = vrot.lane.b32.xlu0 %v7767_v17, %s7448_s12 }
 0x36b   : > { %v2956_v53 = vmul.f32 %v7266_v6, %v8364_v40  ;;  %v9094_v40 = vld [vmem:[#allocation8_spill] sm:$0xff] }
 0x36c   : > { %v7268_v51 = vpop.eup %7267  ;;  %v2858_v46 = vpop.xlane.xlu1 %2857 }
 0x36d   : > { %3817 = vrot.lane.b32.xlu1 %v7785_v20, %s7448_s12  ;;  %v2955_v19 = vmul.f32 %v7268_v51, %v8369_v26  ;;  %v9096_v26 = vld [vmem:[#allocation5_spill] sm:$0xff] }
 0x36e   : > { %3928 = vrot.lane.b32.xlu0 %v7803_v23, %s7448_s12  ;;  %v7270_v15 = vpop.eup %7269  ;;  %v9092_v23 = vld [vmem:[#allocation7_spill] sm:$0xff] }
 0x36f   : > { %6909 = vmatprep.mubr.msk.f32.mxu1 %vm710_vm1, %v2955_v19 }
 0x370   : > { %6910 = vmatmul.mubr.msk.f32.vlgmr.msra.gmra.mxu1 %vm710_vm1, %v2956_v53  ;;  %v2843_v10 = vpop.xlane.xlu0 %2842 }
 0x371   : > { %6930 = vmatpush3.msra.mxu1 %v8196_v37  ;;  %7275 = vrcp.f32 %v2843_v10  ;;  %3813 = vrot.lane.b32.xlu1 %v7773_v18, %s7448_s12  ;;  %v2960_v37 = vmul.f32 %v7270_v15, %v8374_v47  ;;  %v9093_v18 = vld [vmem:[#allocation6_spill] sm:$0xff]  ;;  %v2992_v10 = vsel %vm368_vm0, %v8575_v28, -inf }
 0x372   : > { %v7272_v17 = vpop.eup %7271  ;;  %6931 = vmatprep.subr.mxu1 %v8328_v62  ;;  %3924 = vrot.lane.b32.xlu0 %v7791_v21, %s7448_s12  ;;  %7277 = vrcp.f32 %v2858_v46  ;;  %v9095_v21 = vld [vmem:[#allocation9_spill] sm:$0xff] }
 0x373   : > { %6932 = vmatpush3.msra.mxu1 %v8328_v62  ;;  %v2959_v20 = vmul.f32 %v7272_v17, %v8379_v42 }
 0x374   : > { %6933 = vmatprep.subr.mxu1 %v9092_v23  ;;  %v2855_v35 = vpop.xlane.xlu0 %2854 }
 0x375   : > { %6934 = vmatpush3.msra.mxu1 %v9092_v23  ;;  %7279 = vrcp.f32 %v2855_v35  ;;  %3926 = vrot.lane.b32.xlu1 %v9093_v18, %s7448_s12 }
 0x376   : > { %6923 = vmatprep.mubr.msk.f32.mxu0 %vm710_vm1, %v2959_v20  ;;  %6935 = vmatprep.subr.mxu1 %v9094_v40  ;;  %v7274_v42 = vpop.eup %7273 }
 0x377   : > { %6924 = vmatmul.mubr.msk.f32.vlgmr.msra.gmra.mxu0 %vm710_vm1, %v2960_v37  ;;  %6936 = vmatpush3.msra.mxu1 %v9094_v40  ;;  %v2958_v59 = vmul.f32 %v7274_v42, %v8384_v34  ;;  %v8568_v34 = vpop.f32.mrf.mxu0 }
 0x378   : > { %6944 = vmatpush3.msra.mxu0 %v8334_v52  ;;  %v2864_v62 = vpop.xlane.xlu0 %2863  ;;  %v2986_v35 = vsel %vm368_vm0, %v8568_v34, -inf }
 0x379   : > { %6945 = vmatprep.subr.mxu0 %v9095_v21  ;;  %3922 = vrot.lane.b32.xlu1 %v9096_v26, %s7448_s12  ;;  %7281 = vrcp.f32 %v2864_v62  ;;  %s7454_s12 = smov 96  }
 0x37a   : > { %6946 = vmatpush3.msra.mxu0 %v9095_v21 }
 0x37c   : > { %v2861_v47 = vpop.xlane.xlu1 %2860  ;;  %v2876_v29 = vpop.xlane.xlu0 %2875 }
 0x37d   : > { %7283 = vrcp.f32 %v2861_v47 }
 0x37e   : > { %v7276_v0 = vpop.eup %7275 }
 0x37f   : > { %v2957_v25 = vmul.f32 %v7276_v0, %v8394_v54  ;;  %v7278_v32 = vpop.eup %7277 }
 0x380   : > { %v2873_v61 = vpop.xlane.xlu1 %2872  ;;  %v2962_v41 = vmul.f32 %v7278_v32, %v8389_v24 }
 0x381   : > { %7285 = vrcp.f32 %v2873_v61  ;;  %6912 = vmatprep.mubr.msk.f32.mxu1 %vm710_vm1, %v2957_v25 }
 0x382   : > { %v7280_v52 = vpop.eup %7279  ;;  %6913 = vmatmul.mubr.msk.f32.gmra.mxu1 %vm710_vm1, %v2958_v59 }
 0x383   : > { %v2961_v43 = vmul.f32 %v7280_v52, %v8398_v60  ;;  %v8573_v60 = vpop.f32.mrf.mxu0 }
 0x384   : > { %v2870_v54 = vpop.xlane.xlu0 %2869 }
 0x385   : > { %6926 = vmatprep.mubr.msk.f32.mxu0 %vm710_vm1, %v2961_v43  ;;  %7287 = vrcp.f32 %v2870_v54  ;;  %v8590_v51 = vpop.f32.mrf.mxu0 }
 0x386   : > { %6927 = vmatmul.mubr.msk.f32.gmra.mxu0 %vm710_vm1, %v2962_v41  ;;  %v7282_v1 = vpop.eup %7281 }
 0x387   : > { %v2964_v11 = vmul.f32 %v7282_v1, %v8403_v49  ;;  %v2983_v49 = vsel %vm368_vm0, %v8573_v60, -inf  ;;  %v8596_v46 = vpop.f32.mrf.mxu0 }
 0x388   : > { %v2882_v56 = vpop.xlane.xlu0 %2881  ;;  %v2995_v40 = vsel %vm368_vm0, %v8596_v46, -inf }
 0x389   : > { %v8613_v62 = vpop.f32.mrf.mxu0 }
 0x38a   : > { %v7284_v55 = vpop.eup %7283 }
 0x38b   : > { %v2963_v45 = vmul.f32 %v7284_v55, %v8412_v3  ;;  %v8584_v3 = vpop.f32.mrf.mxu1  ;;  %v8624_v0 = vpop.f32.mrf.mxu0  ;;  %v3010_v55 = vsel %vm368_vm0, %v8613_v62, -inf }
 0x38c   : > { %v2867_v36 = vpop.xlane.xlu1 %2866  ;;  %v2989_v48 = vsel %vm368_vm0, %v8584_v3, -inf }
 0x38d   : > { %7289 = vrcp.f32 %v2867_v36  ;;  %6937 = vmatprep.mubr.msk.f32.mxu1 %vm710_vm1, %v2963_v45  ;;  %v8598_v17 = vpop.f32.mrf.mxu1  ;;  %v8636_v54 = vpop.f32.mrf.mxu0 }
 0x38e   : > { %v7286_v24 = vpop.eup %7285  ;;  %6938 = vmatmul.mubr.msk.f32.vlgmr.msra.gmra.mxu1 %vm710_vm1, %v2964_v11  ;;  %v3004_v32 = vsel %vm368_vm0, %v8598_v17, -inf }
 0x38f   : > { %v2967_v57 = vmul.f32 %v7286_v24, %v8420_v31  ;;  %v8611_v21 = vpop.f32.mrf.mxu1 }
 0x390   : > { %v2879_v9 = vpop.xlane.xlu1 %2878  ;;  %v8579_v16 = vpop.xlane.xlu0 %2887  ;;  %v3001_v47 = vsel %vm368_vm0, %v8611_v21, -inf }
 0x391   : > { %6951 = vmatprep.mubr.msk.f32.mxu0 %vm710_vm1, %v2967_v57  ;;  %2984 = vmax.xlane.f32.xlu0 %v2983_v49  ;;  %v8626_v25 = vpop.f32.mrf.mxu1 }
 0x392   : > { %v7288_v19 = vpop.eup %7287 }
 0x393   : > { %v2966_v37 = vmul.f32 %v7288_v19, %v8426_v12  ;;  %v2998_v12 = vsel %vm368_vm0, %v8590_v51, -inf  ;;  %v8634_v41 = vpop.f32.mrf.mxu1 }
 0x394   : > { %v2885_v13 = vpop.xlane.xlu1 %2884  ;;  %v8586_v6 = vpop.xlane.xlu0 %2899  ;;  %v3013_v11 = vsel %vm368_vm0, %v8634_v41, -inf }
 0x395   : > { %7291 = vrcp.f32 %v2885_v13  ;;  %2990 = vmax.xlane.f32.xlu0 %v2989_v48  ;;  %v8645_v24 = vpop.f32.mrf.mxu1 }
 0x396   : > { %7293 = vrcp.f32 %v2876_v29  ;;  %v3007_v29 = vsel %vm368_vm0, %v8624_v0, -inf }
 0x397   : > { %7295 = vrcp.f32 %v2879_v9  ;;  %v8655_v48 = vpop.f32.mrf.mxu1 }
 0x398   : > { %v2897_v31 = vpop.xlane.xlu1 %2896  ;;  %v8592_v53 = vpop.xlane.xlu0 %2893  ;;  %7297 = vrcp.f32 %v2882_v56  ;;  %v3025_v19 = vsel %vm368_vm0, %v8655_v48, -inf }
 0x399   : > { %2993 = vmax.xlane.f32.xlu0 %v2992_v10  ;;  %7299 = vrcp.f32 %v2897_v31  ;;  %v8643_v56 = vpop.f32.mrf.mxu0 }
 0x39a   : > { %v7290_v15 = vpop.eup %7289  ;;  %v3019_v49 = vsel %vm368_vm0, %v8643_v56, -inf  ;;  %7301 = vrcp.f32 %v8579_v16 }
 0x39b   : > { %v2965_v20 = vmul.f32 %v7290_v15, %v8438_v30 }
 0x39c   : > { %v8601_v23 = vpop.xlane.xlu1 %2890  ;;  %v8606_v18 = vpop.xlane.xlu0 %2905 }
 0x39d   : > { %2987 = vmax.xlane.f32.xlu1 %v2986_v35  ;;  %6940 = vmatprep.mubr.msk.f32.mxu1 %vm710_vm1, %v2965_v20  ;;  %7303 = vrcp.f32 %v8601_v23 }
 0x39e   : > { %2996 = vmax.xlane.f32.xlu0 %v2995_v40  ;;  %6941 = vmatmul.mubr.msk.f32.gmra.mxu1 %vm710_vm1, %v2966_v37  ;;  %7305 = vrcp.f32 %v8592_v53 }
 0x3a0   : > { %v8616_v30 = vpop.xlane.xlu1 %2902  ;;  %v8620_v26 = vpop.xlane.xlu0 %2911 }
 0x3a1   : > { %2999 = vmax.xlane.f32.xlu1 %v2998_v12 }
 0x3a2   : > { %v7292_v42 = vpop.eup %7291  ;;  %3002 = vmax.xlane.f32.xlu0 %v3001_v47 }
 0x3a3   : > { %v2971_v61 = vmul.f32 %v7292_v42, %v8450_v38  ;;  %v7294_v43 = vpop.eup %7293 }
 0x3a4   : > { %v2909_v59 = vpop.xlane.xlu1 %2908  ;;  %v3598_v52 = vpop.permute.xlu0 %3597  ;;  %v2968_v45 = vmul.f32 %v7294_v43, %v8409_v14  ;;  %v3016_v14 = vsel %vm368_vm0, %v8626_v25, -inf }
 0x3a5   : > { %6965 = vmatprep.mubr.msk.f32.mxu1 %vm710_vm1, %v2971_v61  ;;  %3005 = vmax.xlane.f32.xlu1 %v3004_v32  ;;  %v7296_v1 = vpop.eup %7295  ;;  %7307 = vrcp.f32 %v2909_v59 }
 0x3a6   : > { %6947 = vmatprep.subr.mxu0 %v3598_v52  ;;  %3008 = vmax.xlane.f32.xlu0 %v3007_v29  ;;  %v7298_v36 = vpop.eup %7297  ;;  %v2969_v57 = vmul.f32 %v7296_v1, %v8440_v2  ;;  %v3022_v2 = vsel %vm368_vm0, %v8636_v54, -inf  ;;  %7309 = vrcp.f32 %v8586_v6 }
 0x3a7   : > { %6948 = vmatpush3.msra.mxu0 %v3598_v52  ;;  %v7300_v9 = vpop.eup %7299  ;;  %v2970_v13 = vmul.f32 %v7298_v36, %v8432_v27  ;;  %v3028_v27 = vsel %vm368_vm0, %v8645_v24, -inf  ;;  %7311 = vrcp.f32 %v8616_v30 }
 0x3a8   : > { %v3596_v38 = vpop.permute.xlu1 %3595  ;;  %v2975_v31 = vmul.f32 %v7300_v9, %v8458_v58  ;;  %7313 = vrcp.f32 %v8606_v18  ;;  %v7302_v53 = vpop.eup %7301 }
 0x3a9   : > { %6949 = vmatprep.subr.mxu0 %v3596_v38  ;;  %3011 = vmax.xlane.f32.xlu1 %v3010_v55  ;;  %v2972_v12 = vmul.f32 %v7302_v53, %v8446_v5  ;;  %7315 = vrcp.f32 %v8620_v26 }
 0x3aa   : > { %3014 = vmax.xlane.f32.xlu0 %v3013_v11  ;;  %6950 = vmatpush3.msra.mxu0 %v3596_v38  ;;  %v7304_v37 = vpop.eup %7303 }
 0x3ab   : > { %6952 = vmatmul.mubr.msk.f32.vlgmr.msra.gmra.mxu0 %vm710_vm1, %v2968_v45  ;;  %v7306_v6 = vpop.eup %7305  ;;  %v2973_v47 = vmul.f32 %v7304_v37, %v8464_v44 }
 0x3ac   : > { %6954 = vmatprep.mubr.msk.f32.mxu0 %vm710_vm1, %v2969_v57  ;;  %v2974_v5 = vmul.f32 %v7306_v6, %v8462_v63 }
 0x3ad   : > { %3017 = vmax.xlane.f32.xlu1 %v3016_v14 }
 0x3ae   : > { %3020 = vmax.xlane.f32.xlu0 %v3019_v49 }
 0x3af   : > { %6955 = vmatmul.mubr.msk.f32.gmra.mxu0 %vm710_vm1, %v2970_v13 }
 0x3b0   : > { %6979 = vmatprep.mubr.msk.f32.mxu0 %vm710_vm1, %v2975_v31 }
 0x3b1   : > { %3023 = vmax.xlane.f32.xlu1 %v3022_v2 }
 0x3b2   : > { %3026 = vmax.xlane.f32.xlu0 %v3025_v19  ;;  %v7308_v42 = vpop.eup %7307 }
 0x3b3   : > { %v7310_v26 = vpop.eup %7309  ;;  %v2979_v61 = vmul.f32 %v7308_v42, %v8484_v22 }
 0x3b4   : > { %v7312_v59 = vpop.eup %7311  ;;  %v2976_v32 = vmul.f32 %v7310_v26, %v8454_v4 }
 0x3b5   : > { %3029 = vmax.xlane.f32.xlu1 %v3028_v27  ;;  %v7314_v52 = vpop.eup %7313  ;;  %v2977_v29 = vmul.f32 %v7312_v59, %v8476_v33 }
 0x3b6   : > { %v2978_v22 = vmul.f32 %v7314_v52, %v8470_v39  ;;  %v7316_v43 = vpop.eup %7315 }
 0x3b7   : > { %v2980_v55 = vmul.f32 %v7316_v43, %v8478_v8 }
 0x3d5   : > { %v2918_v10 = vpop.xlane.xlu0 %2917 }
 0x3d9   : > { %v2915_v58 = vpop.xlane.xlu1 %2914  ;;  %v3711_v15 = vpop.permute.xlu0 %3710 }
 0x3da   : > { %6957 = vmatprep.subr.mxu1 %v3711_v15  ;;  %7317 = vrcp.f32 %v2915_v58 }
 0x3db   : > { %6958 = vmatpush3.msra.mxu1 %v3711_v15  ;;  %7319 = vrcp.f32 %v2918_v10 }
 0x3dd   : > { %v3709_v20 = vpop.permute.xlu1 %3708  ;;  %v3820_v35 = vpop.permute.xlu0 %3819 }
 0x3de   : > { %6959 = vmatprep.subr.mxu1 %v3709_v20  ;;  %6971 = vmatprep.subr.mxu0 %v3820_v35 }
 0x3df   : > { %6960 = vmatpush3.msra.mxu1 %v3709_v20  ;;  %6972 = vmatpush3.msra.mxu0 %v3820_v35 }
 0x3e1   : > { %v3707_v16 = vpop.permute.xlu1 %3706  ;;  %v3816_v23 = vpop.permute.xlu0 %3815 }
 0x3e2   : > { %6961 = vmatprep.subr.mxu1 %v3707_v16 }
 0x3e3   : > { %6962 = vmatpush3.msra.mxu1 %v3707_v16 }
 0x3e5   : > { %v3705_v40 = vpop.permute.xlu1 %3704  ;;  %v3929_v30 = vpop.permute.xlu0 %3928 }
 0x3e6   : > { %6963 = vmatprep.subr.mxu1 %v3705_v40 }
 0x3e7   : > { %6964 = vmatpush3.msra.mxu1 %v3705_v40  ;;  %v7318_v38 = vpop.eup %7317 }
 0x3e8   : > { %6966 = vmatmul.mubr.msk.f32.vlgmr.msra.gmra.mxu1 %vm710_vm1, %v2972_v12  ;;  %6985 = vmatprep.subr.mxu1 %v3929_v30  ;;  %v7320_v33 = vpop.eup %7319  ;;  %v2981_v45 = vmul.f32 %v7318_v38, %v8496_v50 }
 0x3e9   : > { %v3818_v18 = vpop.permute.xlu1 %3817  ;;  %6968 = vmatprep.mubr.msk.f32.mxu1 %vm710_vm1, %v2973_v47  ;;  %6986 = vmatpush3.msra.mxu1 %v3929_v30  ;;  %v3925_v1 = vpop.permute.xlu0 %3924  ;;  %v2982_v39 = vmul.f32 %v7320_v33, %v8494_v7 }
 0x3ea   : > { %6973 = vmatprep.subr.mxu0 %v3818_v18 }
 0x3eb   : > { %6974 = vmatpush3.msra.mxu0 %v3818_v18 }
 0x3ec   : > { %6969 = vmatmul.mubr.msk.f32.gmra.mxu1 %vm710_vm1, %v2974_v5  ;;  %6975 = vmatprep.subr.mxu0 %v3816_v23 }
 0x3ed   : > { %v3814_v44 = vpop.permute.xlu1 %3813  ;;  %6976 = vmatpush3.msra.mxu0 %v3816_v23  ;;  %6993 = vmatprep.mubr.msk.f32.mxu1 %vm710_vm1, %v2979_v61 }
 0x3ee   : > { %6977 = vmatprep.subr.mxu0 %v3814_v44 }
 0x3ef   : > { %6978 = vmatpush3.msra.mxu0 %v3814_v44 }
 0x3f0   : > { %6980 = vmatmul.mubr.msk.f32.vlgmr.msra.gmra.mxu0 %vm710_vm1, %v2976_v32 }
 0x3f1   : > { %v3927_v63 = vpop.permute.xlu1 %3926  ;;  %6982 = vmatprep.mubr.msk.f32.mxu0 %vm710_vm1, %v2977_v29 }
 0x3f2   : > { %6987 = vmatprep.subr.mxu1 %v3927_v63 }
 0x3f3   : > { %6988 = vmatpush3.msra.mxu1 %v3927_v63 }
 0x3f4   : > { %6983 = vmatmul.mubr.msk.f32.gmra.mxu0 %vm710_vm1, %v2978_v22  ;;  %6989 = vmatprep.subr.mxu1 %v3925_v1 }
 0x3f5   : > { %v3923_v4 = vpop.permute.xlu1 %3922  ;;  %6990 = vmatpush3.msra.mxu1 %v3925_v1 }
 0x3f6   : > { %6991 = vmatprep.subr.mxu1 %v3923_v4 }
 0x3f7   : > { %6992 = vmatpush3.msra.mxu1 %v3923_v4 }
 0x3f8   : > { %6994 = vmatmul.mubr.msk.f32.vlgmr.msra.gmra.mxu1 %vm710_vm1, %v2980_v55 }
 0x3f9   : > { %6996 = vmatprep.mubr.msk.f32.mxu1 %vm710_vm1, %v2981_v45 }
 0x3fc   : > { %6997 = vmatmul.mubr.msk.f32.gmra.mxu1 %vm710_vm1, %v2982_v39 }
 0x41a   : > { %v2985_v11 = vpop.xlane.xlu0 %2984 }
 0x41b   : > { %v3031_v36 = vsub.f32 %v8573_v60, %v2985_v11 }
 0x41d   : > { %v3047_v57 = vmul.f32 1.442695, %v3031_v36 }
 0x41e   : > { %v2991_v9 = vpop.xlane.xlu0 %2990 }
 0x41f   : > { %7321 = vpow2.f32 %v3047_v57  ;;  %v3033_v8 = vsub.f32 %v8584_v3, %v2991_v9 }
 0x420   : > { %v6897_v49 = vpop.f32.mrf.mxu0 }
 0x421   : > { %v3051_v14 = vmul.f32 1.442695, %v3033_v8 }
 0x422   : > { %v2994_v13 = vpop.xlane.xlu0 %2993  ;;  %v3249_v2 = vpop.f32.mrf.mxu0 }
 0x423   : > { %7323 = vpow2.f32 %v3051_v14  ;;  %v3034_v50 = vsub.f32 %v8575_v28, %v2994_v13 }
 0x425   : > { %v3053_v10 = vmul.f32 1.442695, %v3034_v50 }
 0x426   : > { %v2988_v31 = vpop.xlane.xlu1 %2987 }
 0x427   : > { %v3032_v7 = vsub.f32 %v8568_v34, %v2988_v31  ;;  %v2997_v19 = vpop.xlane.xlu0 %2996 }
 0x428   : > { %v3035_v27 = vsub.f32 %v8596_v46, %v2997_v19  ;;  %v6900_v58 = vpop.f32.mrf.mxu0 }
 0x429   : > { %v3049_v60 = vmul.f32 1.442695, %v3032_v7  ;;  %6999 = vmatprep.subr.msk.mxu0 %vm368_vm0, %v6900_v58 }
 0x42a   : > { %v3055_v15 = vmul.f32 1.442695, %v3035_v27  ;;  %v3000_v3 = vpop.xlane.xlu1 %2999  ;;  %v3259_v35 = vpop.f32.mrf.mxu0  ;;  %7000 = vmatpush3.xpose.msk.msra.mxu0 %vm368_vm0, %v6900_v58 }
 0x42b   : > { %7325 = vpow2.f32 %v3049_v60  ;;  %v3036_v20 = vsub.f32 %v8590_v51, %v3000_v3  ;;  %v3003_v28 = vpop.xlane.xlu0 %3002  ;;  %7001 = vmatprep.subr.msk.mxu0 %vm368_vm0, %v3259_v35 }
 0x42c   : > { %7327 = vpow2.f32 %v3055_v15  ;;  %v3037_v34 = vsub.f32 %v8611_v21, %v3003_v28  ;;  %v8703_v46 = vpop.eup %7321 }
 0x42d   : > { %7329 = vpow2.f32 %v3053_v10  ;;  %v3057_v16 = vmul.f32 1.442695, %v3036_v20  ;;  %v3079_v37 = vsel %vm368_vm0, %v8703_v46, 0.0 }
 0x42e   : > { %v3059_v23 = vmul.f32 1.442695, %v3037_v34  ;;  %v3006_v53 = vpop.xlane.xlu1 %3005  ;;  %7002 = vmatpush3.xpose.msk.msra.mxu0 %vm368_vm0, %v3259_v35  ;;  %3080 = vadd.xlane.f32.xlu0 %v3079_v37 }
 0x42f   : > { %v3038_v51 = vsub.f32 %v8598_v17, %v3006_v53  ;;  %v3009_v40 = vpop.xlane.xlu0 %3008  ;;  %7003 = vmatprep.subr.msk.mxu0 %vm368_vm0, %v6897_v49 }
 0x430   : > { %7331 = vpow2.f32 %v3059_v23  ;;  %v3039_v21 = vsub.f32 %v8624_v0, %v3009_v40  ;;  %v8711_v12 = vpop.eup %7323 }
 0x431   : > { %7333 = vpow2.f32 %v3057_v16  ;;  %v3061_v6 = vmul.f32 1.442695, %v3038_v51  ;;  %v3085_v42 = vsel %vm368_vm0, %v8711_v12, 0.0 }
 0x432   : > { %v3063_v30 = vmul.f32 1.442695, %v3039_v21  ;;  %v3012_v47 = vpop.xlane.xlu1 %3011  ;;  %7004 = vmatpush3.xpose.msk.msra.mxu0 %vm368_vm0, %v6897_v49  ;;  %3086 = vadd.xlane.f32.xlu0 %v3085_v42 }
 0x433   : > { %v3040_v17 = vsub.f32 %v8613_v62, %v3012_v47  ;;  %v3015_v18 = vpop.xlane.xlu0 %3014  ;;  %7005 = vmatprep.subr.msk.mxu0 %vm368_vm0, %v3249_v2 }
 0x434   : > { %7335 = vpow2.f32 %v3063_v30  ;;  %v3041_v0 = vsub.f32 %v8634_v41, %v3015_v18 }
 0x435   : > { %7337 = vpow2.f32 %v3061_v6  ;;  %v3065_v5 = vmul.f32 1.442695, %v3040_v17 }
 0x436   : > { %v3067_v26 = vmul.f32 1.442695, %v3041_v0  ;;  %v3018_v61 = vpop.xlane.xlu1 %3017  ;;  %7006 = vmatpush3.xpose.msk.msra.mxu0 %vm368_vm0, %v3249_v2 }
 0x437   : > { %v3042_v59 = vsub.f32 %v8626_v25, %v3018_v61  ;;  %v3021_v44 = vpop.xlane.xlu0 %3020 }
 0x438   : > { %v8721_v32 = vpop.eup %7325  ;;  %7339 = vpow2.f32 %v3067_v26  ;;  %v3043_v62 = vsub.f32 %v8643_v56, %v3021_v44  ;;  %v6911_v56 = vpop.f32.mrf.mxu1 }
 0x439   : > { %v8724_v52 = vpop.eup %7327  ;;  %7341 = vpow2.f32 %v3065_v5  ;;  %v3069_v41 = vmul.f32 1.442695, %v3042_v59  ;;  %v3082_v29 = vsel %vm368_vm0, %v8721_v32, 0.0 }
 0x43a   : > { %v8728_v63 = vpop.eup %7329  ;;  %v3071_v22 = vmul.f32 1.442695, %v3043_v62  ;;  %v3024_v43 = vpop.xlane.xlu1 %3023  ;;  %3083 = vadd.xlane.f32.xlu1 %v3082_v29  ;;  %v3091_v25 = vsel %vm368_vm0, %v8724_v52, 0.0 }
 0x43b   : > { %v3044_v1 = vsub.f32 %v8636_v54, %v3024_v43  ;;  %3092 = vadd.xlane.f32.xlu0 %v3091_v25  ;;  %v3027_v38 = vpop.xlane.xlu0 %3026  ;;  %v3088_v45 = vsel %vm368_vm0, %v8728_v63, 0.0  ;;  %v3358_v9 = vpop.f32.mrf.mxu1 }
 0x43c   : > { %7343 = vpow2.f32 %v3071_v22  ;;  %v3045_v4 = vsub.f32 %v8655_v48, %v3027_v38  ;;  %v8743_v48 = vpop.f32.mrf.mxu0 }
 0x43d   : > { %v8734_v55 = vpop.eup %7331  ;;  %7345 = vpow2.f32 %v3069_v41  ;;  %v3073_v33 = vmul.f32 1.442695, %v3044_v1 }
 0x43e   : > { %v8738_v39 = vpop.eup %7333  ;;  %v3075_v11 = vmul.f32 1.442695, %v3045_v4  ;;  %3089 = vadd.xlane.f32.xlu1 %v3088_v45  ;;  %v3030_v36 = vpop.xlane.xlu1 %3029  ;;  %v3097_v54 = vsel %vm368_vm0, %v8734_v55, 0.0 }
 0x43f   : > { %v3046_v57 = vsub.f32 %v8645_v24, %v3030_v36  ;;  %3098 = vadd.xlane.f32.xlu0 %v3097_v54  ;;  %v3094_v49 = vsel %vm368_vm0, %v8738_v39, 0.0  ;;  %v8754_v24 = vpop.f32.mrf.mxu0 }
 0x440   : > { %7347 = vpow2.f32 %v3075_v11 }
 0x441   : > { %v8745_v8 = vpop.eup %7335  ;;  %7349 = vpow2.f32 %v3073_v33  ;;  %v3077_v14 = vmul.f32 1.442695, %v3046_v57 }
 0x442   : > { %v8749_v13 = vpop.eup %7337  ;;  %3095 = vadd.xlane.f32.xlu1 %v3094_v49  ;;  %v6914_v50 = vpop.f32.mrf.mxu1  ;;  %v3103_v31 = vsel %vm368_vm0, %v8745_v8, 0.0 }
 0x443   : > { %3104 = vadd.xlane.f32.xlu0 %v3103_v31  ;;  %7010 = vmatprep.subr.msk.mxu1 %vm368_vm0, %v6914_v50  ;;  %7351 = vpow2.f32 %v3077_v14  ;;  %v3100_v19 = vsel %vm368_vm0, %v8749_v13, 0.0 }
 0x444   : > { %v3368_v2 = vpop.f32.mrf.mxu1  ;;  %7011 = vmatpush3.xpose.msk.msra.mxu1 %vm368_vm0, %v6914_v50 }
 0x445   : > { %v8757_v7 = vpop.eup %7339  ;;  %7012 = vmatprep.subr.msk.mxu1 %vm368_vm0, %v3368_v2 }
 0x446   : > { %v8762_v27 = vpop.eup %7341  ;;  %v6928_v10 = vpop.f32.mrf.mxu0  ;;  %3101 = vadd.xlane.f32.xlu1 %v3100_v19  ;;  %v3109_v60 = vsel %vm368_vm0, %v8757_v7, 0.0 }
 0x447   : > { %3110 = vadd.xlane.f32.xlu0 %v3109_v60  ;;  %7021 = vmatprep.subr.msk.mxu0 %vm368_vm0, %v6928_v10  ;;  %v3106_v15 = vsel %vm368_vm0, %v8762_v27, 0.0 }
 0x448   : > { %7013 = vmatpush3.xpose.msk.msra.mxu1 %vm368_vm0, %v3368_v2  ;;  %v3477_v25 = vpop.f32.mrf.mxu0 }
 0x449   : > { %v8768_v58 = vpop.eup %7343  ;;  %7014 = vmatprep.subr.msk.mxu1 %vm368_vm0, %v6911_v56 }
 0x44a   : > { %v8773_v3 = vpop.eup %7345  ;;  %3107 = vadd.xlane.f32.xlu1 %v3106_v15  ;;  %v3115_v20 = vsel %vm368_vm0, %v8768_v58, 0.0 }
 0x44b   : > { %3116 = vadd.xlane.f32.xlu0 %v3115_v20  ;;  %v3112_v28 = vsel %vm368_vm0, %v8773_v3, 0.0 }
 0x44c   : > { %7015 = vmatpush3.xpose.msk.msra.mxu1 %vm368_vm0, %v6911_v56 }
 0x44d   : > { %v8778_v35 = vpop.eup %7347  ;;  %7016 = vmatprep.subr.msk.mxu1 %vm368_vm0, %v3358_v9 }
 0x44e   : > { %v8783_v34 = vpop.eup %7349  ;;  %3113 = vadd.xlane.f32.xlu1 %v3112_v28  ;;  %v3121_v16 = vsel %vm368_vm0, %v8778_v35, 0.0  ;;  %v8794_v51 = vpop.f32.mrf.mxu1 }
 0x44f   : > { %3122 = vadd.xlane.f32.xlu0 %v3121_v16  ;;  %v3118_v23 = vsel %vm368_vm0, %v8783_v34, 0.0 }
 0x450   : > { %7017 = vmatpush3.xpose.msk.msra.mxu1 %vm368_vm0, %v3358_v9  ;;  %v8790_v53 = vpop.eup %7351  ;;  %v8796_v40 = vpop.f32.mrf.mxu1 }
 0x451   : > { %v3124_v37 = vsel %vm368_vm0, %v8790_v53, 0.0 }
 0x452   : > { %3119 = vadd.xlane.f32.xlu1 %v3118_v23 }
 0x456   : > { %3125 = vadd.xlane.f32.xlu1 %v3124_v37 }
 0x45e   : > { %v6942_v21 = vpop.f32.mrf.mxu1 }
 0x45f   : > { %7032 = vmatprep.subr.msk.mxu1 %vm368_vm0, %v6942_v21 }
 0x46b   : > { %v6953_v56 = vpop.f32.mrf.mxu0 }
 0x4b7   : > { %v3081_v6 = vpop.xlane.xlu0 %3080 }
 0x4b8   : > { %7353 = vrcp.f32 %v3081_v6 }
 0x4bb   : > { %v3087_v30 = vpop.xlane.xlu0 %3086 }
 0x4bc   : > { %7355 = vrcp.f32 %v3087_v30 }
 0x4c3   : > { %v3084_v47 = vpop.xlane.xlu1 %3083 }
 0x4c4   : > { %7357 = vrcp.f32 %v3084_v47  ;;  %v3093_v42 = vpop.xlane.xlu0 %3092 }
 0x4c5   : > { %7359 = vrcp.f32 %v3093_v42  ;;  %v7354_v17 = vpop.eup %7353 }
 0x4c6   : > { %v3143_v0 = vmul.f32 %v7354_v17, %v8703_v46  ;;  %v4776_v17 = vld [vmem:[%s9077_s6 + $0x8] sm:$0xff] }
 0x4c7   : > { %v3090_v18 = vpop.xlane.xlu1 %3089 }
 0x4c8   : > { %7361 = vrcp.f32 %v3090_v18  ;;  %v3099_v5 = vpop.xlane.xlu0 %3098  ;;  %7007 = vmatprep.mubr.msk.f32.mxu0 %vm368_vm0, %v3143_v0  ;;  %v4775_v18 = vld [vmem:[%s9077_s6] sm:$0xff] }
 0x4c9   : > { %7363 = vrcp.f32 %v3099_v5  ;;  %v7356_v26 = vpop.eup %7355 }
 0x4ca   : > { %v3145_v61 = vmul.f32 %v7356_v26, %v8711_v12 }
 0x4cb   : > { %v3096_v59 = vpop.xlane.xlu1 %3095 }
 0x4cc   : > { %7018 = vmatprep.mubr.msk.f32.mxu1 %vm368_vm0, %v3145_v61  ;;  %v3105_v44 = vpop.xlane.xlu0 %3104  ;;  %7365 = vrcp.f32 %v3096_v59 }
 0x4cd   : > { %7367 = vrcp.f32 %v3105_v44 }
 0x4cf   : > { %v3102_v22 = vpop.xlane.xlu1 %3101 }
 0x4d0   : > { %v3111_v1 = vpop.xlane.xlu0 %3110  ;;  %7369 = vrcp.f32 %v3102_v22 }
 0x4d1   : > { %v7358_v62 = vpop.eup %7357  ;;  %7371 = vrcp.f32 %v3111_v1 }
 0x4d2   : > { %v7360_v41 = vpop.eup %7359  ;;  %v3144_v29 = vmul.f32 %v7358_v62, %v8721_v32 }
 0x4d3   : > { %v3147_v46 = vmul.f32 %v7360_v41, %v8724_v52  ;;  %v3586_v52 = vpop.f32.mrf.mxu1  ;;  %v3108_v4 = vpop.xlane.xlu1 %3107 }
 0x4d4   : > { %7008 = vmatmul.mubr.msk.f32.vlgmr.msra.gmra.mxu0 %vm368_vm0, %v3144_v29  ;;  %v3117_v45 = vpop.xlane.xlu0 %3116  ;;  %7373 = vrcp.f32 %v3108_v4 }
 0x4d5   : > { %v7362_v43 = vpop.eup %7361  ;;  %7022 = vmatpush3.xpose.msk.msra.mxu0 %vm368_vm0, %v6928_v10  ;;  %7029 = vmatprep.mubr.msk.f32.mxu0 %vm368_vm0, %v3147_v46  ;;  %7375 = vrcp.f32 %v3117_v45 }
 0x4d6   : > { %v7364_v12 = vpop.eup %7363  ;;  %v3146_v38 = vmul.f32 %v7362_v43, %v8728_v63  ;;  %7023 = vmatprep.subr.msk.mxu0 %vm368_vm0, %v3477_v25  ;;  %v3685_v63 = vpop.f32.mrf.mxu0 }
 0x4d7   : > { %v3149_v32 = vmul.f32 %v7364_v12, %v8734_v55  ;;  %v6967_v55 = vpop.f32.mrf.mxu1  ;;  %v7449_v12 = vmov 0  }
 0x4d8   : > { %7019 = vmatmul.mubr.msk.f32.vlgmr.msra.gmra.mxu1 %vm368_vm0, %v3146_v38  ;;  %v6956_v36 = vpop.f32.mrf.mxu0  ;;  %v3123_v31 = vpop.xlane.xlu0 %3122  ;;  %v5611_v38 = vld [vmem:[%s9078_s7 + $0x8] sm:$0xff] }
 0x4d9   : > { %7024 = vmatpush3.xpose.msk.msra.mxu0 %vm368_vm0, %v3477_v25  ;;  %7033 = vmatpush3.xpose.msk.msra.mxu1 %vm368_vm0, %v6942_v21  ;;  %v7366_v33 = vpop.eup %7365  ;;  %v3794_v54 = vpop.f32.mrf.mxu1 }
 0x4da   : > { %7025 = vmatprep.subr.msk.mxu0 %vm368_vm0, %v8743_v48  ;;  %7034 = vmatprep.subr.msk.mxu1 %vm368_vm0, %v3586_v52  ;;  %v7368_v11 = vpop.eup %7367  ;;  %v3148_v57 = vmul.f32 %v7366_v33, %v8738_v39  ;;  %v3695_v50 = vpop.f32.mrf.mxu0 }
 0x4db   : > { %7040 = vmatprep.mubr.msk.f32.mxu1 %vm368_vm0, %v3149_v32  ;;  %v3151_v14 = vmul.f32 %v7368_v11, %v8745_v8  ;;  %v5610_v32 = vld [vmem:[%s9078_s7] sm:$0xff] }
 0x4dc   : > { %v6981_v2 = vpop.f32.mrf.mxu0 }
 0x4dd   : > { %7026 = vmatpush3.xpose.msk.msra.mxu0 %vm368_vm0, %v8743_v48  ;;  %7035 = vmatpush3.xpose.msk.msra.mxu1 %vm368_vm0, %v3586_v52  ;;  %v7370_v9 = vpop.eup %7369  ;;  %v3114_v48 = vpop.xlane.xlu1 %3113 }
 0x4de   : > { %7027 = vmatprep.subr.msk.mxu0 %vm368_vm0, %v8754_v24  ;;  %7036 = vmatprep.subr.msk.mxu1 %vm368_vm0, %v8794_v51  ;;  %v7372_v49 = vpop.eup %7371  ;;  %7377 = vrcp.f32 %v3114_v48  ;;  %v3150_v39 = vmul.f32 %v7370_v9, %v8749_v13  ;;  %v3903_v13 = vpop.f32.mrf.mxu0 }
 0x4df   : > { %7379 = vrcp.f32 %v3123_v31  ;;  %v3153_v8 = vmul.f32 %v7372_v49, %v8757_v7 }
 0x4e0   : > { %v6984_v20 = vpop.f32.mrf.mxu0 }
 0x4e1   : > { %7028 = vmatpush3.xpose.msk.msra.mxu0 %vm368_vm0, %v8754_v24  ;;  %7037 = vmatpush3.xpose.msk.msra.mxu1 %vm368_vm0, %v8794_v51  ;;  %v6970_v24 = vpop.f32.mrf.mxu1  ;;  %v3120_v10 = vpop.xlane.xlu1 %3119 }
 0x4e2   : > { %7038 = vmatprep.subr.msk.mxu1 %vm368_vm0, %v8796_v40  ;;  %7043 = vmatprep.subr.msk.mxu0 %vm368_vm0, %v6956_v36  ;;  %v7374_v7 = vpop.eup %7373  ;;  %7381 = vrcp.f32 %v3120_v10  ;;  %v3913_v21 = vpop.f32.mrf.mxu0 }
 0x4e3   : > { %v3804_v19 = vpop.f32.mrf.mxu1  ;;  %v7376_v15 = vpop.eup %7375  ;;  %v3152_v16 = vmul.f32 %v7374_v7, %v8762_v27 }
 0x4e4   : > { %7030 = vmatmul.mubr.msk.f32.vlgmr.msra.gmra.mxu0 %vm368_vm0, %v3148_v57  ;;  %v3155_v51 = vmul.f32 %v7376_v15, %v8768_v58 }
 0x4e5   : > { %7039 = vmatpush3.xpose.msk.msra.mxu1 %vm368_vm0, %v8796_v40  ;;  %7044 = vmatpush3.xpose.msk.msra.mxu0 %vm368_vm0, %v6956_v36  ;;  %v6995_v60 = vpop.f32.mrf.mxu1  ;;  %v3126_v37 = vpop.xlane.xlu1 %3125 }
 0x4e6   : > { %7051 = vmatprep.mubr.msk.f32.mxu0 %vm368_vm0, %v3151_v14  ;;  %7045 = vmatprep.subr.msk.mxu0 %vm368_vm0, %v3695_v50  ;;  %7383 = vrcp.f32 %v3126_v37 }
 0x4e7   : > { %7054 = vmatprep.subr.msk.mxu1 %vm368_vm0, %v6970_v24  ;;  %v4012_v28 = vpop.f32.mrf.mxu1 }
 0x4e8   : > { %7041 = vmatmul.mubr.msk.f32.vlgmr.msra.gmra.mxu1 %vm368_vm0, %v3150_v39 }
 0x4e9   : > { %7046 = vmatpush3.xpose.msk.msra.mxu0 %vm368_vm0, %v3695_v50  ;;  %7055 = vmatpush3.xpose.msk.msra.mxu1 %vm368_vm0, %v6970_v24  ;;  %v6998_v6 = vpop.f32.mrf.mxu1 }
 0x4ea   : > { %7062 = vmatprep.mubr.msk.f32.mxu1 %vm368_vm0, %v3153_v8  ;;  %7047 = vmatprep.subr.msk.mxu0 %vm368_vm0, %v6953_v56 }
 0x4eb   : > { %7056 = vmatprep.subr.msk.mxu1 %vm368_vm0, %v3804_v19  ;;  %v7378_v23 = vpop.eup %7377  ;;  %v4022_v30 = vpop.f32.mrf.mxu1 }
 0x4ec   : > { %v7380_v40 = vpop.eup %7379  ;;  %v3154_v27 = vmul.f32 %v7378_v23, %v8773_v3 }
 0x4ed   : > { %7048 = vmatpush3.xpose.msk.msra.mxu0 %vm368_vm0, %v6953_v56  ;;  %7057 = vmatpush3.xpose.msk.msra.mxu1 %vm368_vm0, %v3804_v19  ;;  %v3157_v58 = vmul.f32 %v7380_v40, %v8778_v35 }
 0x4ee   : > { %7049 = vmatprep.subr.msk.mxu0 %vm368_vm0, %v3685_v63  ;;  %7058 = vmatprep.subr.msk.mxu1 %vm368_vm0, %v6967_v55 }
 0x4ef   : > { %v7382_v3 = vpop.eup %7381 }
 0x4f0   : > { %v3156_v35 = vmul.f32 %v7382_v3, %v8783_v34 }
 0x4f1   : > { %7050 = vmatpush3.xpose.msk.msra.mxu0 %vm368_vm0, %v3685_v63  ;;  %7059 = vmatpush3.xpose.msk.msra.mxu1 %vm368_vm0, %v6967_v55 }
 0x4f2   : > { %7060 = vmatprep.subr.msk.mxu1 %vm368_vm0, %v3794_v54  ;;  %7065 = vmatprep.subr.msk.mxu0 %vm368_vm0, %v6984_v20 }
 0x4f3   : > { %v7384_v47 = vpop.eup %7383 }
 0x4f4   : > { %7052 = vmatmul.mubr.msk.f32.vlgmr.msra.gmra.mxu0 %vm368_vm0, %v3152_v16  ;;  %v3158_v42 = vmul.f32 %v7384_v47, %v8790_v53 }
 0x4f5   : > { %7061 = vmatpush3.xpose.msk.msra.mxu1 %vm368_vm0, %v3794_v54  ;;  %7066 = vmatpush3.xpose.msk.msra.mxu0 %vm368_vm0, %v6984_v20 }
 0x4f6   : > { %7073 = vmatprep.mubr.msk.f32.mxu0 %vm368_vm0, %v3155_v51  ;;  %7067 = vmatprep.subr.msk.mxu0 %vm368_vm0, %v3913_v21 }
 0x4f7   : > { %7076 = vmatprep.subr.msk.mxu1 %vm368_vm0, %v6998_v6 }
 0x4f8   : > { %7063 = vmatmul.mubr.msk.f32.vlgmr.msra.gmra.mxu1 %vm368_vm0, %v3154_v27 }
 0x4f9   : > { %7068 = vmatpush3.xpose.msk.msra.mxu0 %vm368_vm0, %v3913_v21  ;;  %7077 = vmatpush3.xpose.msk.msra.mxu1 %vm368_vm0, %v6998_v6 }
 0x4fa   : > { %7084 = vmatprep.mubr.msk.f32.mxu1 %vm368_vm0, %v3157_v58  ;;  %7069 = vmatprep.subr.msk.mxu0 %vm368_vm0, %v6981_v2 }
 0x4fb   : > { %7078 = vmatprep.subr.msk.mxu1 %vm368_vm0, %v4022_v30 }
 0x4fd   : > { %7070 = vmatpush3.xpose.msk.msra.mxu0 %vm368_vm0, %v6981_v2  ;;  %7079 = vmatpush3.xpose.msk.msra.mxu1 %vm368_vm0, %v4022_v30 }
 0x4fe   : > { %7071 = vmatprep.subr.msk.mxu0 %vm368_vm0, %v3903_v13  ;;  %7080 = vmatprep.subr.msk.mxu1 %vm368_vm0, %v6995_v60 }
 0x501   : > { %7072 = vmatpush3.xpose.msk.msra.mxu0 %vm368_vm0, %v3903_v13  ;;  %7081 = vmatpush3.xpose.msk.msra.mxu1 %vm368_vm0, %v6995_v60 }
 0x502   : > { %7082 = vmatprep.subr.msk.mxu1 %vm368_vm0, %v4012_v28  ;;  %7087 = vmatprep.subr.mxu0 %v4776_v17 }
 0x504   : > { %7074 = vmatmul.mubr.msk.f32.vlgmr.msra.gmra.mxu0 %vm368_vm0, %v3156_v35 }
 0x505   : > { %7083 = vmatpush3.xpose.msk.msra.mxu1 %vm368_vm0, %v4012_v28  ;;  %7088 = vmatpush3.msra.mxu0 %v4776_v17 }
 0x506   : > { %7089 = vmatprep.subr.mxu0 %v4775_v18 }
 0x507   : > { %7090 = vmatpush3.msra.mxu0 %v4775_v18 }
 0x508   : > { %7085 = vmatmul.mubr.msk.f32.vlgmr.msra.gmra.mxu1 %vm368_vm0, %v3158_v42 }
 0x594   : > { %v7009_v0 = vpop.f32.mrf.mxu0 }
 0x596   : > { %v4115_v34 = vpop.f32.mrf.mxu0 }
 0x597   : > { %4777 = vxpose.xlu0.b32.start [1/2] (short) (narrow) %v4115_v34, 32 }
 0x598   : > { %v7020_v5 = vpop.f32.mrf.mxu1 }
 0x59a   : > { %v4208_v26 = vpop.f32.mrf.mxu1 }
 0x59b   : > { %4778 = vxpose.xlu0.b32.end [2/2] (short) (narrow) %v7009_v0, 32  ;;  %4809 = vxpose.xlu1.b32.start [1/2] (short) (narrow) %v4208_v26, 32 }
 0x59f   : > { %4810 = vxpose.xlu1.b32.end [2/2] (short) (narrow) %v7020_v5, 32 }
 0x5a4   : > { %v7031_v53 = vpop.f32.mrf.mxu0 }
 0x5a6   : > { %v4301_v61 = vpop.f32.mrf.mxu0 }
 0x5a7   : > { %4841 = vxpose.xlu0.b32.start [1/2] (short) (narrow) %v4301_v61, 32 }
 0x5a8   : > { %v7042_v59 = vpop.f32.mrf.mxu1 }
 0x5aa   : > { %v4394_v44 = vpop.f32.mrf.mxu1 }
 0x5ab   : > { %4842 = vxpose.xlu0.b32.end [2/2] (short) (narrow) %v7031_v53, 32  ;;  %4873 = vxpose.xlu1.b32.start [1/2] (short) (narrow) %v4394_v44, 32 }
 0x5af   : > { %4874 = vxpose.xlu1.b32.end [2/2] (short) (narrow) %v7042_v59, 32 }
 0x5b4   : > { %v7053_v62 = vpop.f32.mrf.mxu0 }
 0x5b6   : > { %v4487_v41 = vpop.f32.mrf.mxu0 }
 0x5b7   : > { %4905 = vxpose.xlu0.b32.start [1/2] (short) (narrow) %v4487_v41, 32 }
 0x5b8   : > { %v7064_v29 = vpop.f32.mrf.mxu1 }
 0x5ba   : > { %v4580_v22 = vpop.f32.mrf.mxu1 }
 0x5bb   : > { %4906 = vxpose.xlu0.b32.end [2/2] (short) (narrow) %v7053_v62, 32  ;;  %4937 = vxpose.xlu1.b32.start [1/2] (short) (narrow) %v4580_v22, 32 }
 0x5bf   : > { %4938 = vxpose.xlu1.b32.end [2/2] (short) (narrow) %v7064_v29, 32 }
 0x5c4   : > { %v7075_v46 = vpop.f32.mrf.mxu0 }
 0x5c6   : > { %v4673_v43 = vpop.f32.mrf.mxu0 }
 0x5c7   : > { %4969 = vxpose.xlu0.b32.start [1/2] (short) (narrow) %v4673_v43, 32 }
 0x5c8   : > { %v7086_v25 = vpop.f32.mrf.mxu1 }
 0x5ca   : > { %v4766_v1 = vpop.f32.mrf.mxu1 }
 0x5cb   : > { %4970 = vxpose.xlu0.b32.end [2/2] (short) (narrow) %v7075_v46, 32  ;;  %5001 = vxpose.xlu1.b32.start [1/2] (short) (narrow) %v4766_v1, 32 }
 0x5cf   : > { %5002 = vxpose.xlu1.b32.end [2/2] (short) (narrow) %v7086_v25, 32 }
 0x5ed   : > { %7192 = vset.pattern.permute.xlu1 %v7449_v12 }
 0x5f4   : > { %7191 = vset.pattern.permute.xlu0 %v7449_v12 }
 0x5f5   : > { %5619 = vperm.xlu1 %7192, %v5611_v38  }
 0x5fc   : > { %5614 = vperm.xlu0 %7191, %v5610_v32  }
 0x613   : > { %v4793_v52 = vpop.trf.xlu0 }
 0x614   : > { %7091 = vmatprep.mubr.msk.f32.mxu0 %vm368_vm0, %v4793_v52 }
 0x617   : > { %v4794_v56 = vpop.trf.xlu0  ;;  %v4825_v63 = vpop.trf.xlu1 }
 0x618   : > { %7092 = vmatmul.mubr.msk.f32.vlgmr.msra.gmra.mxu0 %vm368_vm0, %v4794_v56 }
 0x61b   : > { %v4795_v4 = vpop.trf.xlu0  ;;  %v4826_v55 = vpop.trf.xlu1 }
 0x61c   : > { %7094 = vmatprep.mubr.msk.f32.mxu0 %vm368_vm0, %v4795_v4 }
 0x61f   : > { %v4796_v33 = vpop.trf.xlu0  ;;  %v4827_v45 = vpop.trf.xlu1 }
 0x620   : > { %7095 = vmatmul.mubr.msk.f32.gmra.mxu0 %vm368_vm0, %v4796_v33 }
 0x621   : > { %7097 = vmatprep.mubr.msk.f32.mxu0 %vm368_vm0, %v4825_v63 }
 0x623   : > { %v4857_v11 = vpop.trf.xlu0  ;;  %v4828_v36 = vpop.trf.xlu1 }
 0x624   : > { %7098 = vmatmul.mubr.msk.f32.gmra.mxu0 %vm368_vm0, %v4826_v55 }
 0x625   : > { %7100 = vmatprep.mubr.msk.f32.mxu0 %vm368_vm0, %v4827_v45 }
 0x627   : > { %v4858_v54 = vpop.trf.xlu0  ;;  %v4889_v57 = vpop.trf.xlu1 }
 0x628   : > { %7101 = vmatmul.mubr.msk.f32.gmra.mxu0 %vm368_vm0, %v4828_v36  ;;  %v5643_v36 = vlaneseq }
 0x629   : > { %7103 = vmatprep.mubr.msk.f32.mxu0 %vm368_vm0, %v4857_v11 }
 0x62b   : > { %v4859_v9 = vpop.trf.xlu0  ;;  %v4890_v48 = vpop.trf.xlu1 }
 0x62c   : > { %7104 = vmatmul.mubr.msk.f32.gmra.mxu0 %vm368_vm0, %v4858_v54  ;;  %v7450_v54 = vmov 1983009808  }
 0x62d   : > { %7106 = vmatprep.mubr.msk.f32.mxu0 %vm368_vm0, %v4859_v9  ;;  %v5644_v9 = vshrl.u32 %v5643_v36, 7 }
 0x62f   : > { %v4860_v14 = vpop.trf.xlu0  ;;  %v4891_v49 = vpop.trf.xlu1 }
 0x630   : > { %7107 = vmatmul.mubr.msk.f32.gmra.mxu0 %vm368_vm0, %v4860_v14 }
 0x631   : > { %7109 = vmatprep.mubr.msk.f32.mxu0 %vm368_vm0, %v4889_v57  ;;  %v5641_v57 = vunpack.c.l.s4 %v7450_v54 }
 0x633   : > { %v4921_v50 = vpop.trf.xlu0  ;;  %v4892_v31 = vpop.trf.xlu1 }
 0x634   : > { %7110 = vmatmul.mubr.msk.f32.gmra.mxu0 %vm368_vm0, %v4890_v48  ;;  %v5642_v48 = vunpack.c.0.s8 %v5641_v57 }
 0x635   : > { %7112 = vmatprep.mubr.msk.f32.mxu0 %vm368_vm0, %v4891_v49 }
 0x637   : > { %v4922_v24 = vpop.trf.xlu0  ;;  %v4953_v39 = vpop.trf.xlu1 }
 0x638   : > { %7113 = vmatmul.mubr.msk.f32.gmra.mxu0 %vm368_vm0, %v4892_v31 }
 0x639   : > { %7115 = vmatprep.mubr.msk.f32.mxu0 %vm368_vm0, %v4921_v50 }
 0x63b   : > { %v4923_v8 = vpop.trf.xlu0  ;;  %v4954_v2 = vpop.trf.xlu1 }
 0x63c   : > { %7116 = vmatmul.mubr.msk.f32.gmra.mxu0 %vm368_vm0, %v4922_v24 }
 0x63d   : > { %7118 = vmatprep.mubr.msk.f32.mxu0 %vm368_vm0, %v4923_v8  ;;  %v7451_v8 = vmov 1934713408  }
 0x63f   : > { %v4924_v19 = vpop.trf.xlu0  ;;  %v4955_v13 = vpop.trf.xlu1 }
 0x640   : > { %7119 = vmatmul.mubr.msk.f32.gmra.mxu0 %vm368_vm0, %v4924_v19  ;;  %v8931_v19 = vsub.s32 %v5642_v48, %v5644_v9 }
 0x641   : > { %7121 = vmatprep.mubr.msk.f32.mxu0 %vm368_vm0, %v4953_v39 }
 0x643   : > { %v4985_v10 = vpop.trf.xlu0  ;;  %v4956_v60 = vpop.trf.xlu1 }
 0x644   : > { %7122 = vmatmul.mubr.msk.f32.gmra.mxu0 %vm368_vm0, %v4954_v2  ;;  %v5705_v2 = vunpack.c.l.s4 %v7451_v8 }
 0x645   : > { %7124 = vmatprep.mubr.msk.f32.mxu0 %vm368_vm0, %v4955_v13 }
 0x647   : > { %v4986_v7 = vpop.trf.xlu0  ;;  %v5017_v15 = vpop.trf.xlu1 }
 0x648   : > { %7125 = vmatmul.mubr.msk.f32.gmra.mxu0 %vm368_vm0, %v4956_v60 }
 0x649   : > { %7127 = vmatprep.mubr.msk.f32.mxu0 %vm368_vm0, %v4985_v10 }
 0x64b   : > { %v4987_v20 = vpop.trf.xlu0  ;;  %v5018_v28 = vpop.trf.xlu1 }
 0x64c   : > { %7128 = vmatmul.mubr.msk.f32.gmra.mxu0 %vm368_vm0, %v4986_v7 }
 0x64d   : > { %7130 = vmatprep.mubr.msk.f32.mxu0 %vm368_vm0, %v4987_v20 }
 0x64f   : > { %v4988_v16 = vpop.trf.xlu0  ;;  %v5019_v23 = vpop.trf.xlu1 }
 0x650   : > { %7131 = vmatmul.mubr.msk.f32.gmra.mxu0 %vm368_vm0, %v4988_v16 }
 0x651   : > { %7133 = vmatprep.mubr.msk.f32.mxu0 %vm368_vm0, %v5017_v15  ;;  %v5706_v15 = vunpack.c.0.s8 %v5705_v2 }
 0x653   : > { %v5020_v37 = vpop.trf.xlu1 }
 0x654   : > { %7134 = vmatmul.mubr.msk.f32.gmra.mxu0 %vm368_vm0, %v5018_v28 }
 0x655   : > { %7136 = vmatprep.mubr.msk.f32.mxu0 %vm368_vm0, %v5019_v23 }
 0x658   : > { %7137 = vmatmul.mubr.msk.f32.gmra.mxu0 %vm368_vm0, %v5020_v37 }
 0x670   : > { %v8929_v52 = vpop.permute.xlu1 %5619 }
 0x677   : > { %v5615_v56 = vpop.permute.xlu0 %5614 }
 0x6d8   : > { %v7093_v51 = vpop.f32.mrf.mxu0 }
 0x6da   : > { %v5195_v40 = vpop.f32.mrf.mxu0 }
 0x6db   : > { %5354 = vxpose.xlu1.b32.start [1/4] (short) (narrow) %v5195_v40, 16 }
 0x6df   : > { %5355 = vxpose.xlu1.b32.cont [2/4] (short) (narrow) %v7093_v51, 16 }
 0x6e0   : > { %v7096_v21 = vpop.f32.mrf.mxu0 }
 0x6e2   : > { %v5205_v6 = vpop.f32.mrf.mxu0 }
 0x6e3   : > { %5356 = vxpose.xlu1.b32.cont [3/4] (short) (narrow) %v5205_v6, 16 }
 0x6e4   : > { %v7099_v27 = vpop.f32.mrf.mxu0 }
 0x6e6   : > { %v5215_v58 = vpop.f32.mrf.mxu0 }
 0x6e7   : > { %5357 = vxpose.xlu1.b32.end [4/4] (short) (narrow) %v7096_v21, 16  ;;  %5386 = vxpose.xlu0.b32.start [1/4] (short) (narrow) %v5215_v58, 16 }
 0x6e8   : > { %v7102_v30 = vpop.f32.mrf.mxu0 }
 0x6ea   : > { %v5225_v3 = vpop.f32.mrf.mxu0 }
 0x6eb   : > { %5387 = vxpose.xlu0.b32.cont [2/4] (short) (narrow) %v7099_v27, 16  ;;  %v8942_v27 = vsub.s32 %v5706_v15, %v5644_v9 }
 0x6ec   : > { %v7105_v35 = vpop.f32.mrf.mxu0 }
 0x6ee   : > { %v5235_v47 = vpop.f32.mrf.mxu0 }
 0x6ef   : > { %5388 = vxpose.xlu0.b32.cont [3/4] (short) (narrow) %v5225_v3, 16 }
 0x6f0   : > { %v7108_v42 = vpop.f32.mrf.mxu0 }
 0x6f2   : > { %v5245_v17 = vpop.f32.mrf.mxu0 }
 0x6f3   : > { %5389 = vxpose.xlu0.b32.end [4/4] (short) (narrow) %v7102_v30, 16 }
 0x6f4   : > { %v7111_v18 = vpop.f32.mrf.mxu0 }
 0x6f6   : > { %v5255_v0 = vpop.f32.mrf.mxu0 }
 0x6f7   : > { %5418 = vxpose.xlu0.b32.start [1/4] (short) (narrow) %v5235_v47, 16  ;;  %5450 = vxpose.xlu1.b32.start [1/4] (short) (narrow) %v5255_v0, 16 }
 0x6f8   : > { %v7114_v34 = vpop.f32.mrf.mxu0 }
 0x6fa   : > { %v5265_v5 = vpop.f32.mrf.mxu0 }
 0x6fb   : > { %5419 = vxpose.xlu0.b32.cont [2/4] (short) (narrow) %v7105_v35, 16  ;;  %5451 = vxpose.xlu1.b32.cont [2/4] (short) (narrow) %v7111_v18, 16 }
 0x6fc   : > { %v7117_v26 = vpop.f32.mrf.mxu0 }
 0x6fe   : > { %v5275_v53 = vpop.f32.mrf.mxu0 }
 0x6ff   : > { %5420 = vxpose.xlu0.b32.cont [3/4] (short) (narrow) %v5245_v17, 16  ;;  %5452 = vxpose.xlu1.b32.cont [3/4] (short) (narrow) %v5265_v5, 16 }
 0x700   : > { %v7120_v61 = vpop.f32.mrf.mxu0 }
 0x702   : > { %v5285_v59 = vpop.f32.mrf.mxu0 }
 0x703   : > { %5421 = vxpose.xlu0.b32.end [4/4] (short) (narrow) %v7108_v42, 16  ;;  %5453 = vxpose.xlu1.b32.end [4/4] (short) (narrow) %v7114_v34, 16 }
 0x704   : > { %v7123_v44 = vpop.f32.mrf.mxu0 }
 0x706   : > { %v5295_v62 = vpop.f32.mrf.mxu0 }
 0x707   : > { %5482 = vxpose.xlu0.b32.start [1/4] (short) (narrow) %v5275_v53, 16  ;;  %5514 = vxpose.xlu1.b32.start [1/4] (short) (narrow) %v5295_v62, 16 }
 0x708   : > { %v7126_v41 = vpop.f32.mrf.mxu0 }
 0x70a   : > { %v5305_v29 = vpop.f32.mrf.mxu0 }
 0x70b   : > { %5483 = vxpose.xlu0.b32.cont [2/4] (short) (narrow) %v7117_v26, 16  ;;  %5515 = vxpose.xlu1.b32.cont [2/4] (short) (narrow) %v7123_v44, 16 }
 0x70c   : > { %v7129_v22 = vpop.f32.mrf.mxu0 }
 0x70e   : > { %v5315_v46 = vpop.f32.mrf.mxu0 }
 0x70f   : > { %5484 = vxpose.xlu0.b32.cont [3/4] (short) (narrow) %v5285_v59, 16  ;;  %5516 = vxpose.xlu1.b32.cont [3/4] (short) (narrow) %v5305_v29, 16 }
 0x710   : > { %v7132_v43 = vpop.f32.mrf.mxu0 }
 0x712   : > { %v5325_v25 = vpop.f32.mrf.mxu0 }
 0x713   : > { %5485 = vxpose.xlu0.b32.end [4/4] (short) (narrow) %v7120_v61, 16  ;;  %5517 = vxpose.xlu1.b32.end [4/4] (short) (narrow) %v7126_v41, 16 }
 0x714   : > { %v7135_v1 = vpop.f32.mrf.mxu0 }
 0x716   : > { %v5335_v12 = vpop.f32.mrf.mxu0 }
 0x717   : > { %5546 = vxpose.xlu0.b32.start [1/4] (short) (narrow) %v5315_v46, 16  ;;  %5578 = vxpose.xlu1.b32.start [1/4] (short) (narrow) %v5335_v12, 16 }
 0x718   : > { %v7138_v38 = vpop.f32.mrf.mxu0 }
 0x71a   : > { %v5345_v32 = vpop.f32.mrf.mxu0 }
 0x71b   : > { %5547 = vxpose.xlu0.b32.cont [2/4] (short) (narrow) %v7129_v22, 16  ;;  %5579 = vxpose.xlu1.b32.cont [2/4] (short) (narrow) %v7135_v1, 16 }
 0x71f   : > { %5548 = vxpose.xlu0.b32.cont [3/4] (short) (narrow) %v5325_v25, 16  ;;  %5580 = vxpose.xlu1.b32.cont [3/4] (short) (narrow) %v5345_v32, 16 }
 0x723   : > { %5549 = vxpose.xlu0.b32.end [4/4] (short) (narrow) %v7132_v43, 16  ;;  %5581 = vxpose.xlu1.b32.end [4/4] (short) (narrow) %v7138_v38, 16 }
 0x757   : > { %v5370_v63 = vpop.trf.xlu1 }
 0x758   : > { %v5622_v24 = vadd.f32 %v5615_v56, %v5370_v63 }
 0x75b   : > { %v5371_v55 = vpop.trf.xlu1 }
 0x75c   : > { %v5623_v6 = vadd.f32 %v8929_v52, %v5371_v55 }
 0x763   : > { %v5402_v4 = vpop.trf.xlu0 }
 0x764   : > { %v5624_v39 = vadd.f32 %v5615_v56, %v5402_v4 }
 0x767   : > { %v5403_v33 = vpop.trf.xlu0 }
 0x768   : > { %v5625_v58 = vadd.f32 %v8929_v52, %v5403_v33 }
 0x773   : > { %v5466_v45 = vpop.trf.xlu1  ;;  %v5434_v11 = vpop.trf.xlu0 }
 0x774   : > { %v5628_v14 = vadd.f32 %v5615_v56, %v5466_v45  ;;  %v5626_v49 = vadd.f32 %v5615_v56, %v5434_v11 }
 0x776   : > { %v5654_v13 = vcombine.low %v5624_v39, %v5628_v14  ;;  %v5638_v10 = vcombine.low %v5622_v24, %v5626_v49  ;;  %v5655_v20 = vcombine.high %v5624_v39, %v5628_v14  ;;  %v5639_v16 = vcombine.high %v5622_v24, %v5626_v49 }
 0x777   : > { %v5467_v50 = vpop.trf.xlu1  ;;  %v5435_v31 = vpop.trf.xlu0 }
 0x778   : > { %v8934_v28 = vrot.slane %v5654_v13, %v8931_v19  ;;  %v8937_v23 = vrot.slane %v5638_v10, %v8931_v19  ;;  %v5629_v37 = vadd.f32 %v8929_v52, %v5467_v50  ;;  %v5627_v51 = vadd.f32 %v8929_v52, %v5435_v31 }
 0x779   : > { %v5669_v30 = vrot.slane %v5655_v20, %v8931_v19  ;;  %v5653_v3 = vrot.slane %v5639_v16, %v8931_v19 }
 0x77a   : > { %v5702_v35 = vcombine.low %v8937_v23, %v8934_v28  ;;  %v5790_v47 = vcombine.low %v5625_v58, %v5629_v37  ;;  %v5791_v42 = vcombine.high %v5625_v58, %v5629_v37  ;;  %v5774_v17 = vcombine.low %v5623_v6, %v5627_v51 }
 0x77b   : > { %v5775_v18 = vcombine.high %v5623_v6, %v5627_v51  ;;  %v5703_v59 = vcombine.high %v8937_v23, %v8934_v28  ;;  %v5718_v62 = vcombine.low %v5653_v3, %v5669_v30  ;;  %v5719_v41 = vcombine.high %v5653_v3, %v5669_v30 }
 0x77c   : > { %v8952_v44 = vrot.slane %v5702_v35, %v8942_v27  ;;  %v5798_v25 = vrot.slane %v5790_v47, %v8931_v19  ;;  %v8956_v1 = vrot.slane %v5791_v42, %v8931_v19  ;;  %v5782_v12 = vrot.slane %v5774_v17, %v8931_v19 }
 0x77d   : > { %v8960_v38 = vrot.slane %v5775_v18, %v8931_v19  ;;  %v8971_v39 = vrot.slane %v5718_v62, %v8942_v27 }
 0x77e   : > { %v5838_v8 = vcombine.low %v5782_v12, %v5798_v25  ;;  %v5839_v18 = vcombine.high %v5782_v12, %v5798_v25 }
 0x77f   : > { %v5854_v23 = vcombine.low %v8960_v38, %v8956_v1 }
 0x780   : > { %v5846_v6 = vrot.slane %v5838_v8, %v8942_v27 }
 0x781   : > { %v5862_v17 = vrot.slane %v5854_v23, %v8942_v27 }
 0x783   : > { %v5530_v60 = vpop.trf.xlu1  ;;  %v5498_v7 = vpop.trf.xlu0 }
 0x784   : > { %v5632_v5 = vadd.f32 %v5615_v56, %v5530_v60  ;;  %v5630_v26 = vadd.f32 %v5615_v56, %v5498_v7 }
 0x787   : > { %v5531_v40 = vpop.trf.xlu1  ;;  %v5499_v21 = vpop.trf.xlu0 }
 0x788   : > { %v5633_v45 = vadd.f32 %v8929_v52, %v5531_v40  ;;  %v5631_v11 = vadd.f32 %v8929_v52, %v5499_v21  ;;  %v5717_v40 = vrot.slane %v5703_v59, %v8942_v27  ;;  %v5733_v21 = vrot.slane %v5719_v41, %v8942_v27 }
 0x789   : > { %v5855_v41 = vcombine.high %v8960_v38, %v8956_v1 }
 0x793   : > { %v5594_v0 = vpop.trf.xlu1  ;;  %v5562_v34 = vpop.trf.xlu0 }
 0x794   : > { %v5636_v53 = vadd.f32 %v5615_v56, %v5594_v0  ;;  %v5634_v61 = vadd.f32 %v5615_v56, %v5562_v34 }
 0x796   : > { %v5686_v29 = vcombine.low %v5632_v5, %v5636_v53  ;;  %v5687_v22 = vcombine.high %v5632_v5, %v5636_v53  ;;  %v5670_v46 = vcombine.low %v5630_v26, %v5634_v61  ;;  %v5671_v43 = vcombine.high %v5630_v26, %v5634_v61 }
 0x797   : > { %v5595_v32 = vpop.trf.xlu1  ;;  %v5563_v56 = vpop.trf.xlu0  ;;  %v5853_v61 = vrot.slane %v5839_v18, %v8942_v27 }
 0x798   : > { %v5694_v63 = vrot.slane %v5686_v29, %v8931_v19  ;;  %v5701_v4 = vrot.slane %v5687_v22, %v8931_v19  ;;  %v5678_v55 = vrot.slane %v5670_v46, %v8931_v19  ;;  %v5685_v33 = vrot.slane %v5671_v43, %v8931_v19 }
 0x799   : > { %v5637_v36 = vadd.f32 %v8929_v52, %v5595_v32  ;;  %v5635_v54 = vadd.f32 %v8929_v52, %v5563_v56  ;;  %v5869_v43 = vrot.slane %v5855_v41, %v8942_v27 }
 0x79a   : > { %v5734_v57 = vcombine.low %v5678_v55, %v5694_v63  ;;  %v5735_v9 = vcombine.high %v5678_v55, %v5694_v63  ;;  %v5750_v48 = vcombine.low %v5685_v33, %v5701_v4  ;;  %v5751_v14 = vcombine.high %v5685_v33, %v5701_v4 }
 0x79b   : > { %v5822_v49 = vcombine.low %v5633_v45, %v5637_v36  ;;  %v5823_v50 = vcombine.high %v5633_v45, %v5637_v36  ;;  %v5806_v31 = vcombine.low %v5631_v11, %v5635_v54  ;;  %v5807_v24 = vcombine.high %v5631_v11, %v5635_v54 }
 0x79c   : > { %v8974_v2 = vrot.slane %v5734_v57, %v8942_v27  ;;  %v8977_v13 = vrot.slane %v5750_v48, %v8942_v27  ;;  %v5749_v15 = vrot.slane %v5735_v9, %v8942_v27  ;;  %v5765_v20 = vrot.slane %v5751_v14, %v8942_v27 }
 0x79d   : > { %v5830_v52 = vrot.slane %v5822_v49, %v8931_v19  ;;  %v5837_v10 = vrot.slane %v5823_v50, %v8931_v19  ;;  %v5814_v60 = vrot.slane %v5806_v31, %v8931_v19  ;;  %v5821_v7 = vrot.slane %v5807_v24, %v8931_v19 }
 0x79e   : > { %v5771_v28 = vcombine.high %v8971_v39, %v8977_v13  ;;  %v5767_v16 = vcombine.high %v8952_v44, %v8974_v2  ;;  %v5770_v19 = vcombine.low %v8971_v39, %v8977_v13  ;;  %v5772_v35 = vcombine.low %v5733_v21, %v5765_v20 }
 0x79f   : > { %v5870_v37 = vcombine.low %v5814_v60, %v5830_v52  ;;  %v5886_v51 = vcombine.low %v5821_v7, %v5837_v10  ;;  %v5871_v3 = vcombine.high %v5814_v60, %v5830_v52  ;;  %v5768_v47 = vcombine.low %v5717_v40, %v5749_v15 }
 0x7a0   : > { %5923 = vrot.lane.b32.xlu1 %v5771_v28, %s7452_s26  ;;  %5911 = vrot.lane.b32.xlu0 %v5767_v16, %s7452_s26  ;;  %v5766_v42 = vcombine.low %v8952_v44, %v8974_v2  ;;  %v5773_v26 = vcombine.high %v5733_v21, %v5765_v20  ;;  %v5769_v53 = vcombine.high %v5717_v40, %v5749_v15 }
 0x7a1   : > { %v5878_v58 = vrot.slane %v5870_v37, %v8942_v27  ;;  %v9000_v30 = vrot.slane %v5886_v51, %v8942_v27  ;;  %v5885_v5 = vrot.slane %v5871_v3, %v8942_v27  ;;  %v5887_v59 = vcombine.high %v5821_v7, %v5837_v10 }
 0x7a3   : > { %v5902_v0 = vcombine.low %v5846_v6, %v5878_v58  ;;  %v5906_v34 = vcombine.low %v5862_v17, %v9000_v30  ;;  %v5904_v44 = vcombine.low %v5853_v61, %v5885_v5  ;;  %v5903_v62 = vcombine.high %v5846_v6, %v5878_v58 }
 0x7a4   : > { %5927 = vrot.lane.b32.xlu1 %v5772_v35, %s7453_s10  ;;  %5915 = vrot.lane.b32.xlu0 %v5768_v47, %s7453_s10  ;;  %v5901_v29 = vrot.slane %v5887_v59, %v8942_v27  ;;  %v5905_v22 = vcombine.high %v5853_v61, %v5885_v5  ;;  %v5907_v46 = vcombine.high %v5862_v17, %v9000_v30 }
 0x7a6   : > { %v5908_v25 = vcombine.low %v5869_v43, %v5901_v29  ;;  %v5909_v12 = vcombine.high %v5869_v43, %v5901_v29 }
 0x7a8   : > { %5931 = vrot.lane.b32.xlu1 %v5773_v26, %s7454_s12  ;;  %5919 = vrot.lane.b32.xlu0 %v5769_v53, %s7454_s12 }
 0x7ac   : > { %5939 = vrot.lane.b32.xlu0 %v5904_v44, %s7453_s10  ;;  %5935 = vrot.lane.b32.xlu1 %v5903_v62, %s7452_s26 }
 0x7b0   : > { %5943 = vrot.lane.b32.xlu0 %v5905_v22, %s7454_s12  ;;  %5947 = vrot.lane.b32.xlu1 %v5907_v46, %s7452_s26  ;;  %s7389_s26 = sshll.u32 %s7455_s9, 4  ;;  %s7390_s26 = int_to_ptr.vmem [resolvable:$false] %s7389_s26 }
 0x7b1   : > { %p7392_p0 = scmp.lt.s32.totalorder %s5992_s20, %s7390_s26 }
 0x7b4   : > { %5951 = vrot.lane.b32.xlu1 %v5908_v25, %s7453_s10  ;;  %s7391_s10 = scalar_lea.vmem %s7390_s26, 1024 }
 0x7b5   : > { %p7393_p1 = scmp.lt.s32.totalorder %s7391_s10, %s7385_s21 }
 0x7b7   : > { %p7394_p2 = por %p7393_p1, %p7392_p0 }
 0x7b8   : > { %5955 = vrot.lane.b32.xlu1 %v5909_v12, %s7454_s12 }
 0x7b9   : > { %p7395_p3 = pnand %p7394_p2, %p7388_p13 }
 0x812   : > { %v5924_v32 = vpop.permute.xlu1 %5923  ;;  %v5912_v1 = vpop.permute.xlu0 %5911 }
 0x813   : > { %v5963_v63 = vsel %vm710_vm1, %v5770_v19, %v5924_v32  ;;  %v5958_v27 = vsel %vm710_vm1, %v5766_v42, %v5912_v1 }
 0x816   : > { %v5928_v38 = vpop.permute.xlu1 %5927  ;;  %v5916_v56 = vpop.permute.xlu0 %5915 }
 0x817   : > { %v5964_v4 = vsel %vm5959_vm3, %v5963_v63, %v5928_v38  ;;  %v5960_v55 = vsel %vm5959_vm3, %v5958_v27, %v5916_v56 }
 0x81a   : > { %v5932_v33 = vpop.permute.xlu1 %5931  ;;  %v5920_v45 = vpop.permute.xlu0 %5919 }
 0x81b   : > { %v5965_v11 = vsel %vm5961_vm4, %v5964_v4, %v5932_v33  ;;  %v5962_v36 = vsel %vm5961_vm4, %v5960_v55, %v5920_v45 }
 0x81c   : > { %5973 = vst [vmem:[%s319_s18 + $0x8] sm:$0xff] %v5965_v11  ;;  %5972 = vst [vmem:[%s319_s18] sm:$0xff] %v5962_v36 }
 0x81e   : > { %v5936_v54 = vpop.permute.xlu1 %5935  ;;  %v5940_v57 = vpop.permute.xlu0 %5939 }
 0x81f   : > { %v5966_v9 = vsel %vm710_vm1, %v5902_v0, %v5936_v54 }
 0x820   : > { %v5967_v48 = vsel %vm5959_vm3, %v5966_v9, %v5940_v57 }
 0x822   : > { %v5948_v14 = vpop.permute.xlu1 %5947  ;;  %v5944_v49 = vpop.permute.xlu0 %5943 }
 0x823   : > { %v5968_v50 = vsel %vm5961_vm4, %v5967_v48, %v5944_v49  ;;  %v5969_v24 = vsel %vm710_vm1, %v5906_v34, %v5948_v14 }
 0x824   : > { %5974 = vst [vmem:[%s319_s18 + $0x10] sm:$0xff] %v5968_v50 }
 0x826   : > { %v5952_v31 = vpop.permute.xlu1 %5951 }
 0x827   : > { %v5970_v39 = vsel %vm5959_vm3, %v5969_v24, %v5952_v31 }
 0x82a   : > { %v5956_v8 = vpop.permute.xlu1 %5955 }
 0x82b   : > { %v5971_v2 = vsel %vm5961_vm4, %v5970_v39, %v5956_v8 }
 0x82c   : > { %5975 = vst [vmem:[%s319_s18 + $0x18] sm:$0xff] %v5971_v2 }
 0x82d   : > { %7398 = shalt.err (!%p7395_p3)
}
 0x82e   : > { %s7399_s12 = scalar_lea.hbm %s9033_s24, 512  ;;  %s7403_s18 = scalar_lea.hbm %s9079_s8, 1024 }
 0x82f   : > { %p7400_p4 = scmp.ne.s32.totalorder %s9033_s24, %s7399_s12  ;;  %p7404_p9 = scmp.lt.s32.totalorder %s9033_s24, %s9079_s8 }
 0x830   : > { %p7405_p10 = scmp.lt.s32.totalorder %s7403_s18, %s7399_s12 }
 0x831   : > { %p7401_p7 = pnand %p7400_p4, %p7539_p5 }
 0x832   : > { %p7406_p11 = por %p7405_p10, %p7404_p9 }
 0x833   : > { %p7402_p8 = pneg %p7401_p7 }
 0x835   : > { %p7407_p12 = pnand %p7406_p11, %p7402_p8 }
 0x837   : > { %7410 = shalt.err (!%p7407_p12)
}
 0x838   : > { %7143 = dma.vmem_to_hbm [thread:$0]  (%p7539_p5), %s5992_s20, 512, %s9033_s24, %s5977_s25  }
 0x839 PF: > { %p7149_p13 = scmp.ge.s32.totalorder %s7445_s30, 2  ;;  %s6003_s23 = sand.u32 1, %s7433_s27  }
 0x83a   : > { %s6004_s21 = scalar_lea.sflag [#allocation3], %s6003_s23 }
 0x83b   : > { %p7146_p0 = pnand %p7149_p13, %p7543_p6 }
 0x83d   : > { %p7147_p1 = pneg %p7146_p0 }
 0x83f   : > { %7428 = dma.done.wait (%p7147_p1), %s6004_s21, 512  }
 0x840   : > { %7430 = vsyncadd (%p7147_p1), %s6004_s21, 4294966784  ;;  %p18_p2 = scmp.ge.s32.totalorder %s7526_s11, 4   ;;  %s9097_s27 = smov %s7437_s28 }
 0x841   : > { %s9098_s28 = smov %s7441_s29  ;;  %s9099_s29 = smov %s7537_s14 }
 0x842   : > { %s9100_s30 = smov %s7526_s11  ;;  %20 = sbr.rel (!%p18_p2) target bundleno = 3 (0x3), region = 90 }
 0x847   :  { %6009 = vsyncpa [#allocation3], 1 }
 0x848   :  { %6011 = vsyncpa [#allocation3 + $0x1], 1 }

</bundles_post_ra>
